<compile_context>
chip_gen: v6e
topology: v6e:2x2x1
jax: 0.10.0
libtpu: 0.0.40
codegen_flags: <defaults>
</compile_context>

<pallas_src>
import functools
import math

import jax
import jax.numpy as jnp
from jax.experimental import pallas as pl
from jax.experimental.pallas import tpu as pltpu

BF16 = jnp.bfloat16


# ----------------------------- in-kernel helpers -----------------------------

def _gelu(x):
    # exact (erf) GELU, matching torch.nn.GELU default
    return 0.5 * x * (1.0 + jax.lax.erf(x * 0.7071067811865476))


def _layernorm(x, g, b, eps=1e-5):
    mu = jnp.mean(x, axis=-1, keepdims=True)
    var = jnp.mean((x - mu) ** 2, axis=-1, keepdims=True)
    return (x - mu) * jax.lax.rsqrt(var + eps) * g + b


# ------------------- fused linear kernel (matmul+bias+GELU) ------------------
# Used for conv1 (3x3 conv via bf16 im2col).  The wrapper packs `pack` logical
# rows per stored row with a block-diagonal weight so the output last dim is a
# multiple of 128 (lane-dense stores), with zero in-kernel reshapes.

def _linear_kernel(x_ref, w_ref, b_ref, o_ref, *, gelu):
    y = jnp.dot(x_ref[...], w_ref[...],
                preferred_element_type=jnp.float32) + b_ref[...]
    if gelu:
        y = _gelu(y)
    o_ref[...] = y.astype(o_ref.dtype)


def pallas_linear(x, w, b, gelu=False, tile_m=1024):
    # x: (M, K) bf16, w: (K, N) bf16, b: (1, N) f32 -> (M, N) bf16
    M, K = x.shape
    N = w.shape[1]
    tm = min(tile_m, M)
    return pl.pallas_call(
        functools.partial(_linear_kernel, gelu=gelu),
        out_shape=jax.ShapeDtypeStruct((M, N), jnp.bfloat16),
        grid=(pl.cdiv(M, tm),),
        in_specs=[pl.BlockSpec((tm, K), lambda i: (i, 0)),
                  pl.BlockSpec((K, N), lambda i: (0, 0)),
                  pl.BlockSpec((1, N), lambda i: (0, 0))],
        out_specs=pl.BlockSpec((tm, N), lambda i: (i, 0)),
        compiler_params=pltpu.CompilerParams(
            dimension_semantics=("parallel",),
            vmem_limit_bytes=32 * 1024 * 1024),
    )(x, w, b)


def _lane_pack(n):
    # smallest p such that p*n is a multiple of 128 (lane-dense output width)
    return 128 // math.gcd(n, 128)


def _conv1_block_diag(w, b, pack):
    # Expand (K, C) -> block-diagonal (pack*K, pack*C) so each stored output row
    # carries `pack` logical conv1 rows -> last dim pack*C is 128-aligned.
    K, C = w.shape
    wb = jnp.zeros((pack * K, pack * C), w.dtype)
    for i in range(pack):
        wb = wb.at[i * K:(i + 1) * K, i * C:(i + 1) * C].set(w)
    bb = jnp.tile(b, (1, pack))
    return wb, bb


# ------ fused patch-embed + transformer stack + pool + mlp_head kernel -------
# grid = (num_batch_tiles, depth): batch-tile axis "parallel", depth
# "arbitrary".  Residual stream is resident in VMEM scratch across the depth
# axis; per-layer weights are DMA'd once per (batch-tile, layer) step; only the
# lane-dense (128-padded) logits go back to HBM.

def _stack_kernel(p_ref, c2w_ref, c2b_ref, ew_ref, eb_ref, clsp_ref, posr_ref,
                  ln1g_ref, ln1b_ref, wq_ref, wk_ref, wv_ref, wo_ref,
                  ln2g_ref, ln2b_ref, w1_ref, w2_ref,
                  hg_ref, hlb_ref, hw_ref, hb_ref,
                  logits_ref, x_sc, *, heads, dim_head, pool, tile_b):
    l = pl.program_id(1)
    depth = pl.num_programs(1)
    inner = heads * dim_head
    bf16 = jnp.bfloat16

    # ---- layer 0: fused patch embedding straight into the residual scratch ---
    @pl.when(l == 0)
    def _():
        c2w = c2w_ref[...]
        c2b = c2b_ref[...]
        ew = ew_ref[...]
        eb = eb_ref[...]
        cls_pos0 = clsp_ref[...]          # cls_token + pos[0]   (host-prefolded)
        pos_rest = posr_ref[...]          # pos[1:]
        for bb in range(tile_b):
            pch = p_ref[bb]                                       # (hw, ps*ps*C) bf16
            z = _gelu(jnp.dot(pch, c2w,
                              preferred_element_type=jnp.float32) + c2b)  # (hw, C)
            tok = jnp.dot(z.T.astype(ew.dtype), ew,
                          preferred_element_type=jnp.float32) + eb        # (C, dim)
            # NOTE: concat kept (proven lowering); a two-slice store performs
            # the same sublane-unaligned copy, so the delta is negligible.
            x_sc[bb] = jnp.concatenate([cls_pos0, tok + pos_rest], axis=0)

    # per-layer weights: one VMEM read per grid step, reused for all TILE_B rows
    ln1g, ln1b = ln1g_ref[0], ln1b_ref[0]
    ln2g, ln2b = ln2g_ref[0], ln2b_ref[0]
    wq, wk, wv, wo = wq_ref[0], wk_ref[0], wv_ref[0], wo_ref[0]
    w1, w2 = w1_ref[0], w2_ref[0]

    for bb in range(tile_b):
        x = x_sc[bb]                                              # (N, D) f32
        N = x.shape[0]

        # --- attention block (PreNorm); 1/sqrt(dh) already folded into wq ---
        h = _layernorm(x, ln1g, ln1b).astype(wq.dtype)            # bf16 operand
        q = jnp.dot(h, wq, preferred_element_type=jnp.float32)    # (N, inner)
        k = jnp.dot(h, wk, preferred_element_type=jnp.float32)
        v = jnp.dot(h, wv, preferred_element_type=jnp.float32)
        # head split '(h d)' packing; bf16 operands for both attention einsums
        qh = jnp.transpose(q.reshape(N, heads, dim_head), (1, 0, 2)).astype(bf16)
        kh = jnp.transpose(k.reshape(N, heads, dim_head), (1, 0, 2)).astype(bf16)
        vh = jnp.transpose(v.reshape(N, heads, dim_head), (1, 0, 2)).astype(bf16)
        s = jnp.einsum('hnd,hmd->hnm', qh, kh,
                       preferred_element_type=jnp.float32)        # (H, N, N) f32
        s = s - jnp.max(s, axis=-1, keepdims=True)
        p = jnp.exp(s)
        p = p * pl.reciprocal(jnp.sum(p, axis=-1, keepdims=True), approx=True)
        o = jnp.einsum('hnm,hmd->hnd', p.astype(bf16), vh,
                       preferred_element_type=jnp.float32)        # (H, N, dh)
        attn = jnp.transpose(o, (1, 0, 2)).reshape(N, inner).astype(bf16)
        x1 = jnp.dot(attn, wo, preferred_element_type=jnp.float32) + x

        # --- feed-forward block (PreNorm), no biases (matches the module) ---
        h2 = _layernorm(x1, ln2g, ln2b).astype(w1.dtype)
        f = _gelu(jnp.dot(h2, w1, preferred_element_type=jnp.float32))
        x2 = jnp.dot(f.astype(w2.dtype), w2,
                     preferred_element_type=jnp.float32) + x1

        x_sc[bb] = x2                                             # carry to next layer

        # --- classifier head fused into the last layer step ---
        @pl.when(l == depth - 1)
        def _():
            if pool == "cls":
                pooled = x2[0:1, :]                               # (1, D)
            else:
                pooled = jnp.mean(x2, axis=0, keepdims=True)
            hc = _layernorm(pooled, hg_ref[...], hlb_ref[...]).astype(hw_ref.dtype)
            logit = jnp.dot(hc, hw_ref[...],
                            preferred_element_type=jnp.float32) + hb_ref[...]
            logits_ref[bb] = logit.astype(logits_ref.dtype)


def transformer_stack(patches, conv2_w, conv2_b, embed_w, embed_b,
                      cls_pos0, pos_rest, lp, head_p,
                      heads, dim_head, pool, tile_b):
    Bp, hw, K2 = patches.shape
    C, dim = pos_rest.shape
    N = C + 1
    L = lp["wq"].shape[0]
    ncpad = head_p["w"].shape[1]
    nbt = Bp // tile_b

    def wspec(shape):           # per-layer stacked weight: index by depth l
        nd = len(shape)
        return pl.BlockSpec((1,) + tuple(shape[1:]),
                            lambda bt, l, _n=nd: (l,) + (0,) * (_n - 1))

    def fullspec(shape):        # shared params: constant block (fetched once)
        nd = len(shape)
        return pl.BlockSpec(tuple(shape), lambda bt, l, _n=nd: (0,) * _n)

    logits = pl.pallas_call(
        functools.partial(_stack_kernel, heads=heads, dim_head=dim_head,
                          pool=pool, tile_b=tile_b),
        out_shape=jax.ShapeDtypeStruct((Bp, 1, ncpad), jnp.float32),
        grid=(nbt, L),
        in_specs=[
            pl.BlockSpec((tile_b, hw, K2), lambda bt, l: (bt, 0, 0)),
            fullspec(conv2_w.shape), fullspec(conv2_b.shape),
            fullspec(embed_w.shape), fullspec(embed_b.shape),
            fullspec(cls_pos0.shape), fullspec(pos_rest.shape),
            wspec(lp["ln1_g"].shape), wspec(lp["ln1_b"].shape),
            wspec(lp["wq"].shape), wspec(lp["wk"].shape), wspec(lp["wv"].shape),
            wspec(lp["wo"].shape),
            wspec(lp["ln2_g"].shape), wspec(lp["ln2_b"].shape),
            wspec(lp["w1"].shape), wspec(lp["w2"].shape),
            fullspec(head_p["ln_g"].shape), fullspec(head_p["ln_b"].shape),
            fullspec(head_p["w"].shape), fullspec(head_p["b"].shape),
        ],
        out_specs=pl.BlockSpec((tile_b, 1, ncpad), lambda bt, l: (bt, 0, 0)),
        scratch_shapes=[pltpu.VMEM((tile_b, N, dim), jnp.float32)],
        compiler_params=pltpu.CompilerParams(
            dimension_semantics=("parallel", "arbitrary"),
            vmem_limit_bytes=48 * 1024 * 1024),
    )(patches, conv2_w, conv2_b, embed_w, embed_b, cls_pos0, pos_rest,
      lp["ln1_g"], lp["ln1_b"], lp["wq"], lp["wk"], lp["wv"], lp["wo"],
      lp["ln2_g"], lp["ln2_b"], lp["w1"], lp["w2"],
      head_p["ln_g"], head_p["ln_b"], head_p["w"], head_p["b"])
    return logits[:, 0, :]                                        # (Bp, ncpad)


def _pick_tile_b(B):
    # Balance per-layer weight-DMA amortization (favors large TILE_B) against
    # v7x megacore sharding (needs >= 2 steps on the parallel batch-tile axis).
    if B <= 1:
        return 1
    return max(1, min(8, B // 2))


# ----------------------------- parameter creation ----------------------------

def init_vit_params(key, cfg):
    Cin, C = cfg["in_channels"], cfg["channels"]
    dim, ps = cfg["dim"], cfg["patch_size"]
    heads, dh = cfg["heads"], cfg["dim_head"]
    mlp, L, nc = cfg["mlp_dim"], cfg["depth"], cfg["num_classes"]
    hw = (cfg["image_size"] // ps) ** 2                           # flattened_patch_dim
    inner = heads * dh
    ncpad = max(128, ((nc + 127) // 128) * 128)                   # lane-dense head out
    scale = dh ** -0.5

    keys = iter(jax.random.split(key, 32))

    def nrm(shape, s=0.02):
        return jax.random.normal(next(keys), shape, dtype=jnp.float32) * s

    head_w = jnp.zeros((dim, ncpad), jnp.float32).at[:, :nc].set(nrm((dim, nc)))
    head_b = jnp.zeros((1, ncpad), jnp.float32).at[:, :nc].set(nrm((1, nc)))

    return dict(
        conv1_w=nrm((9 * Cin, C)).astype(BF16),
        conv1_b=nrm((1, C)),
        conv2_w=nrm((ps * ps * C, C)).astype(BF16),
        conv2_b=nrm((1, C)),
        embed_w=nrm((hw, dim)).astype(BF16),
        embed_b=nrm((1, dim)),
        pos_embedding=nrm((C + 1, dim), 1.0),
        cls_token=nrm((1, dim), 1.0),
        head=dict(ln_g=jnp.ones((1, dim), jnp.float32),
                  ln_b=jnp.zeros((1, dim), jnp.float32),
                  w=head_w.astype(BF16), b=head_b),
        layers=dict(                                              # stacked over depth
            ln1_g=jnp.ones((L, 1, dim), jnp.float32),
            ln1_b=jnp.zeros((L, 1, dim), jnp.float32),
            # NOTE: attention scale 1/sqrt(dim_head) pre-folded into Wq
            # (imported torch weights would need the same pre-scaling).
            wq=(nrm((L, dim, inner)) * scale).astype(BF16),
            wk=nrm((L, dim, inner)).astype(BF16),
            wv=nrm((L, dim, inner)).astype(BF16),
            wo=nrm((L, inner, dim)).astype(BF16),
            ln2_g=jnp.ones((L, 1, dim), jnp.float32),
            ln2_b=jnp.zeros((L, 1, dim), jnp.float32),
            w1=nrm((L, dim, mlp)).astype(BF16),
            w2=nrm((L, mlp, dim)).astype(BF16),
        ),
    )


# --------------------------------- forward -----------------------------------

def vit_forward(img_nchw, params, cfg, tile_b=None):
    B = img_nchw.shape[0]
    H = W = cfg["image_size"]
    ps = cfg["patch_size"]
    Cin, C, dim = cfg["in_channels"], cfg["channels"], cfg["dim"]
    Hp, Wp = H // ps, W // ps
    hw = Hp * Wp
    # the reference module hard-wires num_patches == channels
    assert params["pos_embedding"].shape[0] == C + 1
    assert params["embed_w"].shape[0] == hw

    # ---- conv1: 3x3 pad=1 as bf16 im2col + lane-packed fused matmul/bias/GELU
    x = jnp.transpose(img_nchw, (0, 2, 3, 1)).astype(BF16)        # NHWC bf16
    xp = jnp.pad(x, ((0, 0), (1, 1), (1, 1), (0, 0)))
    cols = [xp[:, ky:ky + H, kx:kx + W, :] for ky in range(3) for kx in range(3)]
    im2col = jnp.concatenate(cols, axis=-1).reshape(B * H * W, 9 * Cin)
    pack = _lane_pack(C)                                          # e.g. 4 for C=32
    M = B * H * W
    assert M % pack == 0
    w_blk, b_blk = _conv1_block_diag(params["conv1_w"], params["conv1_b"], pack)
    y = pallas_linear(im2col.reshape(M // pack, pack * 9 * Cin),  # free reshape
                      w_blk, b_blk, gelu=True, tile_m=1024)       # (M/pack, pack*C)
    y = y.reshape(B, H, W, C)                                     # free reshape

    # ---- patchify glue for conv2 (host-side layout only, stays bf16)
    patches = (y.reshape(B, Hp, ps, Wp, ps, C)
                .transpose(0, 1, 3, 2, 4, 5)
                .reshape(B, hw, ps * ps * C))

    # ---- batch tiling for the fused stack kernel
    if tile_b is None:
        tile_b = _pick_tile_b(B)
    nbt = -(-B // tile_b)
    Bp = nbt * tile_b
    if Bp != B:
        patches = jnp.pad(patches, ((0, Bp - B), (0, 0), (0, 0)))

    cls_pos0 = params["cls_token"] + params["pos_embedding"][0:1]  # (1, dim)
    pos_rest = params["pos_embedding"][1:]                         # (C, dim)

    logits = transformer_stack(patches, params["conv2_w"], params["conv2_b"],
                               params["embed_w"], params["embed_b"],
                               cls_pos0, pos_rest,
                               params["layers"], params["head"],
                               cfg["heads"], cfg["dim_head"], cfg["pool"],
                               tile_b)
    return logits[:B, :cfg["num_classes"]]


# ----------------------------------- main -------------------------------------

if __name__ == "__main__":
    cfg = dict(
        image_size=16,
        patch_size=4,
        num_classes=10,
        dim=32,
        depth=2,
        heads=4,
        mlp_dim=64,
        in_channels=3,
        channels=32,      # num_patches == channels -> sequence length 33 with cls
        dim_head=8,
        pool="cls",
    )

    key = jax.random.PRNGKey(0)
    pkey, xkey = jax.random.split(key)
    params = init_vit_params(pkey, cfg)

    # PyTorch-style NCHW input
    img = jax.random.normal(
        xkey, (2, cfg["in_channels"], cfg["image_size"], cfg["image_size"]),
        dtype=jnp.float32)

    fwd = jax.jit(functools.partial(vit_forward, cfg=cfg))
    out = jax.block_until_ready(fwd(img, params))
    assert out.shape == (2, cfg["num_classes"]), out.shape
    assert bool(jnp.all(jnp.isfinite(out)))
    print("KERNEL_OK")
</pallas_src>

<mosaic_0001>
module attributes {stable_mosaic.version = 11 : i64} {
  func.func @_linear_kernel(%arg0: i32, %arg1: memref<128x108xbf16, #tpu.memory_space<vmem>>, %arg2: memref<108x128xbf16, #tpu.memory_space<vmem>>, %arg3: memref<1x128xf32, #tpu.memory_space<vmem>>, %arg4: memref<128x128xbf16, #tpu.memory_space<vmem>>) attributes {dimension_semantics = [#tpu.dimension_semantics<parallel>], iteration_bounds = array<i64: 1>, scalar_prefetch = 0 : i64, scratch_operands = 0 : i64, tpu.core_type = #tpu.core_type<tc>, window_params = [{transform_indices = @transform_0, window_bounds = array<i64: 128, 108>}, {pipeline_mode = #tpu.pipeline_mode<synchronous>, transform_indices = @transform_1, window_bounds = array<i64: 108, 128>}, {pipeline_mode = #tpu.pipeline_mode<synchronous>, transform_indices = @transform_2, window_bounds = array<i64: 1, 128>}, {transform_indices = @transform_3, window_bounds = array<i64: 128, 128>}]} {
    %c0 = arith.constant 0 : index
    %c0_0 = arith.constant 0 : index
    %0 = vector.load %arg1[%c0, %c0_0] : memref<128x108xbf16, #tpu.memory_space<vmem>>, vector<128x108xbf16>
    %c0_1 = arith.constant 0 : index
    %c0_2 = arith.constant 0 : index
    %1 = vector.load %arg2[%c0_1, %c0_2] : memref<108x128xbf16, #tpu.memory_space<vmem>>, vector<108x128xbf16>
    %cst = arith.constant dense<0.000000e+00> : vector<128x128xf32>
    %2 = tpu.matmul %0, %1, %cst {dimension_numbers = #tpu.dot_dimension_numbers<[1], [0], [0], [1], [0, 0, 1, 1], [], []>} : vector<128x108xbf16>, vector<108x128xbf16>, vector<128x128xf32> -> vector<128x128xf32>
    %c0_3 = arith.constant 0 : index
    %c0_4 = arith.constant 0 : index
    %3 = vector.load %arg3[%c0_3, %c0_4] : memref<1x128xf32, #tpu.memory_space<vmem>>, vector<1x128xf32>
    %4 = vector.broadcast %3 : vector<1x128xf32> to vector<128x128xf32>
    %5 = arith.addf %2, %4 : vector<128x128xf32>
    %cst_5 = arith.constant 5.000000e-01 : f32
    %6 = vector.broadcast %cst_5 : f32 to vector<128x128xf32>
    %7 = arith.mulf %6, %5 : vector<128x128xf32>
    %cst_6 = arith.constant 0.707106769 : f32
    %8 = vector.broadcast %cst_6 : f32 to vector<128x128xf32>
    %9 = arith.mulf %5, %8 : vector<128x128xf32>
    %10 = math.erf %9 : vector<128x128xf32>
    %cst_7 = arith.constant 1.000000e+00 : f32
    %11 = vector.broadcast %cst_7 : f32 to vector<128x128xf32>
    %12 = arith.addf %11, %10 : vector<128x128xf32>
    %13 = arith.mulf %7, %12 : vector<128x128xf32>
    %14 = arith.truncf %13 : vector<128x128xf32> to vector<128x128xbf16>
    %c0_8 = arith.constant 0 : index
    %c0_9 = arith.constant 0 : index
    %15 = vector.load %arg4[%c0_8, %c0_9] : memref<128x128xbf16, #tpu.memory_space<vmem>>, vector<128x128xbf16>
    tpu.vector_store %arg4[%c0_8, %c0_9], %14 {strides = array<i32>} : memref<128x128xbf16, #tpu.memory_space<vmem>>, vector<128x128xbf16>,
    return
  }
  func.func @transform_0(%arg0: i32) -> (i32, i32) {
    %c0_i32 = arith.constant 0 : i32
    %c0_i32_0 = arith.constant 0 : i32
    return %arg0, %c0_i32 : i32, i32
  }
  func.func @transform_1(%arg0: i32) -> (i32, i32) {
    %c0_i32 = arith.constant 0 : i32
    %c0_i32_0 = arith.constant 0 : i32
    %c0_i32_1 = arith.constant 0 : i32
    return %c0_i32, %c0_i32_0 : i32, i32
  }
  func.func @transform_2(%arg0: i32) -> (i32, i32) {
    %c0_i32 = arith.constant 0 : i32
    %c0_i32_0 = arith.constant 0 : i32
    %c0_i32_1 = arith.constant 0 : i32
    return %c0_i32, %c0_i32_0 : i32, i32
  }
  func.func @transform_3(%arg0: i32) -> (i32, i32) {
    %c0_i32 = arith.constant 0 : i32
    %c0_i32_0 = arith.constant 0 : i32
    return %arg0, %c0_i32 : i32, i32
  }
}

module attributes {stable_mosaic.version = 11 : i64} {
  func.func @_stack_kernel(%arg0: i32, %arg1: i32, %arg2: memref<1x16x512xbf16, #tpu.memory_space<vmem>>, %arg3: memref<512x32xbf16, #tpu.memory_space<vmem>>, %arg4: memref<1x32xf32, #tpu.memory_space<vmem>>, %arg5: memref<16x32xbf16, #tpu.memory_space<vmem>>, %arg6: memref<1x32xf32, #tpu.memory_space<vmem>>, %arg7: memref<1x32xf32, #tpu.memory_space<vmem>>, %arg8: memref<32x32xf32, #tpu.memory_space<vmem>>, %arg9: memref<1x1x32xf32, #tpu.memory_space<vmem>>, %arg10: memref<1x1x32xf32, #tpu.memory_space<vmem>>, %arg11: memref<1x32x32xbf16, #tpu.memory_space<vmem>>, %arg12: memref<1x32x32xbf16, #tpu.memory_space<vmem>>, %arg13: memref<1x32x32xbf16, #tpu.memory_space<vmem>>, %arg14: memref<1x32x32xbf16, #tpu.memory_space<vmem>>, %arg15: memref<1x1x32xf32, #tpu.memory_space<vmem>>, %arg16: memref<1x1x32xf32, #tpu.memory_space<vmem>>, %arg17: memref<1x32x64xbf16, #tpu.memory_space<vmem>>, %arg18: memref<1x64x32xbf16, #tpu.memory_space<vmem>>, %arg19: memref<1x32xf32, #tpu.memory_space<vmem>>, %arg20: memref<1x32xf32, #tpu.memory_space<vmem>>, %arg21: memref<32x128xbf16, #tpu.memory_space<vmem>>, %arg22: memref<1x128xf32, #tpu.memory_space<vmem>>, %arg23: memref<1x1x128xf32, #tpu.memory_space<vmem>>, %arg24: memref<1x33x32xf32, #tpu.memory_space<vmem>>) attributes {dimension_semantics = [#tpu.dimension_semantics<parallel>, #tpu.dimension_semantics<arbitrary>], iteration_bounds = array<i64: 2, 2>, scalar_prefetch = 0 : i64, scratch_operands = 1 : i64, tpu.core_type = #tpu.core_type<tc>, window_params = [{transform_indices = @transform_0, window_bounds = array<i64: 1, 16, 512>}, {pipeline_mode = #tpu.pipeline_mode<synchronous>, transform_indices = @transform_1, window_bounds = array<i64: 512, 32>}, {pipeline_mode = #tpu.pipeline_mode<synchronous>, transform_indices = @transform_2, window_bounds = array<i64: 1, 32>}, {pipeline_mode = #tpu.pipeline_mode<synchronous>, transform_indices = @transform_3, window_bounds = array<i64: 16, 32>}, {pipeline_mode = #tpu.pipeline_mode<synchronous>, transform_indices = @transform_4, window_bounds = array<i64: 1, 32>}, {pipeline_mode = #tpu.pipeline_mode<synchronous>, transform_indices = @transform_5, window_bounds = array<i64: 1, 32>}, {pipeline_mode = #tpu.pipeline_mode<synchronous>, transform_indices = @transform_6, window_bounds = array<i64: 32, 32>}, {transform_indices = @transform_7, window_bounds = array<i64: 1, 1, 32>}, {transform_indices = @transform_8, window_bounds = array<i64: 1, 1, 32>}, {transform_indices = @transform_9, window_bounds = array<i64: 1, 32, 32>}, {transform_indices = @transform_10, window_bounds = array<i64: 1, 32, 32>}, {transform_indices = @transform_11, window_bounds = array<i64: 1, 32, 32>}, {transform_indices = @transform_12, window_bounds = array<i64: 1, 32, 32>}, {transform_indices = @transform_13, window_bounds = array<i64: 1, 1, 32>}, {transform_indices = @transform_14, window_bounds = array<i64: 1, 1, 32>}, {transform_indices = @transform_15, window_bounds = array<i64: 1, 32, 64>}, {transform_indices = @transform_16, window_bounds = array<i64: 1, 64, 32>}, {pipeline_mode = #tpu.pipeline_mode<synchronous>, transform_indices = @transform_17, window_bounds = array<i64: 1, 32>}, {pipeline_mode = #tpu.pipeline_mode<synchronous>, transform_indices = @transform_18, window_bounds = array<i64: 1, 32>}, {pipeline_mode = #tpu.pipeline_mode<synchronous>, transform_indices = @transform_19, window_bounds = array<i64: 32, 128>}, {pipeline_mode = #tpu.pipeline_mode<synchronous>, transform_indices = @transform_20, window_bounds = array<i64: 1, 128>}, {transform_indices = @transform_21, window_bounds = array<i64: 1, 1, 128>}]} {
    %c0_i32 = arith.constant 0 : i32
    %0 = arith.cmpi eq, %arg1, %c0_i32 : i32
    %1 = arith.extui %0 : i1 to i32
    %c0_i32_0 = arith.constant 0 : i32
    %2 = arith.cmpi ne, %1, %c0_i32_0 : i32
    scf.if %2 {
      %c0_59 = arith.constant 0 : index
      %c0_60 = arith.constant 0 : index
      %119 = vector.load %arg3[%c0_59, %c0_60] : memref<512x32xbf16, #tpu.memory_space<vmem>>, vector<512x32xbf16>
      %c0_61 = arith.constant 0 : index
      %c0_62 = arith.constant 0 : index
      %120 = vector.load %arg4[%c0_61, %c0_62] : memref<1x32xf32, #tpu.memory_space<vmem>>, vector<1x32xf32>
      %c0_63 = arith.constant 0 : index
      %c0_64 = arith.constant 0 : index
      %121 = vector.load %arg5[%c0_63, %c0_64] : memref<16x32xbf16, #tpu.memory_space<vmem>>, vector<16x32xbf16>
      %c0_65 = arith.constant 0 : index
      %c0_66 = arith.constant 0 : index
      %122 = vector.load %arg6[%c0_65, %c0_66] : memref<1x32xf32, #tpu.memory_space<vmem>>, vector<1x32xf32>
      %c0_67 = arith.constant 0 : index
      %c0_68 = arith.constant 0 : index
      %123 = vector.load %arg7[%c0_67, %c0_68] : memref<1x32xf32, #tpu.memory_space<vmem>>, vector<1x32xf32>
      %c0_69 = arith.constant 0 : index
      %c0_70 = arith.constant 0 : index
      %124 = vector.load %arg8[%c0_69, %c0_70] : memref<32x32xf32, #tpu.memory_space<vmem>>, vector<32x32xf32>
      %c0_71 = arith.constant 0 : index
      %c0_72 = arith.constant 0 : index
      %c0_73 = arith.constant 0 : index
      %125 = vector.load %arg2[%c0_71, %c0_72, %c0_73] : memref<1x16x512xbf16, #tpu.memory_space<vmem>>, vector<1x16x512xbf16>
      %126 = vector.shape_cast %125 : vector<1x16x512xbf16> to vector<16x512xbf16>
      %cst_74 = arith.constant dense<0.000000e+00> : vector<16x32xf32>
      %127 = tpu.matmul %126, %119, %cst_74 {dimension_numbers = #tpu.dot_dimension_numbers<[1], [0], [0], [1], [0, 0, 1, 1], [], []>} : vector<16x512xbf16>, vector<512x32xbf16>, vector<16x32xf32> -> vector<16x32xf32>
      %128 = vector.broadcast %120 : vector<1x32xf32> to vector<16x32xf32>
      %129 = arith.addf %127, %128 : vector<16x32xf32>
      %cst_75 = arith.constant 5.000000e-01 : f32
      %130 = vector.broadcast %cst_75 : f32 to vector<16x32xf32>
      %131 = arith.mulf %130, %129 : vector<16x32xf32>
      %cst_76 = arith.constant 0.707106769 : f32
      %132 = vector.broadcast %cst_76 : f32 to vector<16x32xf32>
      %133 = arith.mulf %129, %132 : vector<16x32xf32>
      %134 = math.erf %133 : vector<16x32xf32>
      %cst_77 = arith.constant 1.000000e+00 : f32
      %135 = vector.broadcast %cst_77 : f32 to vector<16x32xf32>
      %136 = arith.addf %135, %134 : vector<16x32xf32>
      %137 = arith.mulf %131, %136 : vector<16x32xf32>
      %138 = tpu.transpose %137, [1, 0] : vector<16x32xf32> -> vector<32x16xf32>
      %139 = arith.truncf %138 : vector<32x16xf32> to vector<32x16xbf16>
      %cst_78 = arith.constant dense<0.000000e+00> : vector<32x32xf32>
      %140 = tpu.matmul %139, %121, %cst_78 {dimension_numbers = #tpu.dot_dimension_numbers<[1], [0], [0], [1], [0, 0, 1, 1], [], []>} : vector<32x16xbf16>, vector<16x32xbf16>, vector<32x32xf32> -> vector<32x32xf32>
      %141 = vector.broadcast %122 : vector<1x32xf32> to vector<32x32xf32>
      %142 = arith.addf %140, %141 : vector<32x32xf32>
      %143 = arith.addf %142, %124 : vector<32x32xf32>
      %144 = tpu.concatenate %123, %143 in 0 : vector<1x32xf32>, vector<32x32xf32> -> vector<33x32xf32>
      %c0_79 = arith.constant 0 : index
      %c0_80 = arith.constant 0 : index
      %c0_81 = arith.constant 0 : index
      %145 = vector.load %arg24[%c0_79, %c0_80, %c0_81] : memref<1x33x32xf32, #tpu.memory_space<vmem>>, vector<1x33x32xf32>
      %146 = vector.shape_cast %145 : vector<1x33x32xf32> to vector<33x32xf32>
      %147 = vector.shape_cast %144 : vector<33x32xf32> to vector<1x33x32xf32>
      tpu.vector_store %arg24[%c0_79, %c0_80, %c0_81], %147 {strides = array<i32>} : memref<1x33x32xf32, #tpu.memory_space<vmem>>, vector<1x33x32xf32>,
    } else {
    }
    %c0 = arith.constant 0 : index
    %c0_1 = arith.constant 0 : index
    %c0_2 = arith.constant 0 : index
    %3 = vector.load %arg9[%c0, %c0_1, %c0_2] : memref<1x1x32xf32, #tpu.memory_space<vmem>>, vector<1x1x32xf32>
    %4 = vector.shape_cast %3 : vector<1x1x32xf32> to vector<1x32xf32>
    %c0_3 = arith.constant 0 : index
    %c0_4 = arith.constant 0 : index
    %c0_5 = arith.constant 0 : index
    %5 = vector.load %arg10[%c0_3, %c0_4, %c0_5] : memref<1x1x32xf32, #tpu.memory_space<vmem>>, vector<1x1x32xf32>
    %6 = vector.shape_cast %5 : vector<1x1x32xf32> to vector<1x32xf32>
    %c0_6 = arith.constant 0 : index
    %c0_7 = arith.constant 0 : index
    %c0_8 = arith.constant 0 : index
    %7 = vector.load %arg15[%c0_6, %c0_7, %c0_8] : memref<1x1x32xf32, #tpu.memory_space<vmem>>, vector<1x1x32xf32>
    %8 = vector.shape_cast %7 : vector<1x1x32xf32> to vector<1x32xf32>
    %c0_9 = arith.constant 0 : index
    %c0_10 = arith.constant 0 : index
    %c0_11 = arith.constant 0 : index
    %9 = vector.load %arg16[%c0_9, %c0_10, %c0_11] : memref<1x1x32xf32, #tpu.memory_space<vmem>>, vector<1x1x32xf32>
    %10 = vector.shape_cast %9 : vector<1x1x32xf32> to vector<1x32xf32>
    %c0_12 = arith.constant 0 : index
    %c0_13 = arith.constant 0 : index
    %c0_14 = arith.constant 0 : index
    %11 = vector.load %arg11[%c0_12, %c0_13, %c0_14] : memref<1x32x32xbf16, #tpu.memory_space<vmem>>, vector<1x32x32xbf16>
    %12 = vector.shape_cast %11 : vector<1x32x32xbf16> to vector<32x32xbf16>
    %c0_15 = arith.constant 0 : index
    %c0_16 = arith.constant 0 : index
    %c0_17 = arith.constant 0 : index
    %13 = vector.load %arg12[%c0_15, %c0_16, %c0_17] : memref<1x32x32xbf16, #tpu.memory_space<vmem>>, vector<1x32x32xbf16>
    %14 = vector.shape_cast %13 : vector<1x32x32xbf16> to vector<32x32xbf16>
    %c0_18 = arith.constant 0 : index
    %c0_19 = arith.constant 0 : index
    %c0_20 = arith.constant 0 : index
    %15 = vector.load %arg13[%c0_18, %c0_19, %c0_20] : memref<1x32x32xbf16, #tpu.memory_space<vmem>>, vector<1x32x32xbf16>
    %16 = vector.shape_cast %15 : vector<1x32x32xbf16> to vector<32x32xbf16>
    %c0_21 = arith.constant 0 : index
    %c0_22 = arith.constant 0 : index
    %c0_23 = arith.constant 0 : index
    %17 = vector.load %arg14[%c0_21, %c0_22, %c0_23] : memref<1x32x32xbf16, #tpu.memory_space<vmem>>, vector<1x32x32xbf16>
    %18 = vector.shape_cast %17 : vector<1x32x32xbf16> to vector<32x32xbf16>
    %c0_24 = arith.constant 0 : index
    %c0_25 = arith.constant 0 : index
    %c0_26 = arith.constant 0 : index
    %19 = vector.load %arg17[%c0_24, %c0_25, %c0_26] : memref<1x32x64xbf16, #tpu.memory_space<vmem>>, vector<1x32x64xbf16>
    %20 = vector.shape_cast %19 : vector<1x32x64xbf16> to vector<32x64xbf16>
    %c0_27 = arith.constant 0 : index
    %c0_28 = arith.constant 0 : index
    %c0_29 = arith.constant 0 : index
    %21 = vector.load %arg18[%c0_27, %c0_28, %c0_29] : memref<1x64x32xbf16, #tpu.memory_space<vmem>>, vector<1x64x32xbf16>
    %22 = vector.shape_cast %21 : vector<1x64x32xbf16> to vector<64x32xbf16>
    %c0_30 = arith.constant 0 : index
    %c0_31 = arith.constant 0 : index
    %c0_32 = arith.constant 0 : index
    %23 = vector.load %arg24[%c0_30, %c0_31, %c0_32] : memref<1x33x32xf32, #tpu.memory_space<vmem>>, vector<1x33x32xf32>
    %24 = vector.shape_cast %23 : vector<1x33x32xf32> to vector<33x32xf32>
    %cst = arith.constant dense<0.000000e+00> : vector<33xf32>
    %25 = vector.multi_reduction <add>, %24, %cst [1] : vector<33x32xf32> to vector<33xf32>
    %26 = vector.shape_cast %25 : vector<33xf32> to vector<33x1xf32>
    %cst_33 = arith.constant 3.200000e+01 : f32
    %27 = vector.broadcast %cst_33 : f32 to vector<33x1xf32>
    %28 = arith.divf %26, %27 : vector<33x1xf32>
    %29 = vector.broadcast %28 : vector<33x1xf32> to vector<33x32xf32>
    %30 = arith.subf %24, %29 : vector<33x32xf32>
    %31 = arith.mulf %30, %30 : vector<33x32xf32>
    %cst_34 = arith.constant dense<0.000000e+00> : vector<33xf32>
    %32 = vector.multi_reduction <add>, %31, %cst_34 [1] : vector<33x32xf32> to vector<33xf32>
    %33 = vector.shape_cast %32 : vector<33xf32> to vector<33x1xf32>
    %cst_35 = arith.constant 3.200000e+01 : f32
    %34 = vector.broadcast %cst_35 : f32 to vector<33x1xf32>
    %35 = arith.divf %33, %34 : vector<33x1xf32>
    %36 = vector.broadcast %28 : vector<33x1xf32> to vector<33x32xf32>
    %37 = arith.subf %24, %36 : vector<33x32xf32>
    %cst_36 = arith.constant 9.99999974E-6 : f32
    %38 = vector.broadcast %cst_36 : f32 to vector<33x1xf32>
    %39 = arith.addf %35, %38 : vector<33x1xf32>
    %40 = math.rsqrt %39 : vector<33x1xf32>
    %41 = vector.broadcast %40 : vector<33x1xf32> to vector<33x32xf32>
    %42 = arith.mulf %37, %41 : vector<33x32xf32>
    %43 = vector.broadcast %4 : vector<1x32xf32> to vector<33x32xf32>
    %44 = arith.mulf %42, %43 : vector<33x32xf32>
    %45 = vector.broadcast %6 : vector<1x32xf32> to vector<33x32xf32>
    %46 = arith.addf %44, %45 : vector<33x32xf32>
    %47 = arith.truncf %46 : vector<33x32xf32> to vector<33x32xbf16>
    %cst_37 = arith.constant dense<0.000000e+00> : vector<33x32xf32>
    %48 = tpu.matmul %47, %12, %cst_37 {dimension_numbers = #tpu.dot_dimension_numbers<[1], [0], [0], [1], [0, 0, 1, 1], [], []>} : vector<33x32xbf16>, vector<32x32xbf16>, vector<33x32xf32> -> vector<33x32xf32>
    %cst_38 = arith.constant dense<0.000000e+00> : vector<33x32xf32>
    %49 = tpu.matmul %47, %14, %cst_38 {dimension_numbers = #tpu.dot_dimension_numbers<[1], [0], [0], [1], [0, 0, 1, 1], [], []>} : vector<33x32xbf16>, vector<32x32xbf16>, vector<33x32xf32> -> vector<33x32xf32>
    %cst_39 = arith.constant dense<0.000000e+00> : vector<33x32xf32>
    %50 = tpu.matmul %47, %16, %cst_39 {dimension_numbers = #tpu.dot_dimension_numbers<[1], [0], [0], [1], [0, 0, 1, 1], [], []>} : vector<33x32xbf16>, vector<32x32xbf16>, vector<33x32xf32> -> vector<33x32xf32>
    %51 = vector.shape_cast %48 : vector<33x32xf32> to vector<33x4x8xf32>
    %52 = tpu.transpose %51, [1, 0, 2] : vector<33x4x8xf32> -> vector<4x33x8xf32>
    %53 = arith.truncf %52 : vector<4x33x8xf32> to vector<4x33x8xbf16>
    %54 = vector.shape_cast %49 : vector<33x32xf32> to vector<33x4x8xf32>
    %55 = tpu.transpose %54, [1, 0, 2] : vector<33x4x8xf32> -> vector<4x33x8xf32>
    %56 = arith.truncf %55 : vector<4x33x8xf32> to vector<4x33x8xbf16>
    %57 = vector.shape_cast %50 : vector<33x32xf32> to vector<33x4x8xf32>
    %58 = tpu.transpose %57, [1, 0, 2] : vector<33x4x8xf32> -> vector<4x33x8xf32>
    %59 = arith.truncf %58 : vector<4x33x8xf32> to vector<4x33x8xbf16>
    "tpu.trace_start"() <{level = 10 : i32, message = "hnd,hmd->hnm"}> : () -> ()
    %cst_40 = arith.constant dense<0.000000e+00> : vector<4x33x33xf32>
    %60 = tpu.matmul %53, %56, %cst_40 {dimension_numbers = #tpu.dot_dimension_numbers<[2], [2], [1], [1], [0, 0, 0, 1, 1, 1], [0], [0]>} : vector<4x33x8xbf16>, vector<4x33x8xbf16>, vector<4x33x33xf32> -> vector<4x33x33xf32>
    "tpu.trace_stop"() : () -> ()
    %cst_41 = arith.constant dense<0xFF800000> : vector<4x33xf32>
    %61 = vector.multi_reduction <maximumf>, %60, %cst_41 [2] : vector<4x33x33xf32> to vector<4x33xf32>
    %62 = vector.shape_cast %61 : vector<4x33xf32> to vector<4x33x1xf32>
    %63 = vector.broadcast %62 : vector<4x33x1xf32> to vector<4x33x33xf32>
    %64 = arith.subf %60, %63 : vector<4x33x33xf32>
    %65 = math.exp %64 : vector<4x33x33xf32>
    %cst_42 = arith.constant dense<0.000000e+00> : vector<4x33xf32>
    %66 = vector.multi_reduction <add>, %65, %cst_42 [2] : vector<4x33x33xf32> to vector<4x33xf32>
    %67 = vector.shape_cast %66 : vector<4x33xf32> to vector<4x33x1xf32>
    %68 = tpu.reciprocal %67 {approx = true} : vector<4x33x1xf32> -> vector<4x33x1xf32>
    %69 = vector.broadcast %68 : vector<4x33x1xf32> to vector<4x33x33xf32>
    %70 = arith.mulf %65, %69 : vector<4x33x33xf32>
    %71 = arith.truncf %70 : vector<4x33x33xf32> to vector<4x33x33xbf16>
    "tpu.trace_start"() <{level = 10 : i32, message = "hnm,hmd->hnd"}> : () -> ()
    %cst_43 = arith.constant dense<0.000000e+00> : vector<4x33x8xf32>
    %72 = tpu.matmul %71, %59, %cst_43 {dimension_numbers = #tpu.dot_dimension_numbers<[2], [1], [1], [2], [0, 0, 0, 1, 1, 2], [0], [0]>} : vector<4x33x33xbf16>, vector<4x33x8xbf16>, vector<4x33x8xf32> -> vector<4x33x8xf32>
    "tpu.trace_stop"() : () -> ()
    %73 = tpu.transpose %72, [1, 0, 2] : vector<4x33x8xf32> -> vector<33x4x8xf32>
    %74 = vector.shape_cast %73 : vector<33x4x8xf32> to vector<33x32xf32>
    %75 = arith.truncf %74 : vector<33x32xf32> to vector<33x32xbf16>
    %cst_44 = arith.constant dense<0.000000e+00> : vector<33x32xf32>
    %76 = tpu.matmul %75, %18, %cst_44 {dimension_numbers = #tpu.dot_dimension_numbers<[1], [0], [0], [1], [0, 0, 1, 1], [], []>} : vector<33x32xbf16>, vector<32x32xbf16>, vector<33x32xf32> -> vector<33x32xf32>
    %77 = arith.addf %76, %24 : vector<33x32xf32>
    %cst_45 = arith.constant dense<0.000000e+00> : vector<33xf32>
    %78 = vector.multi_reduction <add>, %77, %cst_45 [1] : vector<33x32xf32> to vector<33xf32>
    %79 = vector.shape_cast %78 : vector<33xf32> to vector<33x1xf32>
    %cst_46 = arith.constant 3.200000e+01 : f32
    %80 = vector.broadcast %cst_46 : f32 to vector<33x1xf32>
    %81 = arith.divf %79, %80 : vector<33x1xf32>
    %82 = vector.broadcast %81 : vector<33x1xf32> to vector<33x32xf32>
    %83 = arith.subf %77, %82 : vector<33x32xf32>
    %84 = arith.mulf %83, %83 : vector<33x32xf32>
    %cst_47 = arith.constant dense<0.000000e+00> : vector<33xf32>
    %85 = vector.multi_reduction <add>, %84, %cst_47 [1] : vector<33x32xf32> to vector<33xf32>
    %86 = vector.shape_cast %85 : vector<33xf32> to vector<33x1xf32>
    %cst_48 = arith.constant 3.200000e+01 : f32
    %87 = vector.broadcast %cst_48 : f32 to vector<33x1xf32>
    %88 = arith.divf %86, %87 : vector<33x1xf32>
    %89 = vector.broadcast %81 : vector<33x1xf32> to vector<33x32xf32>
    %90 = arith.subf %77, %89 : vector<33x32xf32>
    %cst_49 = arith.constant 9.99999974E-6 : f32
    %91 = vector.broadcast %cst_49 : f32 to vector<33x1xf32>
    %92 = arith.addf %88, %91 : vector<33x1xf32>
    %93 = math.rsqrt %92 : vector<33x1xf32>
    %94 = vector.broadcast %93 : vector<33x1xf32> to vector<33x32xf32>
    %95 = arith.mulf %90, %94 : vector<33x32xf32>
    %96 = vector.broadcast %8 : vector<1x32xf32> to vector<33x32xf32>
    %97 = arith.mulf %95, %96 : vector<33x32xf32>
    %98 = vector.broadcast %10 : vector<1x32xf32> to vector<33x32xf32>
    %99 = arith.addf %97, %98 : vector<33x32xf32>
    %100 = arith.truncf %99 : vector<33x32xf32> to vector<33x32xbf16>
    %cst_50 = arith.constant dense<0.000000e+00> : vector<33x64xf32>
    %101 = tpu.matmul %100, %20, %cst_50 {dimension_numbers = #tpu.dot_dimension_numbers<[1], [0], [0], [1], [0, 0, 1, 1], [], []>} : vector<33x32xbf16>, vector<32x64xbf16>, vector<33x64xf32> -> vector<33x64xf32>
    %cst_51 = arith.constant 5.000000e-01 : f32
    %102 = vector.broadcast %cst_51 : f32 to vector<33x64xf32>
    %103 = arith.mulf %102, %101 : vector<33x64xf32>
    %cst_52 = arith.constant 0.707106769 : f32
    %104 = vector.broadcast %cst_52 : f32 to vector<33x64xf32>
    %105 = arith.mulf %101, %104 : vector<33x64xf32>
    %106 = math.erf %105 : vector<33x64xf32>
    %cst_53 = arith.constant 1.000000e+00 : f32
    %107 = vector.broadcast %cst_53 : f32 to vector<33x64xf32>
    %108 = arith.addf %107, %106 : vector<33x64xf32>
    %109 = arith.mulf %103, %108 : vector<33x64xf32>
    %110 = arith.truncf %109 : vector<33x64xf32> to vector<33x64xbf16>
    %cst_54 = arith.constant dense<0.000000e+00> : vector<33x32xf32>
    %111 = tpu.matmul %110, %22, %cst_54 {dimension_numbers = #tpu.dot_dimension_numbers<[1], [0], [0], [1], [0, 0, 1, 1], [], []>} : vector<33x64xbf16>, vector<64x32xbf16>, vector<33x32xf32> -> vector<33x32xf32>
    %112 = arith.addf %111, %77 : vector<33x32xf32>
    %c0_55 = arith.constant 0 : index
    %c0_56 = arith.constant 0 : index
    %c0_57 = arith.constant 0 : index
    %113 = vector.load %arg24[%c0_55, %c0_56, %c0_57] : memref<1x33x32xf32, #tpu.memory_space<vmem>>, vector<1x33x32xf32>
    %114 = vector.shape_cast %113 : vector<1x33x32xf32> to vector<33x32xf32>
    %115 = vector.shape_cast %112 : vector<33x32xf32> to vector<1x33x32xf32>
    tpu.vector_store %arg24[%c0_55, %c0_56, %c0_57], %115 {strides = array<i32>} : memref<1x33x32xf32, #tpu.memory_space<vmem>>, vector<1x33x32xf32>,
    %c1_i32 = arith.constant 1 : i32
    %116 = arith.cmpi eq, %arg1, %c1_i32 : i32
    %117 = arith.extui %116 : i1 to i32
    %c0_i32_58 = arith.constant 0 : i32
    %118 = arith.cmpi ne, %117, %c0_i32_58 : i32
    scf.if %118 {
      %119 = vector.extract_strided_slice %112 {offsets = [0, 0], sizes = [1, 32], strides = [1, 1]} : vector<33x32xf32> to vector<1x32xf32>
      %c0_59 = arith.constant 0 : index
      %c0_60 = arith.constant 0 : index
      %120 = vector.load %arg19[%c0_59, %c0_60] : memref<1x32xf32, #tpu.memory_space<vmem>>, vector<1x32xf32>
      %c0_61 = arith.constant 0 : index
      %c0_62 = arith.constant 0 : index
      %121 = vector.load %arg20[%c0_61, %c0_62] : memref<1x32xf32, #tpu.memory_space<vmem>>, vector<1x32xf32>
      %cst_63 = arith.constant dense<0.000000e+00> : vector<1xf32>
      %122 = vector.multi_reduction <add>, %119, %cst_63 [1] : vector<1x32xf32> to vector<1xf32>
      %123 = vector.shape_cast %122 : vector<1xf32> to vector<1x1xf32>
      %cst_64 = arith.constant 3.200000e+01 : f32
      %124 = vector.broadcast %cst_64 : f32 to vector<1x1xf32>
      %125 = arith.divf %123, %124 : vector<1x1xf32>
      %126 = vector.broadcast %125 : vector<1x1xf32> to vector<1x32xf32>
      %127 = arith.subf %119, %126 : vector<1x32xf32>
      %128 = arith.mulf %127, %127 : vector<1x32xf32>
      %cst_65 = arith.constant dense<0.000000e+00> : vector<1xf32>
      %129 = vector.multi_reduction <add>, %128, %cst_65 [1] : vector<1x32xf32> to vector<1xf32>
      %130 = vector.shape_cast %129 : vector<1xf32> to vector<1x1xf32>
      %cst_66 = arith.constant 3.200000e+01 : f32
      %131 = vector.broadcast %cst_66 : f32 to vector<1x1xf32>
      %132 = arith.divf %130, %131 : vector<1x1xf32>
      %133 = vector.broadcast %125 : vector<1x1xf32> to vector<1x32xf32>
      %134 = arith.subf %119, %133 : vector<1x32xf32>
      %cst_67 = arith.constant 9.99999974E-6 : f32
      %135 = vector.broadcast %cst_67 : f32 to vector<1x1xf32>
      %136 = arith.addf %132, %135 : vector<1x1xf32>
      %137 = math.rsqrt %136 : vector<1x1xf32>
      %138 = vector.broadcast %137 : vector<1x1xf32> to vector<1x32xf32>
      %139 = arith.mulf %134, %138 : vector<1x32xf32>
      %140 = arith.mulf %139, %120 : vector<1x32xf32>
      %141 = arith.addf %140, %121 : vector<1x32xf32>
      %142 = arith.truncf %141 : vector<1x32xf32> to vector<1x32xbf16>
      %c0_68 = arith.constant 0 : index
      %c0_69 = arith.constant 0 : index
      %143 = vector.load %arg21[%c0_68, %c0_69] : memref<32x128xbf16, #tpu.memory_space<vmem>>, vector<32x128xbf16>
      %cst_70 = arith.constant dense<0.000000e+00> : vector<1x128xf32>
      %144 = tpu.matmul %142, %143, %cst_70 {dimension_numbers = #tpu.dot_dimension_numbers<[1], [0], [0], [1], [0, 0, 1, 1], [], []>} : vector<1x32xbf16>, vector<32x128xbf16>, vector<1x128xf32> -> vector<1x128xf32>
      %c0_71 = arith.constant 0 : index
      %c0_72 = arith.constant 0 : index
      %145 = vector.load %arg22[%c0_71, %c0_72] : memref<1x128xf32, #tpu.memory_space<vmem>>, vector<1x128xf32>
      %146 = arith.addf %144, %145 : vector<1x128xf32>
      %c0_73 = arith.constant 0 : index
      %c0_74 = arith.constant 0 : index
      %c0_75 = arith.constant 0 : index
      %147 = vector.load %arg23[%c0_73, %c0_74, %c0_75] : memref<1x1x128xf32, #tpu.memory_space<vmem>>, vector<1x1x128xf32>
      %148 = vector.shape_cast %147 : vector<1x1x128xf32> to vector<1x128xf32>
      %149 = vector.shape_cast %146 : vector<1x128xf32> to vector<1x1x128xf32>
      tpu.vector_store %arg23[%c0_73, %c0_74, %c0_75], %149 {strides = array<i32>} : memref<1x1x128xf32, #tpu.memory_space<vmem>>, vector<1x1x128xf32>,
    } else {
    }
    return
  }
  func.func @transform_0(%arg0: i32, %arg1: i32) -> (i32, i32, i32) {
    %c0_i32 = arith.constant 0 : i32
    %c0_i32_0 = arith.constant 0 : i32
    %c0_i32_1 = arith.constant 0 : i32
    return %arg0, %c0_i32, %c0_i32_0 : i32, i32, i32
  }
  func.func @transform_1(%arg0: i32, %arg1: i32) -> (i32, i32) {
    %c0_i32 = arith.constant 0 : i32
    %c0_i32_0 = arith.constant 0 : i32
    %c0_i32_1 = arith.constant 0 : i32
    return %c0_i32, %c0_i32_0 : i32, i32
  }
  func.func @transform_2(%arg0: i32, %arg1: i32) -> (i32, i32) {
    %c0_i32 = arith.constant 0 : i32
    %c0_i32_0 = arith.constant 0 : i32
    %c0_i32_1 = arith.constant 0 : i32
    return %c0_i32, %c0_i32_0 : i32, i32
  }
  func.func @transform_3(%arg0: i32, %arg1: i32) -> (i32, i32) {
    %c0_i32 = arith.constant 0 : i32
    %c0_i32_0 = arith.constant 0 : i32
    %c0_i32_1 = arith.constant 0 : i32
    return %c0_i32, %c0_i32_0 : i32, i32
  }
  func.func @transform_4(%arg0: i32, %arg1: i32) -> (i32, i32) {
    %c0_i32 = arith.constant 0 : i32
    %c0_i32_0 = arith.constant 0 : i32
    %c0_i32_1 = arith.constant 0 : i32
    return %c0_i32, %c0_i32_0 : i32, i32
  }
  func.func @transform_5(%arg0: i32, %arg1: i32) -> (i32, i32) {
    %c0_i32 = arith.constant 0 : i32
    %c0_i32_0 = arith.constant 0 : i32
    %c0_i32_1 = arith.constant 0 : i32
    return %c0_i32, %c0_i32_0 : i32, i32
  }
  func.func @transform_6(%arg0: i32, %arg1: i32) -> (i32, i32) {
    %c0_i32 = arith.constant 0 : i32
    %c0_i32_0 = arith.constant 0 : i32
    %c0_i32_1 = arith.constant 0 : i32
    return %c0_i32, %c0_i32_0 : i32, i32
  }
  func.func @transform_7(%arg0: i32, %arg1: i32) -> (i32, i32, i32) {
    %c0_i32 = arith.constant 0 : i32
    %c0_i32_0 = arith.constant 0 : i32
    %c0_i32_1 = arith.constant 0 : i32
    return %arg1, %c0_i32, %c0_i32_0 : i32, i32, i32
  }
  func.func @transform_8(%arg0: i32, %arg1: i32) -> (i32, i32, i32) {
    %c0_i32 = arith.constant 0 : i32
    %c0_i32_0 = arith.constant 0 : i32
    %c0_i32_1 = arith.constant 0 : i32
    return %arg1, %c0_i32, %c0_i32_0 : i32, i32, i32
  }
  func.func @transform_9(%arg0: i32, %arg1: i32) -> (i32, i32, i32) {
    %c0_i32 = arith.constant 0 : i32
    %c0_i32_0 = arith.constant 0 : i32
    %c0_i32_1 = arith.constant 0 : i32
    return %arg1, %c0_i32, %c0_i32_0 : i32, i32, i32
  }
  func.func @transform_10(%arg0: i32, %arg1: i32) -> (i32, i32, i32) {
    %c0_i32 = arith.constant 0 : i32
    %c0_i32_0 = arith.constant 0 : i32
    %c0_i32_1 = arith.constant 0 : i32
    return %arg1, %c0_i32, %c0_i32_0 : i32, i32, i32
  }
  func.func @transform_11(%arg0: i32, %arg1: i32) -> (i32, i32, i32) {
    %c0_i32 = arith.constant 0 : i32
    %c0_i32_0 = arith.constant 0 : i32
    %c0_i32_1 = arith.constant 0 : i32
    return %arg1, %c0_i32, %c0_i32_0 : i32, i32, i32
  }
  func.func @transform_12(%arg0: i32, %arg1: i32) -> (i32, i32, i32) {
    %c0_i32 = arith.constant 0 : i32
    %c0_i32_0 = arith.constant 0 : i32
    %c0_i32_1 = arith.constant 0 : i32
    return %arg1, %c0_i32, %c0_i32_0 : i32, i32, i32
  }
  func.func @transform_13(%arg0: i32, %arg1: i32) -> (i32, i32, i32) {
    %c0_i32 = arith.constant 0 : i32
    %c0_i32_0 = arith.constant 0 : i32
    %c0_i32_1 = arith.constant 0 : i32
    return %arg1, %c0_i32, %c0_i32_0 : i32, i32, i32
  }
  func.func @transform_14(%arg0: i32, %arg1: i32) -> (i32, i32, i32) {
    %c0_i32 = arith.constant 0 : i32
    %c0_i32_0 = arith.constant 0 : i32
    %c0_i32_1 = arith.constant 0 : i32
    return %arg1, %c0_i32, %c0_i32_0 : i32, i32, i32
  }
  func.func @transform_15(%arg0: i32, %arg1: i32) -> (i32, i32, i32) {
    %c0_i32 = arith.constant 0 : i32
    %c0_i32_0 = arith.constant 0 : i32
    %c0_i32_1 = arith.constant 0 : i32
    return %arg1, %c0_i32, %c0_i32_0 : i32, i32, i32
  }
  func.func @transform_16(%arg0: i32, %arg1: i32) -> (i32, i32, i32) {
    %c0_i32 = arith.constant 0 : i32
    %c0_i32_0 = arith.constant 0 : i32
    %c0_i32_1 = arith.constant 0 : i32
    return %arg1, %c0_i32, %c0_i32_0 : i32, i32, i32
  }
  func.func @transform_17(%arg0: i32, %arg1: i32) -> (i32, i32) {
    %c0_i32 = arith.constant 0 : i32
    %c0_i32_0 = arith.constant 0 : i32
    %c0_i32_1 = arith.constant 0 : i32
    return %c0_i32, %c0_i32_0 : i32, i32
  }
  func.func @transform_18(%arg0: i32, %arg1: i32) -> (i32, i32) {
    %c0_i32 = arith.constant 0 : i32
    %c0_i32_0 = arith.constant 0 : i32
    %c0_i32_1 = arith.constant 0 : i32
    return %c0_i32, %c0_i32_0 : i32, i32
  }
  func.func @transform_19(%arg0: i32, %arg1: i32) -> (i32, i32) {
    %c0_i32 = arith.constant 0 : i32
    %c0_i32_0 = arith.constant 0 : i32
    %c0_i32_1 = arith.constant 0 : i32
    return %c0_i32, %c0_i32_0 : i32, i32
  }
  func.func @transform_20(%arg0: i32, %arg1: i32) -> (i32, i32) {
    %c0_i32 = arith.constant 0 : i32
    %c0_i32_0 = arith.constant 0 : i32
    %c0_i32_1 = arith.constant 0 : i32
    return %c0_i32, %c0_i32_0 : i32, i32
  }
  func.func @transform_21(%arg0: i32, %arg1: i32) -> (i32, i32, i32) {
    %c0_i32 = arith.constant 0 : i32
    %c0_i32_0 = arith.constant 0 : i32
    %c0_i32_1 = arith.constant 0 : i32
    return %arg0, %c0_i32, %c0_i32_0 : i32, i32, i32
  }
}

</mosaic_0001>

<bundles_post_ra>
// kernel: vit_forward.2
= control target key start
LH: loop header
LB: loop body
LE: loop exit
PB: predicated region body
PF: predicated region fallthrough
CT: control target
= control target key end

     0   :  { %vm158_vm0 = vcmask 1045504   ;;  %vm133_vm1 = vcmask 883712   ;;  %s798_s1 = inlined_call_operand.vmem [shape: bf16[108,128], index: 1, kind: input, shape index: {}]   ;;  %s799_s0 = inlined_call_operand.vmem [shape: bf16[128,108], index: 0, kind: input, shape index: {}]   ;;  %s800_s2 = inlined_call_operand.vmem [shape: f32[1,128], index: 2, kind: input, shape index: {}]   ;;  %s801_s3 = inlined_call_operand.vmem [shape: bf16[128,128], index: 3, kind: output, shape index: {}]  }
   0x1   :  { %v587_v0 = vld [vmem:[%s798_s1 + $0x30] sm:$0x3f]   ;;  %v588_v1 = vld [vmem:[%s798_s1 + $0x28] sm:$0xff]   ;;  %v589_v3 = vld [vmem:[%s798_s1 + $0x20] sm:$0xff]  }
   0x2   :  { %585 = vmatprep.subr.msk.bf16.mxu0 %vm158_vm0, %v587_v0  ;;  %586 = vmatprep.subr.msk.bf16.mxu1 %vm158_vm0, %v587_v0  ;;  %v160_v2 = vsel %vm158_vm0, %v587_v0, 0  ;;  %v590_v4 = vld [vmem:[%s798_s1 + $0x18] sm:$0xff]   ;;  %v594_v5 = vld [vmem:[%s799_s0] sm:$0xff]   ;;  %v591_v7 = vld [vmem:[%s798_s1 + $0x10] sm:$0xff]  }
   0x3   :  { %542 = vmatpush3.bf16.msra.mxu0 %v160_v2  ;;  %578 = vmatpush3.bf16.msra.mxu1 %v160_v2  ;;  %v595_v6 = vld [vmem:[%s799_s0 + $0x20] sm:$0xff]   ;;  %v592_v8 = vld [vmem:[%s798_s1 + $0x8] sm:$0xff]   ;;  %v598_v12 = vld [vmem:[%s799_s0 + $0x10] sm:$0xff]  }
   0x4   :  { %543 = vmatprep.subr.bf16.mxu0 %v588_v1  ;;  %572 = vmatprep.subr.bf16.mxu1 %v588_v1  ;;  %v593_v9 = vld [vmem:[%s798_s1] sm:$0xff]   ;;  %v596_v10 = vld [vmem:[%s799_s0 + $0x8] sm:$0xff]   ;;  %v599_v13 = vld [vmem:[%s799_s0 + $0x30] sm:$0xff]  }
   0x5   :  { %555 = vmatprep.mubr.msk.bf16.mxu0 %vm133_vm1, %v594_v5  ;;  %563 = vmatprep.mubr.msk.bf16.mxu1 %vm133_vm1, %v595_v6  ;;  %v597_v11 = vld [vmem:[%s799_s0 + $0x28] sm:$0xff]   ;;  %v600_v14 = vld [vmem:[%s799_s0 + $0x18] sm:$0xff]   ;;  %v423_v16 = vld [vmem:[%s800_s2] ss:$0 sm:$0xff] }
   0x6   :  { %v601_v15 = vld [vmem:[%s799_s0 + $0x38] sm:$0xff]  }
   0x7   :  { %544 = vmatpush3.bf16.msra.mxu0 %v588_v1  ;;  %579 = vmatpush3.bf16.msra.mxu1 %v588_v1 }
   0x8   :  { %545 = vmatprep.subr.bf16.mxu0 %v589_v3  ;;  %573 = vmatprep.subr.bf16.mxu1 %v589_v3 }
   0xb   :  { %546 = vmatpush3.bf16.msra.mxu0 %v589_v3  ;;  %580 = vmatpush3.bf16.msra.mxu1 %v589_v3 }
   0xc   :  { %547 = vmatprep.subr.bf16.mxu0 %v590_v4  ;;  %574 = vmatprep.subr.bf16.mxu1 %v590_v4 }
   0xf   :  { %548 = vmatpush3.bf16.msra.mxu0 %v590_v4  ;;  %581 = vmatpush3.bf16.msra.mxu1 %v590_v4 }
  0x10   :  { %549 = vmatprep.subr.bf16.mxu0 %v591_v7  ;;  %575 = vmatprep.subr.bf16.mxu1 %v591_v7 }
  0x13   :  { %550 = vmatpush3.bf16.msra.mxu0 %v591_v7  ;;  %582 = vmatpush3.bf16.msra.mxu1 %v591_v7 }
  0x14   :  { %551 = vmatprep.subr.bf16.mxu0 %v592_v8  ;;  %576 = vmatprep.subr.bf16.mxu1 %v592_v8 }
  0x17   :  { %552 = vmatpush3.bf16.msra.mxu0 %v592_v8  ;;  %583 = vmatpush3.bf16.msra.mxu1 %v592_v8 }
  0x18   :  { %553 = vmatprep.subr.bf16.mxu0 %v593_v9  ;;  %577 = vmatprep.subr.bf16.mxu1 %v593_v9 }
  0x1b   :  { %554 = vmatpush3.bf16.msra.mxu0 %v593_v9  ;;  %584 = vmatpush3.bf16.msra.mxu1 %v593_v9 }
  0x1e   :  { %556 = vmatmul.mubr.msk.bf16.vlgmr.msra.gmra.mxu0 %vm133_vm1, %v596_v10  ;;  %564 = vmatmul.mubr.msk.bf16.vlgmr.msra.gmra.mxu1 %vm133_vm1, %v597_v11 }
  0x1f   :  { %559 = vmatprep.mubr.msk.bf16.mxu0 %vm133_vm1, %v598_v12  ;;  %567 = vmatprep.mubr.msk.bf16.mxu1 %vm133_vm1, %v599_v13 }
  0x26   :  { %560 = vmatmul.mubr.msk.bf16.gmra.mxu0 %vm133_vm1, %v600_v14  ;;  %568 = vmatmul.mubr.msk.bf16.gmra.mxu1 %vm133_vm1, %v601_v15 }
  0xde   :  { %v557_v17 = vpop.f32.mrf.mxu0  ;;  %v565_v18 = vpop.f32.mrf.mxu1 }
  0xdf   :  { %v710_v19 = vadd.f32 %v557_v17, %v423_v16  ;;  %v712_v20 = vadd.f32 %v565_v18, %v423_v16 }
  0xe0   :  { %v196_v21 = vpop.f32.mrf.mxu0  ;;  %v228_v22 = vpop.f32.mrf.mxu1 }
  0xe1   :  { %v277_v23 = vmul.f32 0.70710677, %v710_v19  ;;  %v285_v24 = vmul.f32 0.70710677, %v712_v20  ;;  %v716_v25 = vadd.f32 %v423_v16, %v196_v21  ;;  %v718_v26 = vadd.f32 %v423_v16, %v228_v22 }
  0xe2   :  { %v558_v27 = vpop.f32.mrf.mxu0  ;;  %v566_v28 = vpop.f32.mrf.mxu1  ;;  %v261_v7 = vmul.f32 0.5, %v710_v19  ;;  %v269_v8 = vmul.f32 0.5, %v712_v20 }
  0xe3   :  { %v720_v29 = vadd.f32 %v558_v27, %v423_v16  ;;  %v722_v30 = vadd.f32 %v566_v28, %v423_v16  ;;  %602 = verf.f32 %v277_v23  ;;  %v275_v31 = vmul.f32 0.70710677, %v716_v25 }
  0xe4   :  { %v199_v32 = vpop.f32.mrf.mxu0  ;;  %v231_v33 = vpop.f32.mrf.mxu1  ;;  %604 = verf.f32 %v285_v24  ;;  %v283_v34 = vmul.f32 0.70710677, %v718_v26  ;;  %v259_v11 = vmul.f32 0.5, %v716_v25 }
  0xe5   :  { %v278_v35 = vmul.f32 0.70710677, %v720_v29  ;;  %606 = verf.f32 %v275_v31  ;;  %v286_v36 = vmul.f32 0.70710677, %v722_v30  ;;  %v728_v37 = vadd.f32 %v423_v16, %v199_v32 }
  0xe6   :  { %v730_v38 = vadd.f32 %v423_v16, %v231_v33  ;;  %v561_v39 = vpop.f32.mrf.mxu0  ;;  %v569_v40 = vpop.f32.mrf.mxu1  ;;  %608 = verf.f32 %v283_v34  ;;  %v262_v13 = vmul.f32 0.5, %v720_v29  ;;  %v270_v18 = vmul.f32 0.5, %v722_v30 }
  0xe7   :  { %v732_v41 = vadd.f32 %v561_v39, %v423_v16  ;;  %v734_v42 = vadd.f32 %v569_v40, %v423_v16  ;;  %610 = verf.f32 %v278_v35  ;;  %v276_v43 = vmul.f32 0.70710677, %v728_v37 }
  0xe8   :  { %v212_v44 = vpop.f32.mrf.mxu0  ;;  %v244_v45 = vpop.f32.mrf.mxu1  ;;  %612 = verf.f32 %v286_v36  ;;  %v284_v46 = vmul.f32 0.70710677, %v730_v38  ;;  %v260_v20 = vmul.f32 0.5, %v728_v37  ;;  %v268_v31 = vmul.f32 0.5, %v730_v38 }
  0xe9   :  { %v281_v47 = vmul.f32 0.70710677, %v732_v41  ;;  %614 = verf.f32 %v276_v43  ;;  %v289_v48 = vmul.f32 0.70710677, %v734_v42  ;;  %v740_v49 = vadd.f32 %v423_v16, %v212_v44 }
  0xea   :  { %v562_v50 = vpop.f32.mrf.mxu0  ;;  %v570_v51 = vpop.f32.mrf.mxu1  ;;  %616 = verf.f32 %v284_v46  ;;  %v742_v52 = vadd.f32 %v423_v16, %v244_v45 }
  0xeb   :  { %v744_v53 = vadd.f32 %v562_v50, %v423_v16  ;;  %v746_v54 = vadd.f32 %v570_v51, %v423_v16  ;;  %618 = verf.f32 %v281_v47  ;;  %v279_v55 = vmul.f32 0.70710677, %v740_v49 }
  0xec   :  { %v215_v56 = vpop.f32.mrf.mxu0  ;;  %v247_v57 = vpop.f32.mrf.mxu1  ;;  %620 = verf.f32 %v289_v48  ;;  %v287_v58 = vmul.f32 0.70710677, %v742_v52  ;;  %v265_v47 = vmul.f32 0.5, %v732_v41  ;;  %v273_v51 = vmul.f32 0.5, %v734_v42 }
  0xed   :  { %622 = verf.f32 %v279_v55  ;;  %v282_v59 = vmul.f32 0.70710677, %v744_v53  ;;  %v290_v60 = vmul.f32 0.70710677, %v746_v54  ;;  %v752_v61 = vadd.f32 %v423_v16, %v215_v56 }
  0xee   :  { %624 = verf.f32 %v287_v58  ;;  %v754_v62 = vadd.f32 %v423_v16, %v247_v57  ;;  %v267_v16 = vmul.f32 0.5, %v718_v26  ;;  %v266_v48 = vmul.f32 0.5, %v744_v53 }
  0xef   :  { %626 = verf.f32 %v282_v59  ;;  %v280_v0 = vmul.f32 0.70710677, %v752_v61  ;;  %v274_v56 = vmul.f32 0.5, %v746_v54 }
  0xf0   :  { %v603_v63 = vpop.eup %602  ;;  %628 = verf.f32 %v290_v60  ;;  %v288_v2 = vmul.f32 0.70710677, %v754_v62  ;;  %v263_v60 = vmul.f32 0.5, %v740_v49  ;;  %v272_v42 = vmul.f32 0.5, %v754_v62 }
  0xf1   :  { %v605_v1 = vpop.eup %604  ;;  %630 = verf.f32 %v280_v0  ;;  %v309_v5 = vadd.f32 1.0, %v603_v63 }
  0xf2   :  { %v607_v3 = vpop.eup %606  ;;  %632 = verf.f32 %v288_v2  ;;  %v317_v9 = vadd.f32 1.0, %v605_v1  ;;  %v264_v2 = vmul.f32 0.5, %v752_v61 }
  0xf3   :  { %v609_v4 = vpop.eup %608  ;;  %v307_v12 = vadd.f32 1.0, %v607_v3  ;;  %v325_v23 = vmul.f32 %v309_v5, %v261_v7 }
  0xf4   :  { %v611_v6 = vpop.eup %610  ;;  %v315_v17 = vadd.f32 1.0, %v609_v4  ;;  %v333_v28 = vmul.f32 %v317_v9, %v269_v8  ;;  %v271_v4 = vmul.f32 0.5, %v742_v52 }
  0xf5   :  { %v613_v10 = vpop.eup %612  ;;  %v310_v14 = vadd.f32 1.0, %v611_v6  ;;  %v323_v33 = vmul.f32 %v307_v12, %v259_v11 }
  0xf6   :  { %v615_v15 = vpop.eup %614  ;;  %v318_v21 = vadd.f32 1.0, %v613_v10  ;;  %v331_v36 = vmul.f32 %v315_v17, %v267_v16 }
  0xf7   :  { %v617_v22 = vpop.eup %616  ;;  %v326_v19 = vmul.f32 %v310_v14, %v262_v13  ;;  %v308_v24 = vadd.f32 1.0, %v615_v15 }
  0xf8   :  { %v619_v27 = vpop.eup %618  ;;  %v334_v25 = vmul.f32 %v318_v21, %v270_v18  ;;  %v316_v29 = vadd.f32 1.0, %v617_v22 }
  0xf9   :  { %v621_v32 = vpop.eup %620  ;;  %v487_v34 = vpack.c.bf16 %v326_v19, %v325_v23  ;;  %v324_v26 = vmul.f32 %v308_v24, %v260_v20  ;;  %v313_v43 = vadd.f32 1.0, %v619_v27 }
  0xfa   :  { %v623_v35 = vpop.eup %622  ;;  %v507_v30 = vpack.c.bf16 %v334_v25, %v333_v28  ;;  %v332_v39 = vmul.f32 %v316_v29, %v268_v31  ;;  %v321_v45 = vadd.f32 1.0, %v621_v32 }
  0xfb   :  { %v625_v40 = vpop.eup %624  ;;  %519 = vst [vmem:[%s801_s3 + $0x8] sm:$0xff] %v487_v34   ;;  %v482_v37 = vpack.c.bf16 %v324_v26, %v323_v33  ;;  %v311_v55 = vadd.f32 1.0, %v623_v35  ;;  %v329_v59 = vmul.f32 %v313_v43, %v265_v47 }
  0xfc   :  { %v627_v44 = vpop.eup %626  ;;  %523 = vst [vmem:[%s801_s3 + $0x28] sm:$0xff] %v507_v30   ;;  %v502_v38 = vpack.c.bf16 %v332_v39, %v331_v36  ;;  %v319_v63 = vadd.f32 1.0, %v625_v40  ;;  %v337_v1 = vmul.f32 %v321_v45, %v273_v51 }
  0xfd   :  { %v629_v46 = vpop.eup %628  ;;  %483 = vst [vmem:[%s801_s3] sm:$0xff] %v482_v37   ;;  %v314_v50 = vadd.f32 1.0, %v627_v44  ;;  %v327_v54 = vmul.f32 %v311_v55, %v263_v60 }
  0xfe   :  { %522 = vst [vmem:[%s801_s3 + $0x20] sm:$0xff] %v502_v38   ;;  %v322_v57 = vadd.f32 1.0, %v629_v46  ;;  %v631_v58 = vpop.eup %630  ;;  %v335_v9 = vmul.f32 %v319_v63, %v271_v4 }
  0xff   :  { %v330_v0 = vmul.f32 %v314_v50, %v266_v48  ;;  %v633_v41 = vpop.eup %632  ;;  %v312_v3 = vadd.f32 1.0, %v631_v58 }
 0x100   :  { %v338_v53 = vmul.f32 %v322_v57, %v274_v56  ;;  %v320_v6 = vadd.f32 1.0, %v633_v41 }
 0x101   :  { %v497_v5 = vpack.c.bf16 %v330_v0, %v329_v59  ;;  %v328_v8 = vmul.f32 %v312_v3, %v264_v2 }
 0x102   :  { %v517_v7 = vpack.c.bf16 %v338_v53, %v337_v1  ;;  %v336_v49 = vmul.f32 %v320_v6, %v272_v42 }
 0x103   :  { %521 = vst [vmem:[%s801_s3 + $0x18] sm:$0xff] %v497_v5   ;;  %v492_v61 = vpack.c.bf16 %v328_v8, %v327_v54 }
 0x104   :  { %525 = vst [vmem:[%s801_s3 + $0x38] sm:$0xff] %v517_v7   ;;  %v512_v10 = vpack.c.bf16 %v336_v49, %v335_v9 }
 0x105   :  { %520 = vst [vmem:[%s801_s3 + $0x10] sm:$0xff] %v492_v61  }
 0x106   :  { %524 = vst [vmem:[%s801_s3 + $0x30] sm:$0xff] %v512_v10  }

// kernel: vit_forward.3
= control target key start
LH: loop header
LB: loop body
LE: loop exit
PB: predicated region body
PF: predicated region fallthrough
CT: control target
= control target key end

     0   :  { %s8469_s0 = inlined_call_operand.vmem [shape: bf16[2,16,512], index: 0, kind: input, shape index: {}]   ;;  %s8470_s1 = inlined_call_operand.vmem [shape: bf16[512,32], index: 1, kind: input, shape index: {}]   ;;  %s8471_s2 = inlined_call_operand.vmem [shape: f32[1,32], index: 2, kind: input, shape index: {}]   ;;  %s8472_s3 = inlined_call_operand.vmem [shape: bf16[16,32], index: 3, kind: input, shape index: {}]   ;;  %s8473_s4 = inlined_call_operand.vmem [shape: f32[1,32], index: 4, kind: input, shape index: {}]   ;;  %s8474_s5 = inlined_call_operand.vmem [shape: f32[1,32], index: 5, kind: input, shape index: {}]   ;;  %s8475_s6 = inlined_call_operand.vmem [shape: f32[32,32], index: 6, kind: input, shape index: {}]   ;;  %s8476_s7 = inlined_call_operand.vmem [shape: f32[2,1,32], index: 7, kind: input, shape index: {}]   ;;  %s8477_s8 = inlined_call_operand.vmem [shape: f32[2,1,32], index: 8, kind: input, shape index: {}]   ;;  %s8478_s9 = inlined_call_operand.vmem [shape: bf16[2,32,32], index: 9, kind: input, shape index: {}]   ;;  %s8479_s10 = inlined_call_operand.vmem [shape: bf16[2,32,32], index: 10, kind: input, shape index: {}]   ;;  %s8480_s11 = inlined_call_operand.vmem [shape: bf16[2,32,32], index: 11, kind: input, shape index: {}]   ;;  %s8481_s12 = inlined_call_operand.vmem [shape: bf16[2,32,32], index: 12, kind: input, shape index: {}]   ;;  %s8482_s13 = inlined_call_operand.vmem [shape: f32[2,1,32], index: 13, kind: input, shape index: {}]   ;;  %s8483_s14 = inlined_call_operand.vmem [shape: f32[2,1,32], index: 14, kind: input, shape index: {}]   ;;  %s8484_s15 = inlined_call_operand.vmem [shape: bf16[2,32,64], index: 15, kind: input, shape index: {}]   ;;  %s8485_s16 = inlined_call_operand.vmem [shape: bf16[2,64,32], index: 16, kind: input, shape index: {}]   ;;  %s8486_s17 = inlined_call_operand.vmem [shape: f32[1,32], index: 17, kind: input, shape index: {}]   ;;  %s8487_s18 = inlined_call_operand.vmem [shape: f32[1,32], index: 18, kind: input, shape index: {}]   ;;  %s8488_s19 = inlined_call_operand.vmem [shape: bf16[32,128], index: 19, kind: input, shape index: {}]   ;;  %s8489_s20 = inlined_call_operand.vmem [shape: f32[1,128], index: 20, kind: input, shape index: {}]   ;;  %s8490_s21 = inlined_call_operand.hbm [shape: f32[2,1,128], index: 21, kind: output, shape index: {}]  }
   0x1   :  { %8506 = sst [smem:[#allocation18_spill]] %s8469_s0 }
   0x2   :  { %8507 = sst [smem:[#allocation19_spill]] %s8470_s1 }
   0x3   :  { %8508 = sst [smem:[#allocation20_spill]] %s8471_s2 }
   0x4   :  { %8509 = sst [smem:[#allocation21_spill]] %s8472_s3 }
   0x5   :  { %8510 = sst [smem:[#allocation22_spill]] %s8473_s4 }
   0x6   :  { %8511 = sst [smem:[#allocation23_spill]] %s8474_s5 }
   0x7   :  { %8512 = sst [smem:[#allocation24_spill]] %s8478_s9 }
   0x8   :  { %8513 = sst [smem:[#allocation25_spill]] %s8479_s10 }
   0x9   :  { %8514 = sst [smem:[#allocation26_spill]] %s8480_s11 }
   0xa   :  { %8515 = sst [smem:[#allocation27_spill]] %s8481_s12 }
   0xb   :  { %8516 = sst [smem:[#allocation28_spill]] %s8486_s17 }
   0xc   :  { %8517 = sst [smem:[#allocation29_spill]] %s8487_s18 }
   0xd   :  { %8518 = sst [smem:[#allocation30_spill]] %s8488_s19 }
   0xe   :  { %8519 = sst [smem:[#allocation31_spill]] %s8489_s20 }
   0xf   :  { %8520 = sst [smem:[#allocation32_spill]] %s8490_s21 }
  0x10   :  { %26 = vsyncpa [#allocation4], 0 }
  0x11   :  { %28 = vsyncpa [#allocation4 + $0x1], 0  ;;  %s6849_s2 = smov 0   ;;  %s6851_s25 = smov 0  }
  0x12   :  { %s6853_s26 = smov 0   ;;  %s6855_s27 = smov 0  }
  0x13   :  { %s6857_s3 = smov 0   ;;  %s6859_s28 = smov 0  }
  0x14   :  { %s6861_s29 = smov 0   ;;  %s6863_s0 = smov 0  }
  0x15 LB: > { %8521 = sst [smem:[#allocation6_spill]] %s6695_s2  ;;  %s5785_s4 = sadd.s32 4294967295, %s6723_s0   ;;  %s6723_s0 = sphi %s6863_s0, %s34_s0   ;;  %s6719_s29 = sphi %s6861_s29, %s8573_s29   ;;  %s6715_s28 = sphi %s6859_s28, %s8572_s28   ;;  %s6711_s3 = sphi %s6857_s3, %s8571_s3   ;;  %s6707_s27 = sphi %s6855_s27, %s8570_s27   ;;  %s6703_s26 = sphi %s6853_s26, %s8569_s26   ;;  %s6699_s25 = sphi %s6851_s25, %s8575_s25   ;;  %s6695_s2 = sphi %s6849_s2, %s8574_s2  }
  0x16   : > { %8522 = sst [smem:[#allocation7_spill]] %s6703_s26  ;;  %s5786_s30 = sadd.s32 4294967294, %s6723_s0  }
  0x17   : > { %8523 = sst [smem:[#allocation8_spill]] %s6711_s3  ;;  %s43_s5 = sadd.s32 1, %s6715_s28 }
  0x18   : > { %8524 = sst [smem:[#allocation9_spill]] %s6715_s28  ;;  %p44_p0 = scmp.ge.s32.totalorder %s43_s5, 2 }
  0x19   : > { %8525 = sst [smem:[#allocation10_spill]] %s6719_s29  ;;  %s46_s22 = sadd.s32 1, %s6719_s29 }
  0x1a   : > { %8526 = sst [smem:[#allocation11_spill]] %s6723_s0  ;;  %p559_p1 = scmp.ne.s32.totalorder %s6703_s26, %s6699_s25 }
  0x1b   : > { %p560_p2 = scmp.eq.s32.totalorder %s5785_s4, 3  ;;  %s8577_s5 = smov (%p44_p0, %s43_s5), 0 }
  0x1c   : > { %8527 = sst [smem:[#allocation12_spill]] %s8577_s5  ;;  %s8579_s22 = smov (!%p44_p0, %s46_s22), %s6719_s29 }
  0x1d   : > { %p6898_p3 = por %p560_p2, %p559_p1  ;;  %p565_p4 = scmp.ne.s32.totalorder %s6699_s25, %s6695_s2 }
  0x1e   : > { %p48_p5 = scmp.ge.s32.totalorder %s8579_s22, 2  ;;  %p566_p6 = scmp.eq.s32.totalorder %s5786_s30, 3 }
  0x1f   : > { %s8528_s23 = scalar_select %p6898_p3, 1, 0 }
  0x20   : > { %p5789_p7 = scmp.ge.s32.totalorder %s6723_s0, 1  ;;  %p694_p8 = scmp.lt.s32.totalorder %s6723_s0, 5 }
  0x21   : > { %8529 = sst [smem:[#allocation13_spill]] %s8528_s23  ;;  %s8581_s22 = smov (%p48_p5, %s8579_s22), 0 }
  0x22   : > { %8530 = sst [smem:[#allocation14_spill]] %s8581_s22  ;;  %p6908_p9 = por %p566_p6, %p565_p4 }
  0x23   : > { %p695_p10 = pnand %p5789_p7, %p694_p8  ;;  %s546_s24 = ssub.s32 %s6719_s29, %s8581_s22 }
  0x24   : > { %s8531_s1 = scalar_select %p6908_p9, 1, 0 }
  0x25   : > { %s549_s4 = sadd.s32 1, %s6703_s26  ;;  %p547_p11 = scmp.eq.s32.totalorder %s546_s24, 0 }
  0x26   : > { %8532 = sst [smem:[#allocation15_spill]] %s8531_s1  ;;  %698 = sbr.rel (%p695_p10) target bundleno = 3795 (0xed3), region = 104 }
  0x27   : > { %s6916_s5 = scalar_select %p547_p11, %s6703_s26, %s549_s4  }
  0x29   : > { %8533 = sst [smem:[#allocation16_spill]] %s6916_s5 }
  0x2b   : > { %p795_p12 = scmp.lt.s32.totalorder %s6711_s3, 1  ;;  %p800_p13 = scmp.lt.s32.totalorder %s6707_s27, 1 }
  0x2c   : > { %s8534_s29 = sld [smem:[#allocation18_spill]]  ;;  %s8539_s4 = sand.u32 1, %s6699_s25  }
  0x2d   : > { %s796_s28 = scalar_select %p795_p12, %s6711_s3, 1 }
  0x2e   : > { %s6923_s2 = scalar_select %p800_p13, %s6707_s27, 1 }
  0x2f   : > { %s5945_s24 = sshll.u32 %s796_s28, 5  ;;  %s8535_s9 = sld [smem:[#allocation24_spill]] }
  0x30   : > { %s5946_s3 = sshll.u32 %s6923_s2, 4  ;;  %s8536_s10 = sld [smem:[#allocation25_spill]] }
  0x31   : > { %s8537_s11 = sld [smem:[#allocation26_spill]]  ;;  %s828_s18 = scalar_lea.vmem %s8482_s13, %s6923_s2 }
  0x32   : > { %s6928_s5 = scalar_lea.vmem %s8534_s29, %s5945_s24  ;;  %s8538_s12 = sld [smem:[#allocation27_spill]] }
  0x33   : > { %s5951_s29 = sshll.u32 %s6923_s2, 5  ;;  %p5804_p0 = scmp.ne.s32.totalorder %s6707_s27, 0 }
  0x34   : > { %s6976_s30 = scalar_lea.vmem %s8485_s16, %s5951_s29  ;;  %s8540_s0 = sld [smem:[#allocation19_spill]] (!%p5804_p0) }
  0x35   : > { %s6942_s17 = scalar_lea.vmem %s8535_s9, %s5946_s3  ;;  %846 = sbr.rel (%p5804_p0) target bundleno = 659 (0x293), region = 108 }
  0x36   : > { %s6947_s22 = scalar_lea.vmem %s8536_s10, %s5946_s3  ;;  %s6970_s10 = scalar_lea.vmem %s8484_s15, %s5946_s3 }
  0x37   : > { %s6952_s26 = scalar_lea.vmem %s8537_s11, %s5946_s3  ;;  %s8542_s1 = sld [smem:[#allocation20_spill]] (!%p5804_p0) }
  0x38   : > { %s6957_s21 = scalar_lea.vmem %s8538_s12, %s5946_s3  ;;  %s6980_s12 = scalar_lea.vmem [#allocation3], %s8539_s4 }
  0x39   : > { %s8544_s28 = sld [smem:[#allocation22_spill]] (!%p5804_p0) }
  0x3a   : > { %s8541_s20 = smov %s8540_s0  ;;  %v6425_v0 = vld [vmem:[%s8540_s0 + $0x78] sm:$0xff]   ;;  %v6457_v32 = vld [vmem:[%s6928_s5] ss:$16 sps:$4 sm:$0xff]   ;;  %v6459_v33 = vld [vmem:[%s6928_s5 + $0x4] ss:$16 sps:$4 sm:$0xff]   ;;  %s8543_s0 = sld [smem:[#allocation21_spill]] }
  0x3b   : > { %v6426_v1 = vld [vmem:[%s8541_s20 + $0xf8] sm:$0xff]   ;;  %5952 = vmatprep.subr.bf16.mxu0 %v6425_v0  ;;  %v6429_v4 = vld [vmem:[%s8541_s20 + $0x70] sm:$0xff]   ;;  %v6433_v8 = vld [vmem:[%s8541_s20 + $0x68] sm:$0xff]   ;;  %1174 = vmatprep.mubr.bf16.mxu0 %v6459_v33  ;;  %vm1280_vm0 = vcmask 130048   ;;  %vm1344_vm1 = vcmask 1040384   ;;  %vm1358_vm2 = vcmask 261120  }
  0x3c   : > { %v6427_v2 = vld [vmem:[%s8541_s20 + $0x38] sm:$0xff]   ;;  %5974 = vmatprep.subr.bf16.mxu1 %v6426_v1  ;;  %v6430_v5 = vld [vmem:[%s8541_s20 + $0xf0] sm:$0xff]   ;;  %v6434_v9 = vld [vmem:[%s8541_s20 + $0xe8] sm:$0xff]   ;;  %vm1363_vm3 = vcmask 253952  }
  0x3d   : > { %v6428_v3 = vld [vmem:[%s8541_s20 + $0xb8] sm:$0xff]   ;;  %5953 = vmatpush3.bf16.msra.mxu0 %v6427_v2  ;;  %v6431_v6 = vld [vmem:[%s8541_s20 + $0x30] sm:$0xff]   ;;  %v6435_v10 = vld [vmem:[%s8541_s20 + $0x28] sm:$0xff]  }
  0x3e   : > { %5975 = vmatpush3.bf16.msra.mxu1 %v6428_v3  ;;  %5954 = vmatprep.subr.bf16.mxu0 %v6429_v4  ;;  %v6432_v7 = vld [vmem:[%s8541_s20 + $0xb0] sm:$0xff]   ;;  %v6436_v11 = vld [vmem:[%s8541_s20 + $0xa8] sm:$0xff]   ;;  %v6437_v12 = vld [vmem:[%s8541_s20 + $0x60] sm:$0xff]  }
  0x3f   : > { %5976 = vmatprep.subr.bf16.mxu1 %v6430_v5  ;;  %v6438_v13 = vld [vmem:[%s8541_s20 + $0xe0] sm:$0xff]   ;;  %v6441_v16 = vld [vmem:[%s8541_s20 + $0x58] sm:$0xff]   ;;  %v6445_v20 = vld [vmem:[%s8541_s20 + $0x50] sm:$0xff]  }
  0x40   : > { %v6439_v14 = vld [vmem:[%s8541_s20 + $0x20] sm:$0xff]   ;;  %v6442_v17 = vld [vmem:[%s8541_s20 + $0xd8] sm:$0xff]   ;;  %v6446_v21 = vld [vmem:[%s8541_s20 + $0xd0] sm:$0xff]  }
  0x41   : > { %5955 = vmatpush3.bf16.msra.mxu0 %v6431_v6  ;;  %v6440_v15 = vld [vmem:[%s8541_s20 + $0xa0] sm:$0xff]   ;;  %v6443_v18 = vld [vmem:[%s8541_s20 + $0x18] sm:$0xff]   ;;  %v6447_v22 = vld [vmem:[%s8541_s20 + $0x10] sm:$0xff]  }
  0x42   : > { %5977 = vmatpush3.bf16.msra.mxu1 %v6432_v7  ;;  %5956 = vmatprep.subr.bf16.mxu0 %v6433_v8  ;;  %v6444_v19 = vld [vmem:[%s8541_s20 + $0x98] sm:$0xff]   ;;  %v6448_v23 = vld [vmem:[%s8541_s20 + $0x90] sm:$0xff]   ;;  %v6449_v24 = vld [vmem:[%s8541_s20 + $0x48] sm:$0xff]  }
  0x43   : > { %5978 = vmatprep.subr.bf16.mxu1 %v6434_v9  ;;  %v6450_v25 = vld [vmem:[%s8541_s20 + $0xc8] sm:$0xff]   ;;  %v6453_v28 = vld [vmem:[%s8541_s20 + $0x40] sm:$0xff]   ;;  %v918_v9 = vld [vmem:[%s8475_s6 + $0x10] sm:$0xff] }
  0x44   : > { %v6451_v26 = vld [vmem:[%s8541_s20 + $0x8] sm:$0xff]   ;;  %v6454_v29 = vld [vmem:[%s8541_s20 + $0xc0] sm:$0xff]  }
  0x45   : > { %5957 = vmatpush3.bf16.msra.mxu0 %v6435_v10  ;;  %v6452_v27 = vld [vmem:[%s8541_s20 + $0x88] sm:$0xff]   ;;  %v6455_v30 = vld [vmem:[%s8541_s20] sm:$0xff]  }
  0x46   : > { %5979 = vmatpush3.bf16.msra.mxu1 %v6436_v11  ;;  %5958 = vmatprep.subr.bf16.mxu0 %v6437_v12  ;;  %v6456_v31 = vld [vmem:[%s8541_s20 + $0x80] sm:$0xff]   ;;  %v6460_v34 = vld [vmem:[%s6928_s5 + $0x8] ss:$16 sps:$4 sm:$0xff]   ;;  %v6462_v35 = vld [vmem:[%s6928_s5 + $0xc] ss:$16 sps:$4 sm:$0xff]  }
  0x47   : > { %5980 = vmatprep.subr.bf16.mxu1 %v6438_v13  ;;  %1215 = vmatprep.mubr.bf16.mxu1 %v6462_v35  ;;  %v5805_v38 = vld [vmem:[%s8542_s1] ss:$0 sm:$0xff]  ;;  %v919_v13 = vld [vmem:[%s8475_s6 + $0x18] sm:$0xff] }
  0x48   : > { %v6463_v62 = vld [vmem:[%s8543_s0] sm:$0xff]   ;;  %s8545_s0 = sld [smem:[#allocation23_spill]] }
  0x49   : > { %5959 = vmatpush3.bf16.msra.mxu0 %v6439_v14  ;;  %v5842_v6 = vld [vmem:[%s8544_s28] ss:$0 sm:$0xff] }
  0x4a   : > { %5981 = vmatpush3.bf16.msra.mxu1 %v6440_v15  ;;  %5960 = vmatprep.subr.bf16.mxu0 %v6441_v16  ;;  %v916_v10 = vld [vmem:[%s8475_s6] sm:$0xff] }
  0x4b   : > { %5982 = vmatprep.subr.bf16.mxu1 %v6442_v17 }
  0x4d   : > { %5961 = vmatpush3.bf16.msra.mxu0 %v6443_v18 }
  0x4e   : > { %5983 = vmatpush3.bf16.msra.mxu1 %v6444_v19  ;;  %5962 = vmatprep.subr.bf16.mxu0 %v6445_v20  ;;  %v915_v18 = vld [vmem:[%s8545_s0] sm:$0x1]  ;;  %v917_v19 = vld [vmem:[%s8475_s6 + $0x8] sm:$0xff] }
  0x4f   : > { %5984 = vmatprep.subr.bf16.mxu1 %v6446_v21 }
  0x51   : > { %5963 = vmatpush3.bf16.msra.mxu0 %v6447_v22 }
  0x52   : > { %5985 = vmatpush3.bf16.msra.mxu1 %v6448_v23  ;;  %5964 = vmatprep.subr.bf16.mxu0 %v6449_v24 }
  0x53   : > { %5986 = vmatprep.subr.bf16.mxu1 %v6450_v25 }
  0x55   : > { %5965 = vmatpush3.bf16.msra.mxu0 %v6451_v26 }
  0x56   : > { %5987 = vmatpush3.bf16.msra.mxu1 %v6452_v27  ;;  %5966 = vmatprep.subr.bf16.mxu0 %v6453_v28 }
  0x57   : > { %5988 = vmatprep.subr.bf16.mxu1 %v6454_v29 }
  0x59   : > { %5967 = vmatpush3.bf16.msra.mxu0 %v6455_v30 }
  0x5a   : > { %5989 = vmatpush3.bf16.msra.mxu1 %v6456_v31  ;;  %6082 = vmatprep.subr.bf16.mxu0 %v6463_v62 }
  0x5c   : > { %1175 = vmatmul.mubr.bf16.vlgmr.msra.gmra.mxu0 %v6457_v32 }
  0x5d   : > { %1216 = vmatmul.mubr.bf16.vlgmr.msra.gmra.mxu1 %v6460_v34  ;;  %6083 = vmatpush3.bf16.msra.mxu0 %v6463_v62 }
 0x11c   : > { %v5968_v36 = vpop.f32.mrf.mxu0 }
 0x11d   : > { %v5990_v37 = vpop.f32.mrf.mxu1 }
 0x11e   : > { %v5969_v39 = vpop.f32.mrf.mxu0 }
 0x11f   : > { %v5970_v40 = vadd.f32 %v5969_v39, %v5968_v36  ;;  %v5991_v41 = vpop.f32.mrf.mxu1 }
 0x120   : > { %v5971_v42 = vpop.f32.mrf.mxu0  ;;  %v5992_v44 = vadd.f32 %v5991_v41, %v5990_v37 }
 0x121   : > { %v1177_v43 = vadd.f32 %v5970_v40, %v5805_v38  ;;  %v5993_v45 = vpop.f32.mrf.mxu1 }
 0x122   : > { %v5972_v46 = vpop.f32.mrf.mxu0 }
 0x123   : > { %v1218_v47 = vadd.f32 %v5992_v44, %v1177_v43  ;;  %v5973_v48 = vadd.f32 %v5972_v46, %v5971_v42  ;;  %v5994_v49 = vpop.f32.mrf.mxu1 }
 0x124   : > { %v5995_v52 = vadd.f32 %v5994_v49, %v5993_v45 }
 0x125   : > { %v1226_v50 = vmul.f32 0.70710677, %v1218_v47  ;;  %v1180_v51 = vadd.f32 %v5973_v48, %v5805_v38  ;;  %v1224_v56 = vmul.f32 0.5, %v1218_v47 }
 0x127   : > { %6464 = verf.f32 %v1226_v50  ;;  %v1221_v53 = vadd.f32 %v5995_v52, %v1180_v51 }
 0x129   : > { %v1227_v54 = vmul.f32 0.70710677, %v1221_v53  ;;  %v1225_v60 = vmul.f32 0.5, %v1221_v53 }
 0x12b   : > { %6466 = verf.f32 %v1227_v54 }
 0x134   : > { %v6465_v55 = vpop.eup %6464 }
 0x135   : > { %v1230_v57 = vadd.f32 1.0, %v6465_v55 }
 0x137   : > { %v1232_v58 = vmul.f32 %v1230_v57, %v1224_v56 }
 0x138   : > { %v6467_v59 = vpop.eup %6466 }
 0x139   : > { %1234 = vxpose.xlu0.b32.start [1/2] (short) (narrow) %v1232_v58, 32  ;;  %v1231_v61 = vadd.f32 1.0, %v6467_v59 }
 0x13b   : > { %v1233_v63 = vmul.f32 %v1231_v61, %v1225_v60 }
 0x13d   : > { %1235 = vxpose.xlu0.b32.end [2/2] (short) (narrow) %v1233_v63, 32 }
 0x1b5   : > { %v1250_v0 = vpop.trf.xlu0 }
 0x1b9   : > { %v1251_v1 = vpop.trf.xlu0 }
 0x1ba   : > { %v1266_v2 = vpack.c.bf16 %v1251_v1, %v1250_v0 }
 0x1bc   : > { %6084 = vmatprep.mubr.msk.bf16.mxu0 %vm1280_vm0, %v1266_v2 }
 0x1bd   : > { %v1252_v3 = vpop.trf.xlu0 }
 0x1c1   : > { %v1253_v4 = vpop.trf.xlu0 }
 0x1c2   : > { %v1267_v5 = vpack.c.bf16 %v1253_v4, %v1252_v3 }
 0x1c4   : > { %6085 = vmatmul.mubr.msk.bf16.vlgmr.msra.gmra.mxu0 %vm1280_vm0, %v1267_v5 }
 0x284   : > { %v6086_v7 = vpop.f32.mrf.mxu0 }
 0x285   : > { %v1330_v8 = vadd.f32 %v6086_v7, %v5842_v6 }
 0x286   : > { %v1321_v11 = vpop.f32.mrf.mxu0 }
 0x287   : > { %v1322_v12 = vadd.f32 %v5842_v6, %v1321_v11  ;;  %v1338_v15 = vadd.f32 %v1330_v8, %v918_v9 }
 0x288   : > { %v6087_v14 = vpop.f32.mrf.mxu0 }
 0x289   : > { %v1336_v16 = vadd.f32 %v1322_v12, %v916_v10  ;;  %v1333_v17 = vadd.f32 %v6087_v14, %v5842_v6  ;;  %v1348_v24 = vrot.slane %v1338_v15, 7 }
 0x28a   : > { %v1324_v20 = vpop.f32.mrf.mxu0 }
 0x28b   : > { %v1345_v21 = vrot.slane %v1336_v16, 7  ;;  %v1339_v22 = vadd.f32 %v1333_v17, %v919_v13  ;;  %v1325_v23 = vadd.f32 %v5842_v6, %v1324_v20 }
 0x28d   : > { %v1357_v25 = vsel %vm1344_vm1, %v915_v18, %v1345_v21  ;;  %v1350_v26 = vrot.slane %v1339_v22, 7  ;;  %v1337_v27 = vadd.f32 %v1325_v23, %v917_v19 }
 0x28e   : > { %1359 = vst.msk [vmem:[#allocation2] sm:$0xff] %vm1358_vm2, %v1357_v25 }
 0x28f   : > { %v1351_v28 = vsel %vm1344_vm1, %v1348_v24, %v1350_v26  ;;  %1364 = vst.msk [vmem:[#allocation2 + $0x20] sm:$0x1] %vm1363_vm3, %v1350_v26  ;;  %v1346_v29 = vrot.slane %v1337_v27, 7 }
 0x290   : > { %1362 = vst.msk [vmem:[#allocation2 + $0x18] sm:$0xff] %vm1358_vm2, %v1351_v28 }
 0x291   : > { %v1347_v30 = vsel %vm1344_vm1, %v1345_v21, %v1346_v29  ;;  %v1349_v31 = vsel %vm1344_vm1, %v1346_v29, %v1348_v24 }
 0x292   : > { %1360 = vst.msk [vmem:[#allocation2 + $0x8] sm:$0xff] %vm1358_vm2, %v1347_v30  ;;  %1361 = vst.msk [vmem:[#allocation2 + $0x10] sm:$0xff] %vm1358_vm2, %v1349_v31 }
 0x293 PF: > { %vm1402_vm4 = vcmask 261120   ;;  %vm1415_vm5 = vcmask 253952   ;;  %v6498_v3 = vld [vmem:[%s6942_s17 + $0x8] sm:$0xff]   ;;  %v6725_v5 = vmov 0.0   ;;  %v6500_v6 = vld [vmem:[%s6942_s17] sm:$0xff]   ;;  %vm6726_vm6 = vmmov 0   ;;  %s8546_s28 = scalar_lea.vmem %s8476_s7, %s6923_s2  ;;  %s8547_s24 = scalar_lea.vmem %s8477_s8, %s6923_s2 }
 0x294   : > { %v6499_v4 = vld [vmem:[%s6947_s22 + $0x8] sm:$0xff]   ;;  %6088 = vmatprep.subr.bf16.mxu0 %v6725_v5  ;;  %6104 = vmatprep.subr.bf16.mxu1 %v6725_v5  ;;  %v6501_v7 = vld [vmem:[%s6947_s22] sm:$0xff]   ;;  %s6728_s4 = smov 112   ;;  %s6729_s23 = smov 104   ;;  %vm3670_vm7 = vcmask 64512   ;;  %vm4210_vm8 = vcmask 1040384  }
 0x295   : > { %v1397_v32 = vld [vmem:[#allocation2] sm:$0xff]  ;;  %6089 = vmatpush3.bf16.msra.mxu0 %v6498_v3  ;;  %6105 = vmatpush3.bf16.msra.mxu1 %v6499_v4  ;;  %vm3967_vm9 = vcmask 269312   ;;  %vm3980_vm10 = vcmask 262144   ;;  %s6734_s1 = smov 8   ;;  %s6735_s5 = smov 24   ;;  %vm5133_vm11 = vcmask 130048  }
 0x296   : > { %v1403_v35 = vsel %vm1402_vm4, %v1397_v32, 0.0  ;;  %v1401_v39 = vld [vmem:[#allocation2 + $0x20] sm:$0x1]  ;;  %6090 = vmatprep.subr.bf16.mxu0 %v6725_v5  ;;  %6106 = vmatprep.subr.bf16.mxu1 %v6725_v5  ;;  %vm5139_vm12 = vcmask 195584   ;;  %s8556_s3 = scalar_lea.vmem %s8483_s14, %s6923_s2  ;;  %vm5444_vm13 = vcmask 523264   ;;  %p5938_p1 = scmp.ne.s32.totalorder %s6707_s27, 1 }
 0x297   : > { %v1400_v38 = vld [vmem:[#allocation2 + $0x18] sm:$0xff]  ;;  %1404 = vadd.xlane.f32.xlu0 %v1403_v35  ;;  %v1416_v41 = vsel %vm1415_vm5, %v1401_v39, 0.0  ;;  %6092 = vmatprep.mubr.msk.bf16.mxu0 %vm6726_vm6, %v6725_v5  ;;  %v5846_v25 = vld [vmem:[%s8546_s28] ss:$0 sm:$0xff]  ;;  %s8558_s11 = sld [smem:[#allocation28_spill]] (!%p5938_p1) }
 0x298   : > { %v1412_v40 = vsel %vm1402_vm4, %v1400_v38, 0.0  ;;  %6108 = vmatprep.mubr.msk.bf16.mxu1 %vm6726_vm6, %v6725_v5  ;;  %v5847_v30 = vld [vmem:[%s8547_s24] ss:$0 sm:$0xff] }
 0x299   : > { %v1399_v33 = vld [vmem:[#allocation2 + $0x10] sm:$0xff]  ;;  %v1398_v34 = vld [vmem:[#allocation2 + $0x8] sm:$0xff]  ;;  %6091 = vmatpush3.bf16.msra.mxu0 %v6500_v6  ;;  %6107 = vmatpush3.bf16.msra.mxu1 %v6501_v7 }
 0x29a   : > { %v1409_v36 = vsel %vm1402_vm4, %v1399_v33, 0.0  ;;  %v1406_v37 = vsel %vm1402_vm4, %v1398_v34, 0.0  ;;  %6120 = vmatprep.subr.bf16.mxu0 %v6725_v5  ;;  %6136 = vmatprep.subr.bf16.mxu1 %v6725_v5 }
 0x29b   : > { %1410 = vadd.xlane.f32.xlu1 %v1409_v36  ;;  %1407 = vadd.xlane.f32.xlu0 %v1406_v37 }
 0x29f   : > { %1413 = vadd.xlane.f32.xlu1 %v1412_v40  ;;  %1417 = vadd.xlane.f32.xlu0 %v1416_v41 }
 0x320   : > { %v1405_v42 = vpop.xlane.xlu0 %1404 }
 0x321   : > { %v1420_v44 = vmul.f32 0.03125, %v1405_v42 }
 0x323   : > { %v7120_v46 = vsub.f32 %v1397_v32, %v1420_v44  ;;  %v6503_v44 = vld [vmem:[%s6952_s26] sm:$0xff]  }
 0x324   : > { %v1411_v43 = vpop.xlane.xlu1 %1410  ;;  %v1408_v48 = vpop.xlane.xlu0 %1407 }
 0x325   : > { %v1422_v45 = vmul.f32 0.03125, %v1411_v43  ;;  %v1421_v50 = vmul.f32 0.03125, %v1408_v48  ;;  %v1430_v52 = vmul.f32 %v7120_v46, %v7120_v46 }
 0x327   : > { %v7122_v47 = vsub.f32 %v1399_v33, %v1422_v45  ;;  %v1426_v54 = vsub.f32 %v1398_v34, %v1421_v50  ;;  %v1435_v56 = vsel %vm1402_vm4, %v1430_v52, 0.0 }
 0x328   : > { %v1414_v49 = vpop.xlane.xlu1 %1413  ;;  %1436 = vadd.xlane.f32.xlu1 %v1435_v56  ;;  %v1418_v57 = vpop.xlane.xlu0 %1417 }
 0x329   : > { %v1423_v51 = vmul.f32 0.03125, %v1414_v49  ;;  %v1432_v53 = vmul.f32 %v7122_v47, %v7122_v47  ;;  %v1424_v58 = vmul.f32 0.03125, %v1418_v57  ;;  %v1431_v60 = vmul.f32 %v1426_v54, %v1426_v54 }
 0x32b   : > { %v7128_v55 = vsub.f32 %v1400_v38, %v1423_v51  ;;  %v1441_v59 = vsel %vm1402_vm4, %v1432_v53, 0.0  ;;  %v7134_v62 = vsub.f32 %v1401_v39, %v1424_v58  ;;  %v1438_v63 = vsel %vm1402_vm4, %v1431_v60, 0.0  ;;  %v6502_v39 = vld [vmem:[%s6952_s26 + $0x8] sm:$0xff]   ;;  %s6727_s26 = smov 120  }
 0x32c   : > { %1442 = vadd.xlane.f32.xlu1 %v1441_v59  ;;  %1439 = vadd.xlane.f32.xlu0 %v1438_v63 }
 0x32d   : > { %v1433_v61 = vmul.f32 %v7128_v55, %v7128_v55  ;;  %v1434_v1 = vmul.f32 %v7134_v62, %v7134_v62 }
 0x32f   : > { %v1444_v0 = vsel %vm1402_vm4, %v1433_v61, 0.0  ;;  %v1447_v2 = vsel %vm1415_vm5, %v1434_v1, 0.0 }
 0x330   : > { %1445 = vadd.xlane.f32.xlu0 %v1444_v0  ;;  %1448 = vadd.xlane.f32.xlu1 %v1447_v2 }
 0x3b1   : > { %v1437_v8 = vpop.xlane.xlu1 %1436 }
 0x3b2   : > { %v1450_v9 = vmul.f32 0.03125, %v1437_v8 }
 0x3b4   : > { %v1455_v10 = vadd.f32 1e-05, %v1450_v9 }
 0x3b5   : > { %v1443_v11 = vpop.xlane.xlu1 %1442  ;;  %v1440_v12 = vpop.xlane.xlu0 %1439 }
 0x3b6   : > { %6512 = vrsqrt.f32 %v1455_v10  ;;  %v1452_v13 = vmul.f32 0.03125, %v1443_v11  ;;  %v1451_v14 = vmul.f32 0.03125, %v1440_v12 }
 0x3b8   : > { %v1456_v15 = vadd.f32 1e-05, %v1451_v14  ;;  %v1457_v16 = vadd.f32 1e-05, %v1452_v13 }
 0x3b9   : > { %v1449_v17 = vpop.xlane.xlu1 %1448  ;;  %v1446_v18 = vpop.xlane.xlu0 %1445 }
 0x3ba   : > { %v1453_v19 = vmul.f32 0.03125, %v1446_v18  ;;  %6514 = vrsqrt.f32 %v1456_v15  ;;  %v1454_v20 = vmul.f32 0.03125, %v1449_v17 }
 0x3bb   : > { %6516 = vrsqrt.f32 %v1457_v16 }
 0x3bc   : > { %v1458_v21 = vadd.f32 1e-05, %v1453_v19  ;;  %v1459_v22 = vadd.f32 1e-05, %v1454_v20 }
 0x3be   : > { %6518 = vrsqrt.f32 %v1458_v21 }
 0x3bf   : > { %6520 = vrsqrt.f32 %v1459_v22 }
 0x3c3   : > { %v6513_v23 = vpop.eup %6512 }
 0x3c4   : > { %v1465_v24 = vmul.f32 %v6513_v23, %v7120_v46 }
 0x3c6   : > { %v1476_v28 = vmul.f32 %v5846_v25, %v1465_v24 }
 0x3c7   : > { %v6515_v26 = vpop.eup %6514 }
 0x3c8   : > { %v1466_v27 = vmul.f32 %v6515_v26, %v1426_v54  ;;  %v6517_v29 = vpop.eup %6516  ;;  %v1487_v33 = vadd.f32 %v5847_v30, %v1476_v28  ;;  %v6730_v26 = vmov 1983009808   ;;  %v1763_v28 = vlaneseq }
 0x3c9   : > { %v1467_v35 = vmul.f32 %v6517_v29, %v7122_v47 }
 0x3ca   : > { %v1477_v31 = vmul.f32 %v5846_v25, %v1466_v27  ;;  %v1761_v27 = vunpack.c.l.s4 %v6730_v26 }
 0x3cb   : > { %v6519_v32 = vpop.eup %6518  ;;  %v1478_v41 = vmul.f32 %v5846_v25, %v1467_v35  ;;  %v6731_v35 = vmov 1934713408  }
 0x3cc   : > { %v1488_v34 = vadd.f32 %v5847_v30, %v1477_v31  ;;  %v1468_v36 = vmul.f32 %v6519_v32, %v7128_v55  ;;  %v6521_v40 = vpop.eup %6520  ;;  %v1762_v31 = vunpack.c.0.s8 %v1761_v27  ;;  %v1764_v32 = vshrl.u32 %v1763_v28, 7 }
 0x3cd   : > { %v1469_v43 = vmul.f32 %v6521_v40, %v7134_v62  ;;  %v1489_v45 = vadd.f32 %v5847_v30, %v1478_v41 }
 0x3ce   : > { %v1492_v37 = vpack.c.bf16 %v1488_v34, %v1487_v33  ;;  %v1479_v38 = vmul.f32 %v5846_v25, %v1468_v36  ;;  %v1793_v36 = vunpack.c.l.s4 %v6731_v35 }
 0x3cf   : > { %v1480_v47 = vmul.f32 %v5846_v25, %v1469_v43 }
 0x3d0   : > { %6093 = vmatmul.mubr.msk.bf16.vlgmr.msra.gmra.mxu0 %vm1402_vm4, %v1492_v37  ;;  %6109 = vmatmul.mubr.msk.bf16.vlgmr.msra.gmra.mxu1 %vm1402_vm4, %v1492_v37  ;;  %v1490_v42 = vadd.f32 %v5847_v30, %v1479_v38  ;;  %v1794_v40 = vunpack.c.0.s8 %v1793_v36 }
 0x3d1   : > { %6096 = vmatprep.mubr.msk.bf16.mxu0 %vm6726_vm6, %v6725_v5  ;;  %6112 = vmatprep.mubr.msk.bf16.mxu1 %vm6726_vm6, %v6725_v5  ;;  %v1491_v48 = vadd.f32 %v5847_v30, %v1480_v47 }
 0x3d2   : > { %6121 = vmatpush3.bf16.msra.mxu0 %v6502_v39  ;;  %v1493_v46 = vpack.c.bf16 %v1490_v42, %v1489_v45  ;;  %v7318_v39 = vsub.s32 %v1762_v31, %v1764_v32 }
 0x3d3   : > { %6122 = vmatprep.subr.bf16.mxu0 %v6725_v5  ;;  %v1494_v49 = vpack.c.bf16 %v1491_v48, %v1491_v48 }
 0x3d6   : > { %6123 = vmatpush3.bf16.msra.mxu0 %v6503_v44 }
 0x3d7   : > { %6154 = vmatprep.subr.bf16.mxu0 %v6725_v5 }
 0x3d8   : > { %6097 = vmatmul.mubr.msk.bf16.gmra.mxu0 %vm1402_vm4, %v1493_v46  ;;  %6113 = vmatmul.mubr.msk.bf16.gmra.mxu1 %vm1402_vm4, %v1493_v46 }
 0x3d9   : > { %6100 = vmatprep.mubr.msk.bf16.mxu0 %vm6726_vm6, %v6725_v5  ;;  %6116 = vmatprep.mubr.msk.bf16.mxu1 %vm6726_vm6, %v6725_v5 }
 0x3e0   : > { %6101 = vmatmul.mubr.msk.bf16.gmra.mxu0 %vm1402_vm4, %v1494_v49  ;;  %6117 = vmatmul.mubr.msk.bf16.gmra.mxu1 %vm1402_vm4, %v1494_v49 }
 0x3e1   : > { %6124 = vmatprep.mubr.msk.bf16.mxu0 %vm6726_vm6, %v6725_v5  ;;  %6142 = vmatprep.mubr.msk.bf16.mxu1 %vm6726_vm6, %v6725_v5 }
 0x3e8   : > { %6125 = vmatmul.mubr.msk.bf16.vlgmr.msra.gmra.mxu0 %vm1402_vm4, %v1492_v37 }
 0x3e9   : > { %6128 = vmatprep.mubr.msk.bf16.mxu0 %vm6726_vm6, %v6725_v5 }
 0x3f0   : > { %6129 = vmatmul.mubr.msk.bf16.gmra.mxu0 %vm1402_vm4, %v1493_v46 }
 0x3f1   : > { %6132 = vmatprep.mubr.msk.bf16.mxu0 %vm6726_vm6, %v6725_v5 }
 0x3f8   : > { %6133 = vmatmul.mubr.msk.bf16.gmra.mxu0 %vm1402_vm4, %v1494_v49 }
 0x3f9   : > { %6160 = vmatprep.mubr.msk.bf16.mxu0 %vm6726_vm6, %v6725_v5 }
 0x490   : > { %v7200_v50 = vpop.f32.mrf.mxu0  ;;  %v7202_v51 = vpop.f32.mrf.mxu1 }
 0x491   : > { %2367 = vrot.lane.b32.xlu1 %v7202_v51, %s6727_s26 }
 0x492   : > { %v6094_v52 = vpop.f32.mrf.mxu0  ;;  %v6110_v53 = vpop.f32.mrf.mxu1 }
 0x494   : > { %v7206_v54 = vpop.f32.mrf.mxu0  ;;  %v7208_v55 = vpop.f32.mrf.mxu1 }
 0x495   : > { %2382 = vrot.lane.b32.xlu1 %v7202_v51, %s6728_s4  ;;  %2369 = vrot.lane.b32.xlu0 %v7208_v55, %s6727_s26 }
 0x496   : > { %v6095_v56 = vpop.f32.mrf.mxu0  ;;  %v6111_v57 = vpop.f32.mrf.mxu1 }
 0x497   : > { %v7327_v56 = vsub.s32 %v1794_v40, %v1764_v32 }
 0x498   : > { %v7214_v58 = vpop.f32.mrf.mxu0  ;;  %v7216_v59 = vpop.f32.mrf.mxu1 }
 0x499   : > { %2384 = vrot.lane.b32.xlu0 %v7208_v55, %s6728_s4  ;;  %2371 = vrot.lane.b32.xlu1 %v7216_v59, %s6727_s26 }
 0x49a   : > { %v6098_v60 = vpop.f32.mrf.mxu0  ;;  %v6114_v61 = vpop.f32.mrf.mxu1 }
 0x49c   : > { %v7222_v62 = vpop.f32.mrf.mxu0  ;;  %v7224_v63 = vpop.f32.mrf.mxu1 }
 0x49d   : > { %2386 = vrot.lane.b32.xlu1 %v7216_v59, %s6728_s4  ;;  %2373 = vrot.lane.b32.xlu0 %v7224_v63, %s6727_s26 }
 0x49e   : > { %v6099_v0 = vpop.f32.mrf.mxu0  ;;  %v6115_v1 = vpop.f32.mrf.mxu1 }
 0x4a0   : > { %v7230_v2 = vpop.f32.mrf.mxu0  ;;  %v7232_v3 = vpop.f32.mrf.mxu1 }
 0x4a1   : > { %2401 = vrot.lane.b32.xlu1 %v7216_v59, %s6729_s23  ;;  %2388 = vrot.lane.b32.xlu0 %v7224_v63, %s6728_s4 }
 0x4a2   : > { %v6102_v4 = vpop.f32.mrf.mxu0  ;;  %v6118_v6 = vpop.f32.mrf.mxu1 }
 0x4a4   : > { %v1569_v7 = vpop.f32.mrf.mxu0  ;;  %v1637_v8 = vpop.f32.mrf.mxu1 }
 0x4a5   : > { %2403 = vrot.lane.b32.xlu0 %v7224_v63, %s6729_s23  ;;  %2390 = vrot.lane.b32.xlu1 %v7232_v3, %s6728_s4 }
 0x4a6   : > { %v6103_v9 = vpop.f32.mrf.mxu0  ;;  %v6119_v10 = vpop.f32.mrf.mxu1 }
 0x4a8   : > { %v7242_v11 = vpop.f32.mrf.mxu0 }
 0x4a9   : > { %2405 = vrot.lane.b32.xlu1 %v7232_v3, %s6729_s23  ;;  %2375 = vrot.lane.b32.xlu0 %v7232_v3, %s6727_s26 }
 0x4aa   : > { %v6126_v12 = vpop.f32.mrf.mxu0 }
 0x4ac   : > { %v7248_v13 = vpop.f32.mrf.mxu0 }
 0x4ad   : > { %2397 = vrot.lane.b32.xlu1 %v7202_v51, %s6729_s23  ;;  %2399 = vrot.lane.b32.xlu0 %v7208_v55, %s6729_s23 }
 0x4ae   : > { %v6127_v14 = vpop.f32.mrf.mxu0 }
 0x4b0   : > { %v7254_v15 = vpop.f32.mrf.mxu0 }
 0x4b1   : > { %1713 = vrot.lane.b32.xlu1 %v7200_v50, %s6727_s26  ;;  %1715 = vrot.lane.b32.xlu0 %v7206_v54, %s6727_s26 }
 0x4b2   : > { %v6130_v16 = vpop.f32.mrf.mxu0 }
 0x4b4   : > { %v7260_v17 = vpop.f32.mrf.mxu0 }
 0x4b5   : > { %1728 = vrot.lane.b32.xlu1 %v7200_v50, %s6728_s4  ;;  %1730 = vrot.lane.b32.xlu0 %v7206_v54, %s6728_s4 }
 0x4b6   : > { %v6131_v18 = vpop.f32.mrf.mxu0 }
 0x4b8   : > { %v7266_v19 = vpop.f32.mrf.mxu0 }
 0x4b9   : > { %1743 = vrot.lane.b32.xlu1 %v7200_v50, %s6729_s23  ;;  %1745 = vrot.lane.b32.xlu0 %v7206_v54, %s6729_s23 }
 0x4ba   : > { %v6134_v20 = vpop.f32.mrf.mxu0 }
 0x4bc   : > { %v1705_v21 = vpop.f32.mrf.mxu0 }
 0x4bd   : > { %1717 = vrot.lane.b32.xlu1 %v7214_v58, %s6727_s26  ;;  %1719 = vrot.lane.b32.xlu0 %v7222_v62, %s6727_s26 }
 0x4be   : > { %v6135_v22 = vpop.f32.mrf.mxu0 }
 0x4c1   : > { %1732 = vrot.lane.b32.xlu1 %v7214_v58, %s6728_s4  ;;  %1734 = vrot.lane.b32.xlu0 %v7222_v62, %s6728_s4 }
 0x4c5   : > { %1747 = vrot.lane.b32.xlu1 %v7214_v58, %s6729_s23  ;;  %1749 = vrot.lane.b32.xlu0 %v7222_v62, %s6729_s23 }
 0x4c9   : > { %1736 = vrot.lane.b32.xlu0 %v7230_v2, %s6728_s4  ;;  %1721 = vrot.lane.b32.xlu1 %v7230_v2, %s6727_s26 }
 0x4cd   : > { %1751 = vrot.lane.b32.xlu1 %v7230_v2, %s6729_s23  ;;  %3023 = vrot.lane.b32.xlu0 %v7248_v13, %s6727_s26 }
 0x4d1   : > { %3021 = vrot.lane.b32.xlu1 %v7242_v11, %s6727_s26  ;;  %3027 = vrot.lane.b32.xlu0 %v7260_v17, %s6727_s26 }
 0x4d5   : > { %3025 = vrot.lane.b32.xlu1 %v7254_v15, %s6727_s26  ;;  %3042 = vrot.lane.b32.xlu0 %v7260_v17, %s6728_s4 }
 0x4d9   : > { %3040 = vrot.lane.b32.xlu1 %v7254_v15, %s6728_s4  ;;  %3057 = vrot.lane.b32.xlu0 %v7260_v17, %s6729_s23 }
 0x4dd   : > { %3055 = vrot.lane.b32.xlu1 %v7254_v15, %s6729_s23  ;;  %3029 = vrot.lane.b32.xlu0 %v7266_v19, %s6727_s26  ;;  %s8559_s26 = sld [smem:[#allocation29_spill]] (!%p5938_p1) }
 0x4e1   : > { %3044 = vrot.lane.b32.xlu1 %v7266_v19, %s6728_s4 }
 0x4e5   : > { %3059 = vrot.lane.b32.xlu1 %v7266_v19, %s6729_s23 }
 0x503   : > { %v7312_v23 = vpop.permute.xlu1 %2367 }
 0x507   : > { %v2383_v24 = vpop.permute.xlu1 %2382  ;;  %v7314_v25 = vpop.permute.xlu0 %2369 }
 0x508   : > { %v2412_v53 = vcombine.low %v7202_v51, %v2383_v24  ;;  %v2413_v4 = vcombine.high %v7202_v51, %v2383_v24 }
 0x50a   : > { %v2420_v22 = vrot.slane %v2412_v53, %v7318_v39 }
 0x50b   : > { %v2385_v29 = vpop.permute.xlu0 %2384  ;;  %v2372_v30 = vpop.permute.xlu1 %2371 }
 0x50c   : > { %v2480_v6 = vcombine.low %v7208_v55, %v2385_v29  ;;  %v2481_v9 = vcombine.high %v7208_v55, %v2385_v29  ;;  %v2427_v29 = vrot.slane %v2413_v4, %v7318_v39 }
 0x50e   : > { %v2495_v31 = vrot.slane %v2481_v9, %v7318_v39 }
 0x50f   : > { %v2387_v33 = vpop.permute.xlu1 %2386  ;;  %v2374_v34 = vpop.permute.xlu0 %2373 }
 0x510   : > { %v2548_v37 = vcombine.low %v7216_v59, %v2387_v33  ;;  %v2549_v38 = vcombine.high %v7216_v59, %v2387_v33 }
 0x512   : > { %v2556_v45 = vrot.slane %v2548_v37, %v7318_v39  ;;  %v2563_v46 = vrot.slane %v2549_v38, %v7318_v39 }
 0x513   : > { %v2402_v41 = vpop.permute.xlu1 %2401  ;;  %v2389_v42 = vpop.permute.xlu0 %2388 }
 0x514   : > { %v2564_v43 = vcombine.low %v2372_v30, %v2402_v41  ;;  %v2565_v44 = vcombine.high %v2372_v30, %v2402_v41  ;;  %v2616_v49 = vcombine.low %v7224_v63, %v2389_v42  ;;  %v2617_v52 = vcombine.high %v7224_v63, %v2389_v42 }
 0x515   : > { %v2488_v30 = vrot.slane %v2480_v6, %v7318_v39 }
 0x516   : > { %v2572_v47 = vrot.slane %v2564_v43, %v7318_v39  ;;  %v2579_v48 = vrot.slane %v2565_v44, %v7318_v39  ;;  %v2624_v63 = vrot.slane %v2616_v49, %v7318_v39  ;;  %v2631_v10 = vrot.slane %v2617_v52, %v7318_v39 }
 0x517   : > { %v2404_v57 = vpop.permute.xlu0 %2403  ;;  %v2391_v59 = vpop.permute.xlu1 %2390 }
 0x518   : > { %v2580_v60 = vcombine.low %v2556_v45, %v2572_v47  ;;  %v2581_v61 = vcombine.high %v2556_v45, %v2572_v47  ;;  %v2596_v0 = vcombine.low %v2563_v46, %v2579_v48  ;;  %v2597_v1 = vcombine.high %v2563_v46, %v2579_v48 }
 0x519   : > { %v2632_v7 = vcombine.low %v2374_v34, %v2404_v57  ;;  %v2633_v8 = vcombine.high %v2374_v34, %v2404_v57  ;;  %v2684_v12 = vcombine.low %v7232_v3, %v2391_v59 }
 0x51a   : > { %v2588_v14 = vrot.slane %v2580_v60, %v7327_v56  ;;  %v2595_v16 = vrot.slane %v2581_v61, %v7327_v56  ;;  %v2604_v55 = vrot.slane %v2596_v0, %v7327_v56  ;;  %v2611_v24 = vrot.slane %v2597_v1, %v7327_v56 }
 0x51b   : > { %v2640_v18 = vrot.slane %v2632_v7, %v7318_v39  ;;  %v2647_v51 = vrot.slane %v2633_v8, %v7318_v39  ;;  %v2406_v20 = vpop.permute.xlu1 %2405  ;;  %v2376_v21 = vpop.permute.xlu0 %2375  ;;  %v2691_v32 = vrot.slane %v2684_v12, %v7318_v39 }
 0x51c   : > { %v2837_v33 = vcombine.low %v2588_v14, %v2595_v16  ;;  %v5875_v34 = vcombine.high %v2588_v14, %v2595_v16  ;;  %v2853_v40 = vcombine.low %v2604_v55, %v2611_v24  ;;  %v2692_v41 = vcombine.low %v2376_v21, %v2406_v20 }
 0x51d   : > { %v2648_v26 = vcombine.low %v2624_v63, %v2640_v18  ;;  %v2649_v27 = vcombine.high %v2624_v63, %v2640_v18  ;;  %v2664_v28 = vcombine.low %v2631_v10, %v2647_v51  ;;  %v2665_v3 = vcombine.high %v2631_v10, %v2647_v51 }
 0x51e   : > { %v5876_v44 = vcombine.high %v2604_v55, %v2611_v24  ;;  %v2699_v48 = vrot.slane %v2692_v41, %v7318_v39  ;;  %v7358_v57 = vrot.slane %v2837_v33, %v7318_v39  ;;  %v7375_v24 = vrot.slane %v2853_v40, %v7318_v39 }
 0x51f   : > { %v2656_v35 = vrot.slane %v2648_v26, %v7327_v56  ;;  %v2663_v36 = vrot.slane %v2649_v27, %v7327_v56  ;;  %v2398_v37 = vpop.permute.xlu1 %2397  ;;  %v2400_v38 = vpop.permute.xlu0 %2399  ;;  %v2672_v45 = vrot.slane %v2664_v28, %v7327_v56  ;;  %v2679_v46 = vrot.slane %v2665_v3, %v7327_v56 }
 0x520   : > { %v2428_v42 = vcombine.low %v7312_v23, %v2398_v37  ;;  %v2429_v43 = vcombine.high %v7312_v23, %v2398_v37  ;;  %v2496_v47 = vcombine.low %v7314_v25, %v2400_v38  ;;  %v2497_v53 = vcombine.high %v7314_v25, %v2400_v38 }
 0x521   : > { %v7361_v23 = vrot.slane %v5875_v34, %v7318_v39  ;;  %v2905_v59 = vcombine.low %v2656_v35, %v2663_v36  ;;  %v5877_v60 = vcombine.high %v2656_v35, %v2663_v36  ;;  %v2700_v1 = vcombine.low %v2691_v32, %v2699_v48 }
 0x522   : > { %v2436_v49 = vrot.slane %v2428_v42, %v7318_v39  ;;  %v2443_v52 = vrot.slane %v2429_v43, %v7318_v39  ;;  %v2921_v8 = vcombine.low %v2672_v45, %v2679_v46  ;;  %v2504_v25 = vrot.slane %v2496_v47, %v7318_v39 }
 0x523   : > { %v7363_v61 = vpop.permute.xlu1 %1713  ;;  %v7365_v0 = vpop.permute.xlu0 %1715  ;;  %v2511_v63 = vrot.slane %v2497_v53, %v7318_v39  ;;  %v2979_v10 = vrot.slane %v2700_v1, %v7327_v56  ;;  %v7378_v26 = vrot.slane %v5876_v44, %v7318_v39  ;;  %v5878_v27 = vcombine.high %v2672_v45, %v2679_v46 }
 0x524   : > { %v2444_v4 = vcombine.low %v2420_v22, %v2436_v49  ;;  %v2445_v6 = vcombine.high %v2420_v22, %v2436_v49  ;;  %v2460_v7 = vcombine.low %v2427_v29, %v2443_v52  ;;  %v2461_v9 = vcombine.high %v2427_v29, %v2443_v52 }
 0x525   : > { %v2512_v51 = vcombine.low %v2488_v30, %v2504_v25  ;;  %v2513_v20 = vcombine.high %v2488_v30, %v2504_v25  ;;  %v2528_v21 = vcombine.low %v2495_v31, %v2511_v63  ;;  %v2529_v28 = vcombine.high %v2495_v31, %v2511_v63 }
 0x526   : > { %v2452_v12 = vrot.slane %v2444_v4, %v7327_v56  ;;  %v2459_v14 = vrot.slane %v2445_v6, %v7327_v56  ;;  %v2468_v16 = vrot.slane %v2460_v7, %v7327_v56  ;;  %v2475_v18 = vrot.slane %v2461_v9, %v7327_v56 }
 0x527   : > { %v1729_v22 = vpop.permute.xlu1 %1728  ;;  %v1731_v55 = vpop.permute.xlu0 %1730  ;;  %v7381_v3 = vrot.slane %v2905_v59, %v7318_v39  ;;  %v7384_v29 = vrot.slane %v5877_v60, %v7318_v39  ;;  %v7387_v35 = vrot.slane %v2512_v51, %v7327_v56  ;;  %v7390_v36 = vrot.slane %v2513_v20, %v7327_v56 }
 0x528   : > { %v2701_v32 = vcombine.low %v2452_v12, %v2459_v14  ;;  %v5871_v30 = vcombine.high %v2452_v12, %v2459_v14  ;;  %v2717_v33 = vcombine.low %v2468_v16, %v2475_v18  ;;  %v5872_v34 = vcombine.high %v2468_v16, %v2475_v18 }
 0x529   : > { %v7393_v37 = vrot.slane %v2921_v8, %v7318_v39  ;;  %v7396_v31 = vrot.slane %v2979_v10, %v7318_v39  ;;  %v7399_v38 = vrot.slane %v2528_v21, %v7327_v56  ;;  %v7402_v40 = vrot.slane %v2529_v28, %v7327_v56 }
 0x52a   : > { %v7405_v42 = vrot.slane %v5878_v27, %v7318_v39  ;;  %v1758_v43 = vcombine.low %v7200_v50, %v1729_v22  ;;  %v1759_v44 = vcombine.high %v7200_v50, %v1729_v22  ;;  %v2869_v46 = vcombine.low %v7358_v57, %v7361_v23 }
 0x52b   : > { %v1746_v41 = vpop.permute.xlu0 %1745  ;;  %v1744_v45 = vpop.permute.xlu1 %1743  ;;  %v7412_v47 = vrot.slane %v2701_v32, %v7318_v39  ;;  %v7415_v48 = vrot.slane %v5871_v30, %v7318_v39  ;;  %v1826_v49 = vcombine.low %v7206_v54, %v1731_v55  ;;  %v1827_v52 = vcombine.high %v7206_v54, %v1731_v55 }
 0x52c   : > { %v7420_v53 = vrot.slane %v2717_v33, %v7318_v39  ;;  %v7423_v59 = vrot.slane %v5872_v34, %v7318_v39  ;;  %v2769_v50 = vcombine.low %v7387_v35, %v7390_v36  ;;  %v5873_v60 = vcombine.high %v7387_v35, %v7390_v36 }
 0x52d   : > { %v2785_v1 = vcombine.low %v7399_v38, %v7402_v40  ;;  %v1766_v4 = vrot.slane %v1758_v43, %v7318_v39  ;;  %v2994_v54 = vrot.slane %v7396_v31, %v7327_v56  ;;  %v1774_v6 = vcombine.low %v7363_v61, %v1744_v45 }
 0x52e   : > { %v1773_v7 = vrot.slane %v1759_v44, %v7318_v39  ;;  %v1775_v8 = vcombine.high %v7363_v61, %v1744_v45  ;;  %v1842_v9 = vcombine.low %v7365_v0, %v1746_v41  ;;  %v1843_v25 = vcombine.high %v7365_v0, %v1746_v41 }
 0x52f   : > { %v7439_v63 = vpop.permute.xlu0 %1719  ;;  %v1834_v10 = vrot.slane %v1826_v49, %v7318_v39  ;;  %v1841_v12 = vrot.slane %v1827_v52, %v7318_v39  ;;  %v3006_v14 = vpack.c.bf16 %v2994_v54, %v2994_v54  ;;  %v1782_v16 = vrot.slane %v1774_v6, %v7318_v39  ;;  %v7449_v55 = vpop.permute.xlu1 %1717 }
 0x530   : > { %v1789_v18 = vrot.slane %v1775_v8, %v7318_v39  ;;  %v1850_v51 = vrot.slane %v1842_v9, %v7318_v39  ;;  %v1857_v20 = vrot.slane %v1843_v25, %v7318_v39  ;;  %v3002_v61 = vcombine.high %v2994_v54, %v6725_v5 }
 0x531   : > { %v3687_v21 = vsel %vm3670_vm7, %v3006_v14, 0  ;;  %v1790_v0 = vcombine.low %v1766_v4, %v1782_v16  ;;  %v1791_v22 = vcombine.high %v1766_v4, %v1782_v16  ;;  %v2885_v27 = vcombine.low %v7375_v24, %v7378_v26 }
 0x532   : > { %6137 = vmatpush3.bf16.xpose.msra.mxu1 %v3687_v21  ;;  %v1806_v28 = vcombine.low %v1773_v7, %v1789_v18  ;;  %v1807_v32 = vcombine.high %v1773_v7, %v1789_v18  ;;  %v1858_v30 = vcombine.low %v1834_v10, %v1850_v51  ;;  %v1859_v33 = vcombine.high %v1834_v10, %v1850_v51 }
 0x533   : > { %v1798_v34 = vrot.slane %v1790_v0, %v7327_v56  ;;  %v1805_v41 = vrot.slane %v1791_v22, %v7327_v56  ;;  %v1874_v43 = vcombine.low %v1841_v12, %v1857_v20  ;;  %v1875_v44 = vcombine.high %v1841_v12, %v1857_v20  ;;  %6138 = vmatprep.subr.bf16.mxu1 %v6725_v5  ;;  %v7460_v54 = vpop.permute.xlu0 %1734  ;;  %v1733_v21 = vpop.permute.xlu1 %1732 }
 0x534   : > { %v1814_v45 = vrot.slane %v1806_v28, %v7327_v56  ;;  %v1821_v49 = vrot.slane %v1807_v32, %v7327_v56  ;;  %v1866_v52 = vrot.slane %v1858_v30, %v7327_v56  ;;  %v1873_v4 = vrot.slane %v1859_v33, %v7327_v56 }
 0x535   : > { %v2047_v6 = vcombine.low %v1798_v34, %v1805_v41  ;;  %v5863_v7 = vcombine.high %v1798_v34, %v1805_v41  ;;  %v1882_v8 = vrot.slane %v1874_v43, %v7327_v56  ;;  %v1889_v9 = vrot.slane %v1875_v44, %v7327_v56 }
 0x536   : > { %v2063_v25 = vcombine.low %v1814_v45, %v1821_v49  ;;  %v5864_v10 = vcombine.high %v1814_v45, %v1821_v49  ;;  %v2115_v12 = vcombine.low %v1866_v52, %v1873_v4  ;;  %v5865_v14 = vcombine.high %v1866_v52, %v1873_v4 }
 0x537   : > { %v2054_v16 = vrot.slane %v2047_v6, %v7318_v39  ;;  %v2062_v18 = vrot.slane %v5863_v7, %v7318_v39  ;;  %v2131_v51 = vcombine.low %v1882_v8, %v1889_v9  ;;  %v5866_v20 = vcombine.high %v1882_v8, %v1889_v9  ;;  %v1750_v52 = vpop.permute.xlu0 %1749 }
 0x538   : > { %v2070_v0 = vrot.slane %v2063_v25, %v7318_v39  ;;  %v2078_v22 = vrot.slane %v5864_v10, %v7318_v39  ;;  %v2122_v28 = vrot.slane %v2115_v12, %v7318_v39  ;;  %v2130_v32 = vrot.slane %v5865_v14, %v7318_v39 }
 0x539   : > { %v2079_v30 = vcombine.low %v2054_v16, %v2062_v18  ;;  %v2138_v33 = vrot.slane %v2131_v51, %v7318_v39  ;;  %v2146_v34 = vrot.slane %v5866_v20, %v7318_v39  ;;  %v3009_v41 = vpack.c.bf16 %v3002_v61, %v3002_v61 }
 0x53a   : > { %v5874_v43 = vcombine.high %v7399_v38, %v7402_v40  ;;  %v2080_v44 = vcombine.high %v2054_v16, %v2062_v18  ;;  %v2095_v45 = vcombine.low %v2070_v0, %v2078_v22  ;;  %v2096_v49 = vcombine.high %v2070_v0, %v2078_v22  ;;  %v1748_v18 = vpop.permute.xlu1 %1747 }
 0x53b   : > { %v2147_v4 = vcombine.low %v2122_v28, %v2130_v32  ;;  %v2148_v6 = vcombine.high %v2122_v28, %v2130_v32  ;;  %v2163_v7 = vcombine.low %v2138_v33, %v2146_v34  ;;  %v2164_v8 = vcombine.high %v2138_v33, %v2146_v34  ;;  %v7534_v28 = vpop.permute.xlu0 %1736 }
 0x53c   : > { %v7478_v9 = vrot.slane %v2769_v50, %v7318_v39  ;;  %v7481_v25 = vrot.slane %v2079_v30, %v7327_v56  ;;  %v7484_v61 = vrot.slane %v2095_v45, %v7327_v56  ;;  %v2937_v10 = vcombine.low %v7381_v3, %v7384_v29 }
 0x53d   : > { %v7492_v12 = vrot.slane %v5873_v60, %v7318_v39  ;;  %v3761_v14 = vsel %vm3670_vm7, %v3009_v41, 0  ;;  %v2877_v50 = vrot.slane %v2869_v46, %v7327_v56  ;;  %v2893_v16 = vrot.slane %v2885_v27, %v7327_v56 }
 0x53e   : > { %v7504_v51 = vrot.slane %v2785_v1, %v7318_v39  ;;  %v7507_v35 = vrot.slane %v5874_v43, %v7318_v39  ;;  %v7510_v36 = vrot.slane %v2080_v44, %v7327_v56  ;;  %v7513_v60 = vrot.slane %v2096_v49, %v7327_v56  ;;  %6155 = vmatpush3.bf16.xpose.msra.mxu0 %v3761_v14 }
 0x53f   : > { %v7516_v46 = vrot.slane %v2147_v4, %v7327_v56  ;;  %v7519_v27 = vrot.slane %v2148_v6, %v7327_v56  ;;  %v7522_v38 = vrot.slane %v2163_v7, %v7327_v56  ;;  %v7525_v40 = vrot.slane %v2164_v8, %v7327_v56  ;;  %6156 = vmatprep.subr.bf16.mxu0 %v6725_v5 }
 0x540   : > { %v2945_v20 = vrot.slane %v2937_v10, %v7327_v56  ;;  %v2953_v0 = vcombine.low %v7393_v37, %v7405_v42  ;;  %v1894_v22 = vcombine.low %v7214_v58, %v1733_v21  ;;  %v2901_v32 = vcombine.low %v2877_v50, %v2893_v16 }
 0x541   : > { %v1895_v30 = vcombine.high %v7214_v58, %v1733_v21  ;;  %v1962_v33 = vcombine.low %v7222_v62, %v7460_v54  ;;  %v1963_v34 = vcombine.high %v7222_v62, %v7460_v54  ;;  %v2902_v43 = vcombine.high %v2877_v50, %v2893_v16  ;;  %v7548_v21 = vpop.permute.xlu1 %1721 }
 0x542   : > { %v2961_v41 = vrot.slane %v2953_v0, %v7327_v56  ;;  %v1910_v44 = vcombine.low %v7449_v55, %v1748_v18  ;;  %v1911_v45 = vcombine.high %v7449_v55, %v1748_v18  ;;  %v1902_v49 = vrot.slane %v1894_v22, %v7318_v39 }
 0x543   : > { %v1909_v4 = vrot.slane %v1895_v30, %v7318_v39  ;;  %v1970_v6 = vrot.slane %v1962_v33, %v7318_v39  ;;  %v1978_v58 = vcombine.low %v7439_v63, %v1750_v52  ;;  %v1977_v10 = vrot.slane %v1963_v34, %v7318_v39  ;;  %v7557_v30 = vpop.permute.xlu0 %3023 }
 0x544   : > { %v2969_v7 = vcombine.low %v2945_v20, %v2961_v41  ;;  %v2970_v8 = vcombine.high %v2945_v20, %v2961_v41  ;;  %v1918_v62 = vrot.slane %v1910_v44, %v7318_v39  ;;  %v1925_v54 = vrot.slane %v1911_v45, %v7318_v39 }
 0x545   : > { %v1979_v55 = vcombine.high %v7439_v63, %v1750_v52  ;;  %v1986_v14 = vrot.slane %v1978_v58, %v7318_v39  ;;  %v2733_v50 = vcombine.low %v7412_v47, %v7415_v48 }
 0x546   : > { %v3005_v16 = vpack.c.bf16 %v2969_v7, %v2901_v32  ;;  %v3008_v18 = vpack.c.bf16 %v2970_v8, %v2902_v43  ;;  %v1926_v0 = vcombine.low %v1902_v49, %v1918_v62  ;;  %v1927_v22 = vcombine.high %v1902_v49, %v1918_v62 }
 0x547   : > { %v1942_v20 = vcombine.low %v1909_v4, %v1925_v54  ;;  %v1943_v33 = vcombine.high %v1909_v4, %v1925_v54  ;;  %v1993_v41 = vrot.slane %v1979_v55, %v7318_v39  ;;  %v1994_v44 = vcombine.low %v1970_v6, %v1986_v14  ;;  %v1752_v4 = vpop.permute.xlu1 %1751 }
 0x548   : > { %v3684_v34 = vsel %vm3670_vm7, %v3005_v16, 0  ;;  %v3758_v63 = vsel %vm3670_vm7, %v3008_v18, 0  ;;  %v1934_v52 = vrot.slane %v1926_v0, %v7327_v56  ;;  %v1941_v45 = vrot.slane %v1927_v22, %v7327_v56 }
 0x549   : > { %6139 = vmatpush3.bf16.xpose.msra.mxu1 %v3684_v34  ;;  %6157 = vmatpush3.bf16.xpose.msra.mxu0 %v3758_v63  ;;  %v1995_v49 = vcombine.high %v1970_v6, %v1986_v14  ;;  %v1950_v58 = vrot.slane %v1942_v20, %v7327_v56  ;;  %v1957_v7 = vrot.slane %v1943_v33, %v7327_v56  ;;  %v7583_v20 = vpop.permute.xlu0 %3027 }
 0x54a   : > { %v2010_v8 = vcombine.low %v1977_v10, %v1993_v41  ;;  %6140 = vmatprep.subr.bf16.mxu1 %v6725_v5  ;;  %v2749_v62 = vcombine.low %v7420_v53, %v7423_v59  ;;  %v2183_v54 = vcombine.low %v1934_v52, %v1941_v45  ;;  %v2002_v55 = vrot.slane %v1994_v44, %v7327_v56 }
 0x54b   : > { %v2009_v16 = vrot.slane %v1995_v49, %v7327_v56  ;;  %v2011_v18 = vcombine.high %v1977_v10, %v1993_v41  ;;  %6158 = vmatprep.subr.bf16.mxu0 %v6725_v5  ;;  %v2179_v14 = vcombine.low %v7516_v46, %v7522_v38  ;;  %v2180_v0 = vcombine.high %v7516_v46, %v7522_v38 }
 0x54c   : > { %v2741_v22 = vrot.slane %v2733_v50, %v7327_v56  ;;  %v5867_v44 = vcombine.high %v1934_v52, %v1941_v45  ;;  %v2018_v10 = vrot.slane %v2010_v8, %v7327_v56  ;;  %v2199_v34 = vcombine.low %v1950_v58, %v1957_v7  ;;  %v7599_v8 = vpop.permute.xlu1 %3021 }
 0x54d   : > { %v2025_v41 = vrot.slane %v2011_v18, %v7327_v56  ;;  %v2757_v63 = vrot.slane %v2749_v62, %v7327_v56  ;;  %v2801_v49 = vcombine.low %v7478_v9, %v7492_v12  ;;  %v2817_v46 = vcombine.low %v7504_v51, %v7507_v35  ;;  %8548 = vst [vmem:[#allocation17_spill] sm:$0xff] %v7599_v8 }
 0x54e   : > { %v7597_v50 = vrot.slane %v2183_v54, %v7318_v39  ;;  %v5868_v52 = vcombine.high %v1950_v58, %v1957_v7  ;;  %v2251_v45 = vcombine.low %v2002_v55, %v2009_v16  ;;  %v5869_v18 = vcombine.high %v2002_v55, %v2009_v16  ;;  %v3043_v16 = vpop.permute.xlu0 %3042 }
 0x54f   : > { %v2765_v6 = vcombine.low %v2741_v22, %v2757_v63  ;;  %v2809_v62 = vrot.slane %v2801_v49, %v7327_v56  ;;  %v2825_v33 = vrot.slane %v2817_v46, %v7327_v56  ;;  %v7604_v43 = vrot.slane %v5867_v44, %v7318_v39 }
 0x550   : > { %v2267_v32 = vcombine.low %v2018_v10, %v2025_v41  ;;  %v2030_v38 = vcombine.low %v7230_v2, %v7534_v28  ;;  %v2766_v1 = vcombine.high %v2741_v22, %v2757_v63  ;;  %v7609_v54 = vrot.slane %v2199_v34, %v7318_v39  ;;  %v7629_v63 = vpop.permute.xlu1 %3025 }
 0x551   : > { %v2833_v58 = vcombine.low %v2809_v62, %v2825_v33  ;;  %v2834_v7 = vcombine.high %v2809_v62, %v2825_v33  ;;  %v2038_v55 = vcombine.low %v7548_v21, %v1752_v4  ;;  %v7613_v49 = vrot.slane %v5868_v52, %v7318_v39 }
 0x552   : > { %v7616_v46 = vrot.slane %v2251_v45, %v7318_v39  ;;  %v5870_v44 = vcombine.high %v2018_v10, %v2025_v41  ;;  %v2987_v8 = vcombine.high %v7396_v31, %v6725_v5  ;;  %v7621_v2 = vrot.slane %v5869_v18, %v7318_v39 }
 0x553   : > { %v3004_v28 = vpack.c.bf16 %v2833_v58, %v2765_v6  ;;  %v3007_v22 = vpack.c.bf16 %v2834_v7, %v2766_v1  ;;  %v2045_v33 = vrot.slane %v2038_v55, %v7318_v39  ;;  %v7625_v21 = vrot.slane %v2267_v32, %v7318_v39 }
 0x554   : > { %v2037_v4 = vrot.slane %v2030_v38, %v7318_v39  ;;  %v3001_v34 = vrot.slane %v2987_v8, %v7327_v56  ;;  %v2870_v10 = vcombine.high %v7358_v57, %v7361_v23  ;;  %v3270_v1 = vcombine.low %v7260_v17, %v3043_v16  ;;  %v3058_v8 = vpop.permute.xlu0 %3057 }
 0x555   : > { %v3681_v31 = vsel %vm3670_vm7, %v3004_v28, 0  ;;  %v3755_v41 = vsel %vm3670_vm7, %v3007_v22, 0  ;;  %v2886_v6 = vcombine.high %v7375_v24, %v7378_v26  ;;  %v3271_v52 = vcombine.high %v7260_v17, %v3043_v16  ;;  %v3041_v16 = vpop.permute.xlu1 %3040 }
 0x556   : > { %6141 = vmatpush3.bf16.xpose.msra.mxu1 %v3681_v31  ;;  %6159 = vmatpush3.bf16.xpose.msra.mxu0 %v3755_v41  ;;  %v2046_v32 = vcombine.low %v2037_v4, %v2045_v33  ;;  %v3003_v38 = vcombine.high %v3001_v34, %v6725_v5  ;;  %v3012_v45 = vpack.c.bf16 %v3001_v34, %v3001_v34 }
 0x557   : > { %6172 = vmatprep.subr.bf16.mxu1 %v6725_v5  ;;  %6190 = vmatprep.subr.bf16.mxu0 %v6725_v5  ;;  %v2938_v57 = vcombine.high %v7381_v3, %v7384_v29  ;;  %v2954_v23 = vcombine.high %v7393_v37, %v7405_v42  ;;  %v7647_v24 = vrot.slane %v5870_v44, %v7318_v39 }
 0x558   : > { %v8549_v26 = vcombine.low %v7481_v25, %v7484_v61  ;;  %v8550_v17 = vcombine.high %v7481_v25, %v7484_v61  ;;  %v2884_v58 = vrot.slane %v2870_v10, %v7327_v56  ;;  %v3015_v7 = vpack.c.bf16 %v3003_v38, %v3003_v38 }
 0x559   : > { %v2900_v3 = vrot.slane %v2886_v6, %v7327_v56  ;;  %v2952_v29 = vrot.slane %v2938_v57, %v7327_v56  ;;  %v2968_v37 = vrot.slane %v2954_v23, %v7327_v56  ;;  %v3278_v42 = vrot.slane %v3270_v1, %v7318_v39 }
 0x55a   : > { %v2350_v18 = vpack.c.bf16 %v2179_v14, %v8549_v26  ;;  %v2353_v62 = vpack.c.bf16 %v2180_v0, %v8550_v17  ;;  %v3285_v55 = vrot.slane %v3271_v52, %v7318_v39  ;;  %v3286_v14 = vcombine.low %v7583_v20, %v3058_v8 }
 0x55b   : > { %v3287_v44 = vcombine.high %v7583_v20, %v3058_v8  ;;  %v2325_v25 = vrot.slane %v2046_v32, %v7327_v56  ;;  %v3835_v61 = vsel %vm3670_vm7, %v3012_v45, 0  ;;  %v2971_v0 = vcombine.low %v2952_v29, %v2968_v37 }
 0x55c   : > { %v2215_v28 = vcombine.low %v7597_v50, %v7604_v43  ;;  %v3294_v22 = vrot.slane %v3286_v14, %v7318_v39  ;;  %v2231_v4 = vcombine.low %v7609_v54, %v7613_v49  ;;  %v2283_v34 = vcombine.low %v7616_v46, %v7621_v2 }
 0x55d   : > { %v3301_v33 = vrot.slane %v3287_v44, %v7318_v39  ;;  %6143 = vmatmul.mubr.msk.bf16.vlgmr.msra.gmra.mxu1 %vm3670_vm7, %v2350_v18  ;;  %6161 = vmatmul.mubr.msk.bf16.vlgmr.msra.gmra.mxu0 %vm3670_vm7, %v2353_v62  ;;  %v3909_v20 = vsel %vm3670_vm7, %v3015_v7, 0  ;;  %v2903_v10 = vcombine.low %v2884_v58, %v2900_v3  ;;  %v2299_v41 = vcombine.low %v7625_v21, %v7647_v24  ;;  %v3056_v18 = vpop.permute.xlu1 %3055 }
 0x55e   : > { %v2223_v31 = vrot.slane %v2215_v28, %v7327_v56  ;;  %6173 = vmatpush3.bf16.xpose.msra.mxu1 %v3835_v61  ;;  %6191 = vmatpush3.bf16.xpose.msra.mxu0 %v3909_v20  ;;  %v3202_v1 = vcombine.low %v7254_v15, %v3041_v16  ;;  %v3302_v6 = vcombine.low %v3278_v42, %v3294_v22 }
 0x55f   : > { %v3303_v32 = vcombine.high %v3278_v42, %v3294_v22  ;;  %6174 = vmatprep.subr.bf16.mxu1 %v6725_v5  ;;  %6146 = vmatprep.mubr.msk.bf16.mxu1 %vm6726_vm6, %v6725_v5  ;;  %v3203_v38 = vcombine.high %v7254_v15, %v3041_v16  ;;  %v2239_v52 = vrot.slane %v2231_v4, %v7327_v56 }
 0x560   : > { %v2291_v45 = vrot.slane %v2283_v34, %v7327_v56  ;;  %6164 = vmatprep.mubr.msk.bf16.mxu0 %vm6726_vm6, %v6725_v5  ;;  %v3011_v57 = vpack.c.bf16 %v2971_v0, %v2903_v10  ;;  %v3318_v23 = vcombine.low %v3285_v55, %v3301_v33  ;;  %v3319_v8 = vcombine.high %v3285_v55, %v3301_v33 }
 0x561   : > { %v2307_v26 = vrot.slane %v2299_v41, %v7327_v56  ;;  %v7690_v17 = vrot.slane %v3302_v6, %v7327_v56  ;;  %v7693_v62 = vrot.slane %v3303_v32, %v7327_v56  ;;  %v2247_v15 = vcombine.low %v2223_v31, %v2239_v52  ;;  %6192 = vmatprep.subr.bf16.mxu0 %v6725_v5  ;;  %v3045_v6 = vpop.permute.xlu1 %3044 }
 0x562   : > { %v2248_v7 = vcombine.high %v2223_v31, %v2239_v52  ;;  %v7697_v42 = vrot.slane %v2325_v25, %v7318_v39  ;;  %v3210_v16 = vrot.slane %v3202_v1, %v7318_v39  ;;  %v3217_v44 = vrot.slane %v3203_v38, %v7318_v39 }
 0x563   : > { %v2315_v14 = vcombine.low %v2291_v45, %v2307_v26  ;;  %v2316_v55 = vcombine.high %v2291_v45, %v2307_v26  ;;  %v2904_v61 = vcombine.high %v2884_v58, %v2900_v3  ;;  %v2972_v0 = vcombine.high %v2952_v29, %v2968_v37 }
 0x564   : > { %v3218_v28 = vcombine.low %v7629_v63, %v3056_v18  ;;  %v3832_v22 = vsel %vm3670_vm7, %v3011_v57, 0  ;;  %v7704_v33 = vrot.slane %v3318_v23, %v7327_v56  ;;  %v7707_v25 = vrot.slane %v3319_v8, %v7327_v56 }
 0x565   : > { %v2351_v4 = vpack.c.bf16 %v2315_v14, %v2247_v15  ;;  %v2354_v34 = vpack.c.bf16 %v2316_v55, %v2248_v7  ;;  %v3559_v20 = vcombine.low %v7690_v17, %v7693_v62  ;;  %v3014_v10 = vpack.c.bf16 %v2972_v0, %v2904_v61 }
 0x566   : > { %v3219_v31 = vcombine.high %v7629_v63, %v3056_v18  ;;  %6175 = vmatpush3.bf16.xpose.msra.mxu1 %v3832_v22  ;;  %v3226_v58 = vrot.slane %v3218_v28, %v7318_v39  ;;  %v2734_v3 = vcombine.high %v7412_v47, %v7415_v48  ;;  %v2750_v29 = vcombine.high %v7420_v53, %v7423_v59 }
 0x567   : > { %6165 = vmatmul.mubr.msk.bf16.gmra.mxu0 %vm3670_vm7, %v2354_v34  ;;  %6147 = vmatmul.mubr.msk.bf16.gmra.mxu1 %vm3670_vm7, %v2351_v4  ;;  %v3906_v37 = vsel %vm3670_vm7, %v3014_v10, 0  ;;  %v2802_v63 = vcombine.high %v7478_v9, %v7492_v12  ;;  %v2818_v1 = vcombine.high %v7504_v51, %v7507_v35  ;;  %v3338_v52 = vcombine.low %v7266_v19, %v3045_v6  ;;  %v3030_v10 = vpop.permute.xlu0 %3029 }
 0x568   : > { %v3233_v41 = vrot.slane %v3219_v31, %v7318_v39  ;;  %6176 = vmatprep.subr.bf16.mxu1 %v6725_v5  ;;  %6193 = vmatpush3.bf16.xpose.msra.mxu0 %v3906_v37  ;;  %v3234_v47 = vcombine.low %v3210_v16, %v3226_v58  ;;  %v3235_v48 = vcombine.high %v3210_v16, %v3226_v58 }
 0x569   : > { %6150 = vmatprep.mubr.msk.bf16.mxu1 %vm6726_vm6, %v6725_v5  ;;  %v2748_v53 = vrot.slane %v2734_v3, %v7327_v56  ;;  %6168 = vmatprep.mubr.msk.bf16.mxu0 %vm6726_vm6, %v6725_v5  ;;  %v2764_v38 = vrot.slane %v2750_v29, %v7327_v56  ;;  %v2816_v9 = vrot.slane %v2802_v63, %v7327_v56 }
 0x56a   : > { %v3250_v59 = vcombine.low %v3217_v44, %v3233_v41  ;;  %v3251_v32 = vcombine.high %v3217_v44, %v3233_v41  ;;  %v3242_v12 = vrot.slane %v3234_v47, %v7327_v56  ;;  %v3249_v51 = vrot.slane %v3235_v48, %v7327_v56  ;;  %6194 = vmatprep.subr.bf16.mxu0 %v6725_v5  ;;  %v3060_v44 = vpop.permute.xlu1 %3059 }
 0x56b   : > { %v2832_v35 = vrot.slane %v2818_v1, %v7327_v56  ;;  %v2767_v23 = vcombine.low %v2748_v53, %v2764_v38  ;;  %v2340_v8 = vrot.slane %v7697_v42, %v7327_v56  ;;  %v5885_v26 = vcombine.high %v7690_v17, %v7693_v62 }
 0x56c   : > { %v3258_v45 = vrot.slane %v3250_v59, %v7327_v56  ;;  %v3265_v57 = vrot.slane %v3251_v32, %v7327_v56  ;;  %v3491_v18 = vcombine.low %v3242_v12, %v3249_v51  ;;  %v5883_v15 = vcombine.high %v3242_v12, %v3249_v51 }
 0x56d   : > { %v2835_v7 = vcombine.low %v2816_v9, %v2832_v35  ;;  %v3575_v16 = vcombine.low %v7704_v33, %v7707_v25  ;;  %v2352_v14 = vpack.c.bf16 %v2340_v8, %v2340_v8  ;;  %v2348_v55 = vcombine.high %v2340_v8, %v6725_v5 }
 0x56e   : > { %v3507_v19 = vcombine.low %v3258_v45, %v3265_v57  ;;  %v5886_v61 = vcombine.high %v7704_v33, %v7707_v25  ;;  %v3345_v28 = vrot.slane %v3338_v52, %v7318_v39  ;;  %v2768_v22 = vcombine.high %v2748_v53, %v2764_v38 }
 0x56f   : > { %v3010_v0 = vpack.c.bf16 %v2835_v7, %v2767_v23  ;;  %v7751_v4 = vrot.slane %v3491_v18, %v7318_v39  ;;  %v5884_v34 = vcombine.high %v3258_v45, %v3265_v57  ;;  %6151 = vmatmul.mubr.msk.bf16.gmra.mxu1 %vm3670_vm7, %v2352_v14  ;;  %v2355_v31 = vpack.c.bf16 %v2348_v55, %v2348_v55 }
 0x570   : > { %v2836_v58 = vcombine.high %v2816_v9, %v2832_v35  ;;  %v3506_v3 = vrot.slane %v5883_v15, %v7318_v39  ;;  %v3514_v29 = vrot.slane %v3507_v19, %v7318_v39  ;;  %v3346_v33 = vcombine.low %v3030_v10, %v3060_v44  ;;  %6178 = vmatprep.mubr.msk.bf16.mxu1 %vm6726_vm6, %v6725_v5 }
 0x571   : > { %v3829_v37 = vsel %vm3670_vm7, %v3010_v0, 0  ;;  %6169 = vmatmul.mubr.msk.bf16.gmra.mxu0 %vm3670_vm7, %v2355_v31  ;;  %v2216_v41 = vcombine.high %v7597_v50, %v7604_v43  ;;  %v2232_v63 = vcombine.high %v7609_v54, %v7613_v49  ;;  %v2284_v6 = vcombine.high %v7616_v46, %v7621_v2 }
 0x572   : > { %6177 = vmatpush3.bf16.xpose.msra.mxu1 %v3829_v37  ;;  %v3013_v25 = vpack.c.bf16 %v2836_v58, %v2768_v22  ;;  %v3353_v1 = vrot.slane %v3346_v33, %v7318_v39  ;;  %6196 = vmatprep.mubr.msk.bf16.mxu0 %vm6726_vm6, %v6725_v5  ;;  %v2300_v47 = vcombine.high %v7625_v21, %v7647_v24 }
 0x573   : > { %6208 = vmatprep.subr.bf16.mxu1 %v6725_v5  ;;  %v3522_v48 = vrot.slane %v5884_v34, %v7318_v39  ;;  %v2230_v50 = vrot.slane %v2216_v41, %v7327_v56  ;;  %v2246_v54 = vrot.slane %v2232_v63, %v7327_v56  ;;  %v2333_v49 = vcombine.high %v7697_v42, %v6725_v5 }
 0x574   : > { %v3903_v43 = vsel %vm3670_vm7, %v3013_v25, 0  ;;  %v3354_v53 = vcombine.low %v3345_v28, %v3353_v1  ;;  %v2298_v46 = vrot.slane %v2284_v6, %v7327_v56  ;;  %v2314_v2 = vrot.slane %v2300_v47, %v7327_v56 }
 0x575   : > { %6195 = vmatpush3.bf16.xpose.msra.mxu0 %v3903_v43  ;;  %v3566_v21 = vrot.slane %v3559_v20, %v7318_v39  ;;  %v3574_v24 = vrot.slane %v5885_v26, %v7318_v39  ;;  %v3582_v59 = vrot.slane %v3575_v16, %v7318_v39  ;;  %v3590_v32 = vrot.slane %v5886_v61, %v7318_v39 }
 0x576   : > { %6226 = vmatprep.subr.bf16.mxu0 %v6725_v5  ;;  %v3633_v42 = vrot.slane %v3354_v53, %v7327_v56  ;;  %v8551_v38 = vcombine.low %v7510_v36, %v7513_v60  ;;  %v8552_v9 = vcombine.low %v7519_v27, %v7525_v40  ;;  %v2249_v51 = vcombine.low %v2230_v50, %v2246_v54 }
 0x577   : > { %v3523_v17 = vcombine.low %v7751_v4, %v3506_v3  ;;  %v2317_v62 = vcombine.low %v2298_v46, %v2314_v2  ;;  %v2250_v20 = vcombine.high %v2230_v50, %v2246_v54  ;;  %v2318_v35 = vcombine.high %v2298_v46, %v2314_v2 }
 0x578   : > { %v2356_v12 = vpack.c.bf16 %v8552_v9, %v8551_v38  ;;  %v3539_v52 = vcombine.low %v3514_v29, %v3522_v48  ;;  %v3640_v45 = vrot.slane %v3633_v42, %v7318_v39  ;;  %v8553_v57 = vcombine.high %v7510_v36, %v7513_v60 }
 0x579   : > { %v8554_v23 = vcombine.high %v7519_v27, %v7525_v40  ;;  %v6732_v26 = vmov 0   ;;  %v3524_v15 = vcombine.high %v7751_v4, %v3506_v3  ;;  %v2347_v7 = vrot.slane %v2333_v49, %v7327_v56 }
 0x57a   : > { %6179 = vmatmul.mubr.msk.bf16.vlgmr.msra.gmra.mxu1 %vm3670_vm7, %v2356_v12  ;;  %v4212_v18 = vsel %vm4210_vm8, 65535, %v6732_v26  ;;  %v3591_v16 = vcombine.low %v3566_v21, %v3574_v24  ;;  %v3607_v19 = vcombine.low %v3582_v59, %v3590_v32  ;;  %v3540_v14 = vcombine.high %v3514_v29, %v3522_v48 }
 0x57b   : > { %v2359_v8 = vpack.c.bf16 %v8554_v23, %v8553_v57  ;;  %6182 = vmatprep.mubr.msk.bf16.mxu1 %vm6726_vm6, %v6725_v5  ;;  %v3641_v55 = vcombine.high %v3640_v45, %v6725_v5  ;;  %v3648_v36 = vrot.slane %v3640_v45, %v7327_v56  ;;  %v3531_v60 = vrot.slane %v3523_v17, %v7327_v56 }
 0x57c   : > { %v3592_v27 = vcombine.high %v3566_v21, %v3574_v24  ;;  %v2357_v40 = vpack.c.bf16 %v2317_v62, %v2249_v51  ;;  %v2360_v44 = vpack.c.bf16 %v2318_v35, %v2250_v20  ;;  %v3547_v61 = vrot.slane %v3539_v52, %v7327_v56 }
 0x57d   : > { %6197 = vmatmul.mubr.msk.bf16.vlgmr.msra.gmra.mxu0 %vm3670_vm7, %v2359_v8  ;;  %v3538_v0 = vrot.slane %v3524_v15, %v7327_v56  ;;  %v3660_v28 = vpack.c.bf16 %v3648_v36, %v3648_v36  ;;  %v3656_v22 = vcombine.high %v3648_v36, %v6725_v5  ;;  %v3655_v4 = vrot.slane %v3641_v55, %v7327_v56 }
 0x57e   : > { %6200 = vmatprep.mubr.msk.bf16.mxu0 %vm6726_vm6, %v6725_v5  ;;  %v3554_v34 = vrot.slane %v3540_v14, %v7327_v56  ;;  %v3599_v10 = vrot.slane %v3591_v16, %v7327_v56  ;;  %v3615_v31 = vrot.slane %v3607_v19, %v7327_v56  ;;  %v3606_v58 = vrot.slane %v3592_v27, %v7327_v56 }
 0x57f   : > { %v3608_v3 = vcombine.high %v3582_v59, %v3590_v32  ;;  %v4214_v29 = vand.u32 %v4212_v18, %v3660_v28  ;;  %v3663_v37 = vpack.c.bf16 %v3656_v22, %v3656_v22  ;;  %v3666_v33 = vpack.c.bf16 %v3655_v4, %v3655_v4 }
 0x580   : > { %v3657_v25 = vcombine.high %v3655_v4, %v6725_v5  ;;  %v3555_v41 = vcombine.low %v3531_v60, %v3547_v61  ;;  %v3557_v63 = vcombine.low %v3538_v0, %v3554_v34  ;;  %v3558_v6 = vcombine.high %v3538_v0, %v3554_v34 }
 0x581   : > { %v3622_v1 = vrot.slane %v3608_v3, %v7327_v56  ;;  %v4282_v47 = vand.u32 %v4212_v18, %v3663_v37  ;;  %v3556_v48 = vcombine.high %v3531_v60, %v3547_v61  ;;  %v7826_v43 = vand.u32 %v4212_v18, %v3666_v33  ;;  %6209 = vmatpush3.bf16.msra.mxu1 %v4214_v29 }
 0x582   : > { %6183 = vmatmul.mubr.msk.bf16.gmra.mxu1 %vm3670_vm7, %v2357_v40  ;;  %v3669_v50 = vpack.c.bf16 %v3657_v25, %v3657_v25  ;;  %v3623_v54 = vcombine.low %v3599_v10, %v3615_v31  ;;  %6210 = vmatprep.subr.bf16.mxu1 %v6725_v5  ;;  %v3624_v46 = vcombine.high %v3599_v10, %v3615_v31 }
 0x583   : > { %6186 = vmatprep.mubr.msk.bf16.mxu1 %vm6726_vm6, %v6725_v5  ;;  %v3625_v49 = vcombine.low %v3606_v58, %v3622_v1  ;;  %v3626_v53 = vcombine.high %v3606_v58, %v3622_v1  ;;  %6227 = vmatpush3.bf16.msra.mxu0 %v4282_v47  ;;  %v2349_v42 = vcombine.high %v2347_v7, %v6725_v5 }
 0x584   : > { %v7831_v2 = vand.u32 %v4212_v18, %v3669_v50  ;;  %v3659_v21 = vpack.c.bf16 %v3623_v54, %v3555_v41  ;;  %6228 = vmatprep.subr.bf16.mxu0 %v6725_v5  ;;  %v3662_v32 = vpack.c.bf16 %v3624_v46, %v3556_v48  ;;  %v2358_v38 = vpack.c.bf16 %v2347_v7, %v2347_v7 }
 0x585   : > { %6201 = vmatmul.mubr.msk.bf16.gmra.mxu0 %vm3670_vm7, %v2360_v44  ;;  %v7835_v24 = vpack.c.bf16 %v3625_v49, %v3557_v63  ;;  %v7837_v59 = vpack.c.bf16 %v3626_v53, %v3558_v6  ;;  %v2361_v9 = vpack.c.bf16 %v2349_v42, %v2349_v42 }
 0x586   : > { %6204 = vmatprep.mubr.msk.bf16.mxu0 %vm6726_vm6, %v6725_v5  ;;  %6211 = vmatpush3.bf16.msra.mxu1 %v3659_v21 }
 0x587   : > { %6229 = vmatpush3.bf16.msra.mxu0 %v3662_v32  ;;  %6212 = vmatprep.subr.bf16.mxu1 %v6725_v5 }
 0x588   : > { %6230 = vmatprep.subr.bf16.mxu0 %v6725_v5 }
 0x58a   : > { %6187 = vmatmul.mubr.msk.bf16.gmra.mxu1 %vm3670_vm7, %v2358_v38 }
 0x58b   : > { %6214 = vmatprep.mubr.msk.bf16.mxu1 %vm6726_vm6, %v6725_v5 }
 0x58d   : > { %6205 = vmatmul.mubr.msk.bf16.gmra.mxu0 %vm3670_vm7, %v2361_v9 }
 0x58e   : > { %6232 = vmatprep.mubr.msk.bf16.mxu0 %vm6726_vm6, %v6725_v5 }
 0x61d   : > { %v7850_v12 = vpop.f32.mrf.mxu1  ;;  %v7852_v51 = vpop.f32.mrf.mxu0 }
 0x61e   : > { %v3968_v17 = vsel %vm3967_vm9, %v7850_v12, -inf  ;;  %v3984_v57 = vsel %vm3967_vm9, %v7852_v51, -inf }
 0x61f   : > { %v6144_v62 = vpop.f32.mrf.mxu1  ;;  %3969 = vmax.xlane.f32.xlu0 %v3968_v17  ;;  %v6162_v20 = vpop.f32.mrf.mxu0 }
 0x621   : > { %v7856_v35 = vpop.f32.mrf.mxu1  ;;  %v7858_v52 = vpop.f32.mrf.mxu0 }
 0x622   : > { %v3971_v45 = vsel %vm3967_vm9, %v7856_v35, -inf  ;;  %v3987_v26 = vsel %vm3967_vm9, %v7858_v52, -inf }
 0x623   : > { %v6145_v23 = vpop.f32.mrf.mxu1  ;;  %3972 = vmax.xlane.f32.xlu1 %v3971_v45  ;;  %3985 = vmax.xlane.f32.xlu0 %v3984_v57  ;;  %v6163_v8 = vpop.f32.mrf.mxu0 }
 0x627   : > { %v7866_v18 = vpop.f32.mrf.mxu0  ;;  %v7868_v15 = vpop.f32.mrf.mxu1  ;;  %3988 = vmax.xlane.f32.xlu0 %v3987_v26 }
 0x628   : > { %v3974_v19 = vsel %vm3967_vm9, %v7868_v15, -inf  ;;  %v3990_v40 = vsel %vm3967_vm9, %v7866_v18, -inf }
 0x629   : > { %v6166_v7 = vpop.f32.mrf.mxu0  ;;  %v6148_v16 = vpop.f32.mrf.mxu1 }
 0x62b   : > { %v7872_v14 = vpop.f32.mrf.mxu0  ;;  %v7874_v55 = vpop.f32.mrf.mxu1  ;;  %3975 = vmax.xlane.f32.xlu0 %v3974_v19 }
 0x62c   : > { %v3977_v36 = vsel %vm3967_vm9, %v7874_v55, -inf  ;;  %v3993_v61 = vsel %vm3967_vm9, %v7872_v14, -inf }
 0x62d   : > { %v6167_v60 = vpop.f32.mrf.mxu0  ;;  %v6149_v27 = vpop.f32.mrf.mxu1  ;;  %3978 = vmax.xlane.f32.xlu1 %v3977_v36 }
 0x62f   : > { %v7880_v44 = vpop.f32.mrf.mxu1  ;;  %3991 = vmax.xlane.f32.xlu0 %v3990_v40 }
 0x630   : > { %v3981_v20 = vsel %vm3980_vm10, %v7880_v44, -inf }
 0x631   : > { %v7884_v0 = vpop.f32.mrf.mxu0  ;;  %v6152_v28 = vpop.f32.mrf.mxu1  ;;  %3994 = vmax.xlane.f32.xlu1 %v3993_v61 }
 0x632   : > { %v3996_v45 = vsel %vm3980_vm10, %v7884_v0, -inf }
 0x633   : > { %v6170_v22 = vpop.f32.mrf.mxu0  ;;  %v3742_v4 = vpop.f32.mrf.mxu1 }
 0x635   : > { %v3816_v34 = vpop.f32.mrf.mxu0  ;;  %v6153_v10 = vpop.f32.mrf.mxu1 }
 0x637   : > { %v6171_v31 = vpop.f32.mrf.mxu0 }
 0x63a   : > { %v7886_v58 = vpop.f32.mrf.mxu1 }
 0x63b   : > { %v3999_v57 = vsel %vm3967_vm9, %v7886_v58, -inf }
 0x63c   : > { %v6180_v3 = vpop.f32.mrf.mxu1 }
 0x63d   : > { %v7888_v29 = vpop.f32.mrf.mxu0 }
 0x63e   : > { %v7890_v37 = vpop.f32.mrf.mxu1  ;;  %v4014_v8 = vsel %vm3967_vm9, %v7888_v29, -inf }
 0x63f   : > { %v6198_v33 = vpop.f32.mrf.mxu0  ;;  %v4002_v23 = vsel %vm3967_vm9, %v7890_v37, -inf }
 0x640   : > { %v6181_v25 = vpop.f32.mrf.mxu1 }
 0x641   : > { %v7892_v41 = vpop.f32.mrf.mxu0 }
 0x642   : > { %v7894_v63 = vpop.f32.mrf.mxu1  ;;  %3036 = vrot.lane.b32.xlu1 %v7242_v11, %s6728_s4  ;;  %v4017_v26 = vsel %vm3967_vm9, %v7892_v41, -inf }
 0x643   : > { %v6199_v1 = vpop.f32.mrf.mxu0  ;;  %v4005_v7 = vsel %vm3967_vm9, %v7894_v63, -inf }
 0x644   : > { %v6184_v6 = vpop.f32.mrf.mxu1 }
 0x645   : > { %v7898_v47 = vpop.f32.mrf.mxu0  ;;  %3038 = vrot.lane.b32.xlu0 %v7248_v13, %s6728_s4 }
 0x646   : > { %v7900_v48 = vpop.f32.mrf.mxu1  ;;  %v4020_v19 = vsel %vm3967_vm9, %v7898_v47, -inf }
 0x647   : > { %v6202_v50 = vpop.f32.mrf.mxu0  ;;  %v4008_v16 = vsel %vm3967_vm9, %v7900_v48, -inf }
 0x648   : > { %v6185_v54 = vpop.f32.mrf.mxu1 }
 0x649   : > { %v7904_v49 = vpop.f32.mrf.mxu0 }
 0x64a   : > { %v7906_v53 = vpop.f32.mrf.mxu1  ;;  %v4023_v36 = vsel %vm3967_vm9, %v7904_v49, -inf }
 0x64b   : > { %v6203_v46 = vpop.f32.mrf.mxu0  ;;  %v4011_v60 = vsel %vm3980_vm10, %v7906_v53, -inf }
 0x64c   : > { %v6188_v21 = vpop.f32.mrf.mxu1 }
 0x64d   : > { %v7908_v32 = vpop.f32.mrf.mxu0 }
 0x64e   : > { %v3890_v42 = vpop.f32.mrf.mxu1  ;;  %v4026_v27 = vsel %vm3980_vm10, %v7908_v32, -inf }
 0x64f   : > { %v6206_v38 = vpop.f32.mrf.mxu0 }
 0x650   : > { %v6189_v9 = vpop.f32.mrf.mxu1 }
 0x651   : > { %v3964_v17 = vpop.f32.mrf.mxu0 }
 0x653   : > { %v6207_v62 = vpop.f32.mrf.mxu0 }
 0x664   : > { %3982 = vmax.xlane.f32.xlu0 %v3981_v20 }
 0x666   : > { %3997 = vmax.xlane.f32.xlu1 %v3996_v45 }
 0x668   : > { %4000 = vmax.xlane.f32.xlu0 %v3999_v57 }
 0x66a   : > { %4003 = vmax.xlane.f32.xlu1 %v4002_v23 }
 0x66c   : > { %4015 = vmax.xlane.f32.xlu0 %v4014_v8 }
 0x66e   : > { %4018 = vmax.xlane.f32.xlu1 %v4017_v26 }
 0x670   : > { %4006 = vmax.xlane.f32.xlu0 %v4005_v7 }
 0x672   : > { %4009 = vmax.xlane.f32.xlu1 %v4008_v16 }
 0x674   : > { %4021 = vmax.xlane.f32.xlu0 %v4020_v19 }
 0x676   : > { %4024 = vmax.xlane.f32.xlu1 %v4023_v36 }
 0x678   : > { %4012 = vmax.xlane.f32.xlu0 %v4011_v60 }
 0x67a   : > { %4027 = vmax.xlane.f32.xlu1 %v4026_v27 }
 0x6a8   : > { %v3970_v40 = vpop.xlane.xlu0 %3969 }
 0x6a9   : > { %v4029_v61 = vsub.f32 %v7850_v12, %v3970_v40 }
 0x6ab   : > { %v4049_v28 = vmul.f32 1.442695, %v4029_v61 }
 0x6ac   : > { %v3973_v22 = vpop.xlane.xlu1 %3972  ;;  %v3986_v4 = vpop.xlane.xlu0 %3985 }
 0x6ad   : > { %6522 = vpow2.f32 %v4049_v28  ;;  %v4030_v34 = vsub.f32 %v7856_v35, %v3973_v22  ;;  %v4034_v10 = vsub.f32 %v7852_v51, %v3986_v4 }
 0x6af   : > { %v4051_v31 = vmul.f32 1.442695, %v4030_v34  ;;  %v4059_v3 = vmul.f32 1.442695, %v4034_v10 }
 0x6b0   : > { %v3989_v33 = vpop.xlane.xlu0 %3988 }
 0x6b1   : > { %6524 = vpow2.f32 %v4051_v31  ;;  %v4035_v25 = vsub.f32 %v7858_v52, %v3989_v33 }
 0x6b2   : > { %6526 = vpow2.f32 %v4059_v3 }
 0x6b3   : > { %v4061_v1 = vmul.f32 1.442695, %v4035_v25 }
 0x6b4   : > { %v3976_v21 = vpop.xlane.xlu0 %3975 }
 0x6b5   : > { %6528 = vpow2.f32 %v4061_v1  ;;  %v4031_v17 = vsub.f32 %v7868_v15, %v3976_v21 }
 0x6b6   : > { %v3979_v38 = vpop.xlane.xlu1 %3978 }
 0x6b7   : > { %v4032_v62 = vsub.f32 %v7874_v55, %v3979_v38  ;;  %v4053_v57 = vmul.f32 1.442695, %v4031_v17 }
 0x6b8   : > { %v3992_v42 = vpop.xlane.xlu0 %3991 }
 0x6b9   : > { %v4036_v9 = vsub.f32 %v7866_v18, %v3992_v42  ;;  %v4055_v23 = vmul.f32 1.442695, %v4032_v62 }
 0x6ba   : > { %v7938_v6 = vpop.eup %6522  ;;  %v3995_v45 = vpop.xlane.xlu1 %3994 }
 0x6bb   : > { %v4089_v12 = vsel %vm3967_vm9, %v7938_v6, 0.0  ;;  %v4063_v20 = vmul.f32 1.442695, %v4036_v9  ;;  %v4037_v8 = vsub.f32 %v7872_v14, %v3995_v45 }
 0x6bc   : > { %4090 = vadd.xlane.f32.xlu0 %v4089_v12  ;;  %v7962_v7 = vpop.permute.xlu0 %3038 }
 0x6bd   : > { %6530 = vpow2.f32 %v4063_v20  ;;  %v4065_v26 = vmul.f32 1.442695, %v4037_v8 }
 0x6be   : > { %v7942_v50 = vpop.eup %6524  ;;  %6532 = vpow2.f32 %v4053_v57  ;;  %v7964_v16 = vpop.permute.xlu1 %3036 }
 0x6bf   : > { %v7944_v35 = vpop.eup %6526  ;;  %v4092_v54 = vsel %vm3967_vm9, %v7942_v50, 0.0  ;;  %6534 = vpow2.f32 %v4055_v23 }
 0x6c0   : > { %v4104_v51 = vsel %vm3967_vm9, %v7944_v35, 0.0  ;;  %4093 = vadd.xlane.f32.xlu1 %v4092_v54  ;;  %6536 = vpow2.f32 %v4065_v26 }
 0x6c1   : > { %4105 = vadd.xlane.f32.xlu0 %v4104_v51 }
 0x6c2   : > { %v7950_v52 = vpop.eup %6528 }
 0x6c3   : > { %v4107_v46 = vsel %vm3967_vm9, %v7950_v52, 0.0 }
 0x6c4   : > { %4108 = vadd.xlane.f32.xlu1 %v4107_v46 }
 0x6ca   : > { %v7968_v27 = vpop.eup %6530 }
 0x6cb   : > { %v7972_v4 = vpop.eup %6532 }
 0x6cc   : > { %v7976_v10 = vpop.eup %6534  ;;  %v4095_v1 = vsel %vm3967_vm9, %v7972_v4, 0.0 }
 0x6cd   : > { %v7984_v12 = vpop.eup %6536 }
 0x6ce   : > { %v4113_v21 = vsel %vm3967_vm9, %v7984_v12, 0.0 }
 0x6d5   : > { %3051 = vrot.lane.b32.xlu1 %v7242_v11, %s6729_s23 }
 0x6d7   : > { %3053 = vrot.lane.b32.xlu0 %v7248_v13, %s6729_s23 }
 0x6ed   : > { %v3983_v18 = vpop.xlane.xlu0 %3982 }
 0x6ee   : > { %v4033_v15 = vsub.f32 %v7880_v44, %v3983_v18  ;;  %v4110_v44 = vsel %vm3967_vm9, %v7968_v27, 0.0 }
 0x6ef   : > { %v3998_v19 = vpop.xlane.xlu1 %3997 }
 0x6f0   : > { %v4057_v55 = vmul.f32 1.442695, %v4033_v15  ;;  %v4038_v36 = vsub.f32 %v7884_v0, %v3998_v19 }
 0x6f1   : > { %v4001_v60 = vpop.xlane.xlu0 %4000 }
 0x6f2   : > { %6538 = vpow2.f32 %v4057_v55  ;;  %v4067_v14 = vmul.f32 1.442695, %v4038_v36  ;;  %v4039_v40 = vsub.f32 %v7886_v58, %v4001_v60 }
 0x6f3   : > { %v4004_v61 = vpop.xlane.xlu1 %4003 }
 0x6f4   : > { %6540 = vpow2.f32 %v4067_v14  ;;  %v4069_v28 = vmul.f32 1.442695, %v4039_v40  ;;  %v4040_v22 = vsub.f32 %v7890_v37, %v4004_v61  ;;  %v4098_v37 = vsel %vm3967_vm9, %v7976_v10, 0.0 }
 0x6f5   : > { %v4016_v34 = vpop.xlane.xlu0 %4015 }
 0x6f6   : > { %6542 = vpow2.f32 %v4069_v28  ;;  %v4071_v0 = vmul.f32 1.442695, %v4040_v22  ;;  %v4044_v31 = vsub.f32 %v7888_v29, %v4016_v34  ;;  %4111 = vadd.xlane.f32.xlu0 %v4110_v44 }
 0x6f7   : > { %v4019_v3 = vpop.xlane.xlu1 %4018 }
 0x6f8   : > { %6544 = vpow2.f32 %v4071_v0  ;;  %v4079_v58 = vmul.f32 1.442695, %v4044_v31  ;;  %v4045_v33 = vsub.f32 %v7892_v41, %v4019_v3 }
 0x6f9   : > { %v4007_v25 = vpop.xlane.xlu0 %4006  ;;  %4096 = vadd.xlane.f32.xlu1 %v4095_v1 }
 0x6fa   : > { %6546 = vpow2.f32 %v4079_v58  ;;  %v4081_v51 = vmul.f32 1.442695, %v4045_v33  ;;  %v4041_v54 = vsub.f32 %v7894_v63, %v4007_v25  ;;  %4099 = vadd.xlane.f32.xlu0 %v4098_v37 }
 0x6fb   : > { %v4010_v29 = vpop.xlane.xlu1 %4009 }
 0x6fc   : > { %6548 = vpow2.f32 %v4081_v51  ;;  %v4073_v46 = vmul.f32 1.442695, %v4041_v54  ;;  %v4042_v41 = vsub.f32 %v7900_v48, %v4010_v29  ;;  %v3134_v29 = vcombine.low %v7248_v13, %v7962_v7 }
 0x6fd   : > { %v4022_v42 = vpop.xlane.xlu0 %4021 }
 0x6fe   : > { %6550 = vpow2.f32 %v4073_v46  ;;  %v4075_v38 = vmul.f32 1.442695, %v4042_v41  ;;  %4114 = vadd.xlane.f32.xlu0 %v4113_v21  ;;  %v4046_v9 = vsub.f32 %v7898_v47, %v4022_v42  ;;  %v3135_v46 = vcombine.high %v7248_v13, %v7962_v7 }
 0x6ff   : > { %v7991_v17 = vpop.eup %6538  ;;  %v4025_v62 = vpop.xlane.xlu1 %4024  ;;  %v3067_v13 = vcombine.high %v7242_v11, %v7964_v16 }
 0x700   : > { %6552 = vpow2.f32 %v4075_v38  ;;  %v4083_v63 = vmul.f32 1.442695, %v4046_v9  ;;  %v4047_v20 = vsub.f32 %v7904_v49, %v4025_v62  ;;  %v4101_v45 = vsel %vm3980_vm10, %v7991_v17, 0.0 }
 0x701   : > { %v7996_v48 = vpop.eup %6540  ;;  %v4013_v57 = vpop.xlane.xlu0 %4012  ;;  %4102 = vadd.xlane.f32.xlu1 %v4101_v45  ;;  %v3142_v9 = vrot.slane %v3134_v29, %v7318_v39  ;;  %v3066_v62 = vcombine.low %v7242_v11, %v7964_v16  ;;  %v3081_v16 = vrot.slane %v3067_v13, %v7318_v39 }
 0x702   : > { %6554 = vpow2.f32 %v4083_v63  ;;  %v4085_v23 = vmul.f32 1.442695, %v4047_v20  ;;  %v4043_v8 = vsub.f32 %v7906_v53, %v4013_v57  ;;  %v4116_v47 = vsel %vm3980_vm10, %v7996_v48, 0.0 }
 0x703   : > { %v8001_v26 = vpop.eup %6542  ;;  %4117 = vadd.xlane.f32.xlu0 %v4116_v47  ;;  %v4028_v18 = vpop.xlane.xlu1 %4027  ;;  %v3149_v63 = vrot.slane %v3135_v46, %v7318_v39  ;;  %v3074_v47 = vrot.slane %v3066_v62, %v7318_v39 }
 0x704   : > { %6556 = vpow2.f32 %v4085_v23  ;;  %v4077_v49 = vmul.f32 1.442695, %v4043_v8  ;;  %v4048_v15 = vsub.f32 %v7908_v32, %v4028_v18  ;;  %v4119_v19 = vsel %vm3967_vm9, %v8001_v26, 0.0  ;;  %v8555_v18 = vld [vmem:[#allocation17_spill] sm:$0xff] }
 0x705   : > { %v8006_v55 = vpop.eup %6544  ;;  %4120 = vadd.xlane.f32.xlu1 %v4119_v19 }
 0x706   : > { %6558 = vpow2.f32 %v4077_v49  ;;  %v4087_v36 = vmul.f32 1.442695, %v4048_v15  ;;  %v4122_v53 = vsel %vm3967_vm9, %v8006_v55, 0.0 }
 0x707   : > { %v8010_v60 = vpop.eup %6546  ;;  %4123 = vadd.xlane.f32.xlu0 %v4122_v53 }
 0x708   : > { %6560 = vpow2.f32 %v4087_v36  ;;  %v4134_v14 = vsel %vm3967_vm9, %v8010_v60, 0.0 }
 0x709   : > { %v8014_v40 = vpop.eup %6548  ;;  %4135 = vadd.xlane.f32.xlu1 %v4134_v14 }
 0x70a   : > { %v4137_v32 = vsel %vm3967_vm9, %v8014_v40, 0.0 }
 0x70b   : > { %v8018_v61 = vpop.eup %6550  ;;  %4138 = vadd.xlane.f32.xlu0 %v4137_v32 }
 0x70c   : > { %v4125_v28 = vsel %vm3967_vm9, %v8018_v61, 0.0 }
 0x70d   : > { %v8022_v22 = vpop.eup %6552  ;;  %4126 = vadd.xlane.f32.xlu1 %v4125_v28 }
 0x70e   : > { %v4128_v34 = vsel %vm3967_vm9, %v8022_v22, 0.0 }
 0x70f   : > { %v8026_v44 = vpop.eup %6554  ;;  %4129 = vadd.xlane.f32.xlu0 %v4128_v34 }
 0x710   : > { %v4140_v0 = vsel %vm3967_vm9, %v8026_v44, 0.0 }
 0x711   : > { %v8030_v31 = vpop.eup %6556  ;;  %4141 = vadd.xlane.f32.xlu1 %v4140_v0 }
 0x712   : > { %v4143_v3 = vsel %vm3967_vm9, %v8030_v31, 0.0 }
 0x713   : > { %v8034_v58 = vpop.eup %6558  ;;  %4144 = vadd.xlane.f32.xlu0 %v4143_v3 }
 0x714   : > { %v4131_v33 = vsel %vm3980_vm10, %v8034_v58, 0.0 }
 0x715   : > { %v8038_v25 = vpop.eup %6560  ;;  %4132 = vadd.xlane.f32.xlu1 %v4131_v33 }
 0x716   : > { %v4146_v37 = vsel %vm3980_vm10, %v8038_v25, 0.0 }
 0x717   : > { %4147 = vadd.xlane.f32.xlu0 %v4146_v37 }
 0x745   : > { %v4091_v1 = vpop.xlane.xlu0 %4090 }
 0x746   : > { %6562 = vrcp.f32 %v4091_v1 }
 0x749   : > { %v4094_v54 = vpop.xlane.xlu1 %4093 }
 0x74a   : > { %v4106_v51 = vpop.xlane.xlu0 %4105 }
 0x74b   : > { %6564 = vrcp.f32 %v4106_v51 }
 0x74c   : > { %6566 = vrcp.f32 %v4094_v54 }
 0x74d   : > { %v4109_v21 = vpop.xlane.xlu1 %4108 }
 0x74e   : > { %v3054_v41 = vpop.permute.xlu0 %3053  ;;  %6568 = vrcp.f32 %v4109_v21 }
 0x74f   : > { %v3150_v42 = vcombine.low %v7557_v30, %v3054_v41  ;;  %v3151_v38 = vcombine.high %v7557_v30, %v3054_v41 }
 0x751   : > { %v3158_v20 = vrot.slane %v3150_v42, %v7318_v39  ;;  %v3165_v45 = vrot.slane %v3151_v38, %v7318_v39  ;;  %v3052_v7 = vpop.permute.xlu1 %3051 }
 0x752   : > { %v3082_v49 = vcombine.low %v8555_v18, %v3052_v7  ;;  %v3083_v15 = vcombine.high %v8555_v18, %v3052_v7 }
 0x753   : > { %v3166_v57 = vcombine.low %v3142_v9, %v3158_v20  ;;  %v3167_v23 = vcombine.high %v3142_v9, %v3158_v20  ;;  %v3182_v30 = vcombine.low %v3149_v63, %v3165_v45  ;;  %v3183_v8 = vcombine.high %v3149_v63, %v3165_v45 }
 0x754   : > { %v3090_v14 = vrot.slane %v3082_v49, %v7318_v39  ;;  %v3097_v32 = vrot.slane %v3083_v15, %v7318_v39 }
 0x755   : > { %v3174_v19 = vrot.slane %v3166_v57, %v7327_v56  ;;  %v3181_v36 = vrot.slane %v3167_v23, %v7327_v56  ;;  %v3190_v53 = vrot.slane %v3182_v30, %v7327_v56  ;;  %v3197_v11 = vrot.slane %v3183_v8, %v7327_v56  ;;  %v6563_v23 = vpop.eup %6562 }
 0x756   : > { %v3098_v33 = vcombine.low %v3074_v47, %v3090_v14  ;;  %v3099_v37 = vcombine.high %v3074_v47, %v3090_v14  ;;  %v3114_v1 = vcombine.low %v3081_v16, %v3097_v32  ;;  %v3115_v51 = vcombine.high %v3081_v16, %v3097_v32 }
 0x757   : > { %v3423_v28 = vcombine.low %v3174_v19, %v3181_v36  ;;  %v5881_v34 = vcombine.high %v3174_v19, %v3181_v36  ;;  %v3439_v0 = vcombine.low %v3190_v53, %v3197_v11  ;;  %v5882_v3 = vcombine.high %v3190_v53, %v3197_v11 }
 0x758   : > { %v3106_v21 = vrot.slane %v3098_v33, %v7327_v56  ;;  %v3113_v42 = vrot.slane %v3099_v37, %v7327_v56  ;;  %v3122_v38 = vrot.slane %v3114_v1, %v7327_v56  ;;  %v3129_v9 = vrot.slane %v3115_v51, %v7327_v56  ;;  %v6565_v47 = vpop.eup %6564 }
 0x759   : > { %v3430_v54 = vrot.slane %v3423_v28, %v7318_v39  ;;  %v3438_v29 = vrot.slane %v5881_v34, %v7318_v39  ;;  %v3446_v46 = vrot.slane %v3439_v0, %v7318_v39  ;;  %v3454_v41 = vrot.slane %v5882_v3, %v7318_v39  ;;  %v6567_v14 = vpop.eup %6566 }
 0x75a   : > { %v3355_v63 = vcombine.low %v3106_v21, %v3113_v42  ;;  %v5879_v20 = vcombine.high %v3106_v21, %v3113_v42  ;;  %v3371_v7 = vcombine.low %v3122_v38, %v3129_v9  ;;  %v5880_v57 = vcombine.high %v3122_v38, %v3129_v9 }
 0x75b   : > { %v3455_v62 = vcombine.low %v3430_v54, %v3438_v29  ;;  %v3471_v45 = vcombine.low %v3446_v46, %v3454_v41  ;;  %v3456_v13 = vcombine.high %v3430_v54, %v3438_v29  ;;  %v3472_v19 = vcombine.high %v3446_v46, %v3454_v41  ;;  %v6569_v33 = vpop.eup %6568 }
 0x75c   : > { %v3362_v30 = vrot.slane %v3355_v63, %v7318_v39  ;;  %v3370_v8 = vrot.slane %v5879_v20, %v7318_v39  ;;  %v3378_v18 = vrot.slane %v3371_v7, %v7318_v39  ;;  %v3386_v49 = vrot.slane %v5880_v57, %v7318_v39 }
 0x75d   : > { %v3463_v15 = vrot.slane %v3455_v62, %v7327_v56  ;;  %v3479_v53 = vrot.slane %v3471_v45, %v7327_v56  ;;  %v3470_v16 = vrot.slane %v3456_v13, %v7327_v56  ;;  %v3486_v34 = vrot.slane %v3472_v19, %v7327_v56 }
 0x75e   : > { %v3387_v36 = vcombine.low %v3362_v30, %v3370_v8  ;;  %v3388_v11 = vcombine.high %v3362_v30, %v3370_v8  ;;  %v3403_v32 = vcombine.low %v3378_v18, %v3386_v49  ;;  %v3404_v28 = vcombine.high %v3378_v18, %v3386_v49 }
 0x75f   : > { %v3487_v51 = vcombine.low %v3463_v15, %v3479_v53  ;;  %v3488_v54 = vcombine.high %v3463_v15, %v3479_v53  ;;  %v3489_v29 = vcombine.low %v3470_v16, %v3486_v34  ;;  %v3490_v46 = vcombine.high %v3470_v16, %v3486_v34 }
 0x760   : > { %v3395_v0 = vrot.slane %v3387_v36, %v7327_v56  ;;  %v3402_v3 = vrot.slane %v3388_v11, %v7327_v56  ;;  %v3411_v37 = vrot.slane %v3403_v32, %v7327_v56  ;;  %v3418_v1 = vrot.slane %v3404_v28, %v7327_v56 }
 0x761   : > { %v4170_v9 = vmul.f32 %v6567_v14, %v7942_v50  ;;  %v4175_v62 = vmul.f32 %v6569_v33, %v7950_v52  ;;  %v4169_v7 = vmul.f32 %v6563_v23, %v7938_v6  ;;  %v4174_v57 = vmul.f32 %v6565_v47, %v7944_v35 }
 0x762   : > { %v3419_v41 = vcombine.low %v3395_v0, %v3411_v37  ;;  %v3420_v21 = vcombine.high %v3395_v0, %v3411_v37  ;;  %v3421_v42 = vcombine.low %v3402_v3, %v3418_v1  ;;  %v3422_v38 = vcombine.high %v3402_v3, %v3418_v1 }
 0x763   : > { %v4189_v30 = vpack.c.bf16 %v4170_v9, %v4169_v7  ;;  %v4192_v8 = vpack.c.bf16 %v4175_v62, %v4174_v57 }
 0x764   : > { %v3658_v63 = vpack.c.bf16 %v3487_v51, %v3419_v41  ;;  %v3661_v20 = vpack.c.bf16 %v3488_v54, %v3420_v21  ;;  %v3664_v45 = vpack.c.bf16 %v3489_v29, %v3421_v42  ;;  %v3667_v13 = vpack.c.bf16 %v3490_v46, %v3422_v38 }
 0x766   : > { %6213 = vmatpush3.bf16.msra.mxu1 %v3658_v63  ;;  %6231 = vmatpush3.bf16.msra.mxu0 %v3661_v20 }
 0x767   : > { %6244 = vmatprep.subr.bf16.mxu1 %v6725_v5  ;;  %6262 = vmatprep.subr.bf16.mxu0 %v6725_v5 }
 0x769   : > { %6215 = vmatmul.mubr.msk.bf16.vlgmr.msra.gmra.mxu1 %vm3967_vm9, %v4189_v30  ;;  %6233 = vmatmul.mubr.msk.bf16.vlgmr.msra.gmra.mxu0 %vm3967_vm9, %v4192_v8  ;;  %v6505_v8 = vld [vmem:[%s6957_s21] sm:$0xff]  }
 0x76a   : > { %6245 = vmatpush3.bf16.msra.mxu1 %v7826_v43  ;;  %6263 = vmatpush3.bf16.msra.mxu0 %v7831_v2 }
 0x76b   : > { %6246 = vmatprep.subr.bf16.mxu1 %v6725_v5  ;;  %6264 = vmatprep.subr.bf16.mxu0 %v6725_v5 }
 0x76c   : > { %6218 = vmatprep.mubr.msk.bf16.mxu1 %vm6726_vm6, %v6725_v5  ;;  %6236 = vmatprep.mubr.msk.bf16.mxu0 %vm6726_vm6, %v6725_v5 }
 0x76e   : > { %6247 = vmatpush3.bf16.msra.mxu1 %v7835_v24  ;;  %6265 = vmatpush3.bf16.msra.mxu0 %v7837_v59 }
 0x76f   : > { %6248 = vmatprep.subr.bf16.mxu1 %v6725_v5  ;;  %6266 = vmatprep.subr.bf16.mxu0 %v6725_v5 }
 0x772   : > { %6249 = vmatpush3.bf16.msra.mxu1 %v3664_v45  ;;  %6267 = vmatpush3.bf16.msra.mxu0 %v3667_v13 }
 0x773   : > { %6280 = vmatprep.subr.bf16.mxu1 %v6725_v5  ;;  %6296 = vmatprep.subr.bf16.mxu0 %v6725_v5 }
 0x77f   : > { %v4112_v43 = vpop.xlane.xlu0 %4111 }
 0x782   : > { %v4097_v6 = vpop.xlane.xlu1 %4096 }
 0x783   : > { %v4100_v2 = vpop.xlane.xlu0 %4099 }
 0x784   : > { %6570 = vrcp.f32 %v4100_v2 }
 0x785   : > { %6572 = vrcp.f32 %v4097_v6 }
 0x786   : > { %6574 = vrcp.f32 %v4112_v43 }
 0x787   : > { %v4115_v50 = vpop.xlane.xlu0 %4114 }
 0x788   : > { %6576 = vrcp.f32 %v4115_v50 }
 0x78a   : > { %v4103_v24 = vpop.xlane.xlu1 %4102 }
 0x78b   : > { %6578 = vrcp.f32 %v4103_v24 }
 0x78c   : > { %v4118_v59 = vpop.xlane.xlu0 %4117 }
 0x78d   : > { %6580 = vrcp.f32 %v4118_v59 }
 0x78e   : > { %v4121_v35 = vpop.xlane.xlu1 %4120 }
 0x790   : > { %v4124_v52 = vpop.xlane.xlu0 %4123 }
 0x791   : > { %v6571_v23 = vpop.eup %6570  ;;  %6582 = vrcp.f32 %v4124_v52 }
 0x792   : > { %v6573_v47 = vpop.eup %6572  ;;  %v4136_v18 = vpop.xlane.xlu1 %4135  ;;  %v4172_v49 = vmul.f32 %v6571_v23, %v7976_v10  ;;  %6584 = vrcp.f32 %v4121_v35 }
 0x793   : > { %v6575_v15 = vpop.eup %6574  ;;  %v4171_v19 = vmul.f32 %v6573_v47, %v7972_v4 }
 0x794   : > { %v4139_v36 = vpop.xlane.xlu0 %4138  ;;  %v4176_v14 = vmul.f32 %v6575_v15, %v7968_v27 }
 0x795   : > { %v6577_v53 = vpop.eup %6576  ;;  %6586 = vrcp.f32 %v4139_v36  ;;  %v4190_v11 = vpack.c.bf16 %v4172_v49, %v4171_v19 }
 0x796   : > { %6588 = vrcp.f32 %v4136_v18  ;;  %v4127_v16 = vpop.xlane.xlu1 %4126  ;;  %v4177_v32 = vmul.f32 %v6577_v53, %v7984_v12 }
 0x797   : > { %6219 = vmatmul.mubr.msk.bf16.gmra.mxu1 %vm3967_vm9, %v4190_v11 }
 0x798   : > { %v6579_v28 = vpop.eup %6578  ;;  %v4130_v34 = vpop.xlane.xlu0 %4129  ;;  %v4193_v0 = vpack.c.bf16 %v4177_v32, %v4176_v14  ;;  %6222 = vmatprep.mubr.msk.bf16.mxu1 %vm6726_vm6, %v6725_v5 }
 0x799   : > { %6590 = vrcp.f32 %v4130_v34  ;;  %v4173_v4 = vmul.f32 %v6579_v28, %v7991_v17 }
 0x79a   : > { %v6581_v10 = vpop.eup %6580  ;;  %6237 = vmatmul.mubr.msk.bf16.gmra.mxu0 %vm3967_vm9, %v4193_v0  ;;  %v4142_v3 = vpop.xlane.xlu1 %4141  ;;  %6592 = vrcp.f32 %v4127_v16 }
 0x79b   : > { %v4191_v33 = vpack.c.bf16 %v4173_v4, %v4173_v4  ;;  %6240 = vmatprep.mubr.msk.bf16.mxu0 %vm6726_vm6, %v6725_v5  ;;  %v4178_v12 = vmul.f32 %v6581_v10, %v7996_v48 }
 0x79c   : > { %v4145_v27 = vpop.xlane.xlu0 %4144 }
 0x79d   : > { %6594 = vrcp.f32 %v4145_v27  ;;  %v4194_v17 = vpack.c.bf16 %v4178_v12, %v4178_v12 }
 0x79e   : > { %v6583_v37 = vpop.eup %6582  ;;  %6596 = vrcp.f32 %v4142_v3  ;;  %v4133_v1 = vpop.xlane.xlu1 %4132 }
 0x79f   : > { %6223 = vmatmul.mubr.msk.bf16.gmra.mxu1 %vm3967_vm9, %v4191_v33  ;;  %v6585_v51 = vpop.eup %6584  ;;  %v4180_v54 = vmul.f32 %v6583_v37, %v8006_v55  ;;  %6598 = vrcp.f32 %v4133_v1 }
 0x7a0   : > { %6250 = vmatprep.mubr.msk.bf16.mxu1 %vm6726_vm6, %v6725_v5  ;;  %v4148_v29 = vpop.xlane.xlu0 %4147  ;;  %v4179_v48 = vmul.f32 %v6585_v51, %v8001_v26 }
 0x7a1   : > { %6600 = vrcp.f32 %v4148_v29 }
 0x7a2   : > { %v6587_v46 = vpop.eup %6586  ;;  %6241 = vmatmul.mubr.msk.bf16.gmra.mxu0 %vm3967_vm9, %v4194_v17  ;;  %v4195_v42 = vpack.c.bf16 %v4180_v54, %v4179_v48 }
 0x7a3   : > { %v6589_v41 = vpop.eup %6588  ;;  %6268 = vmatprep.mubr.msk.bf16.mxu0 %vm6726_vm6, %v6725_v5  ;;  %v4185_v21 = vmul.f32 %v6587_v46, %v8014_v40 }
 0x7a4   : > { %v4184_v9 = vmul.f32 %v6589_v41, %v8010_v60 }
 0x7a6   : > { %v6591_v38 = vpop.eup %6590  ;;  %v4198_v62 = vpack.c.bf16 %v4185_v21, %v4184_v9 }
 0x7a7   : > { %6251 = vmatmul.mubr.msk.bf16.vlgmr.msra.gmra.mxu1 %vm3967_vm9, %v4195_v42  ;;  %v6593_v55 = vpop.eup %6592  ;;  %v4182_v63 = vmul.f32 %v6591_v38, %v8022_v22 }
 0x7a8   : > { %6254 = vmatprep.mubr.msk.bf16.mxu1 %vm6726_vm6, %v6725_v5  ;;  %v4181_v40 = vmul.f32 %v6593_v55, %v8018_v61 }
 0x7aa   : > { %v6595_v26 = vpop.eup %6594  ;;  %6269 = vmatmul.mubr.msk.bf16.vlgmr.msra.gmra.mxu0 %vm3967_vm9, %v4198_v62  ;;  %v4196_v45 = vpack.c.bf16 %v4182_v63, %v4181_v40 }
 0x7ab   : > { %v6597_v20 = vpop.eup %6596  ;;  %6272 = vmatprep.mubr.msk.bf16.mxu0 %vm6726_vm6, %v6725_v5  ;;  %v4187_v60 = vmul.f32 %v6595_v26, %v8030_v31 }
 0x7ac   : > { %v6599_v13 = vpop.eup %6598  ;;  %v4186_v7 = vmul.f32 %v6597_v20, %v8026_v44 }
 0x7ad   : > { %v4183_v61 = vmul.f32 %v6599_v13, %v8034_v58  ;;  %v6504_v58 = vld [vmem:[%s6957_s21 + $0x8] sm:$0xff]   ;;  %s6733_s21 = smov 16  }
 0x7ae   : > { %v4199_v22 = vpack.c.bf16 %v4187_v60, %v4186_v7  ;;  %v6601_v57 = vpop.eup %6600  ;;  %6281 = vmatpush3.bf16.msra.mxu1 %v6504_v58 }
 0x7af   : > { %6255 = vmatmul.mubr.msk.bf16.gmra.mxu1 %vm3967_vm9, %v4196_v45  ;;  %v4188_v31 = vmul.f32 %v6601_v57, %v8038_v25  ;;  %v4197_v30 = vpack.c.bf16 %v4183_v61, %v4183_v61  ;;  %6282 = vmatprep.subr.bf16.mxu1 %v6725_v5 }
 0x7b0   : > { %6258 = vmatprep.mubr.msk.bf16.mxu1 %vm6726_vm6, %v6725_v5 }
 0x7b1   : > { %v4200_v44 = vpack.c.bf16 %v4188_v31, %v4188_v31 }
 0x7b2   : > { %6273 = vmatmul.mubr.msk.bf16.gmra.mxu0 %vm3967_vm9, %v4199_v22  ;;  %6283 = vmatpush3.bf16.msra.mxu1 %v6505_v8 }
 0x7b3   : > { %6276 = vmatprep.mubr.msk.bf16.mxu0 %vm6726_vm6, %v6725_v5  ;;  %6312 = vmatprep.subr.bf16.mxu1 %v6725_v5 }
 0x7b7   : > { %6259 = vmatmul.mubr.msk.bf16.gmra.mxu1 %vm3967_vm9, %v4197_v30 }
 0x7b8   : > { %6284 = vmatprep.mubr.msk.bf16.mxu1 %vm6726_vm6, %v6725_v5 }
 0x7ba   : > { %6277 = vmatmul.mubr.msk.bf16.gmra.mxu0 %vm3967_vm9, %v4200_v44 }
 0x7bb   : > { %6300 = vmatprep.mubr.msk.bf16.mxu0 %vm6726_vm6, %v6725_v5 }
 0x829   : > { %v4250_v25 = vpop.f32.mrf.mxu1  ;;  %v4318_v43 = vpop.f32.mrf.mxu0 }
 0x82b   : > { %v6216_v2 = vpop.f32.mrf.mxu1  ;;  %v6234_v6 = vpop.f32.mrf.mxu0 }
 0x82d   : > { %v4253_v50 = vpop.f32.mrf.mxu1  ;;  %v4321_v24 = vpop.f32.mrf.mxu0 }
 0x82f   : > { %v6217_v59 = vpop.f32.mrf.mxu1  ;;  %v6235_v35 = vpop.f32.mrf.mxu0 }
 0x857   : > { %v8158_v52 = vpop.f32.mrf.mxu1 }
 0x859   : > { %v6220_v23 = vpop.f32.mrf.mxu1 }
 0x85a   : > { %v8160_v47 = vpop.f32.mrf.mxu0 }
 0x85b   : > { %v8162_v18 = vpop.f32.mrf.mxu1 }
 0x85c   : > { %v6238_v49 = vpop.f32.mrf.mxu0 }
 0x85d   : > { %v6221_v15 = vpop.f32.mrf.mxu1 }
 0x85e   : > { %v8164_v19 = vpop.f32.mrf.mxu0 }
 0x85f   : > { %v8166_v36 = vpop.f32.mrf.mxu1 }
 0x860   : > { %v6239_v53 = vpop.f32.mrf.mxu0 }
 0x861   : > { %v6224_v11 = vpop.f32.mrf.mxu1 }
 0x862   : > { %v8168_v16 = vpop.f32.mrf.mxu0 }
 0x863   : > { %v4269_v14 = vpop.f32.mrf.mxu1 }
 0x864   : > { %v6242_v32 = vpop.f32.mrf.mxu0 }
 0x865   : > { %v6225_v28 = vpop.f32.mrf.mxu1 }
 0x866   : > { %v4337_v34 = vpop.f32.mrf.mxu0 }
 0x867   : > { %v4386_v0 = vpop.f32.mrf.mxu1 }
 0x868   : > { %v6243_v4 = vpop.f32.mrf.mxu0  ;;  %v4476_v10 = vcombine.low %v4250_v25, %v4386_v0  ;;  %v4477_v3 = vcombine.high %v4250_v25, %v4386_v0 }
 0x869   : > { %v6252_v33 = vpop.f32.mrf.mxu1 }
 0x86a   : > { %v4454_v27 = vpop.f32.mrf.mxu0  ;;  %v4484_v17 = vrot.slane %v4476_v10, %v7318_v39  ;;  %v4491_v54 = vrot.slane %v4477_v3, %v7318_v39 }
 0x86b   : > { %v4389_v12 = vpop.f32.mrf.mxu1  ;;  %v4492_v37 = vcombine.low %v4318_v43, %v4454_v27  ;;  %v4493_v1 = vcombine.high %v4318_v43, %v4454_v27 }
 0x86c   : > { %v6270_v51 = vpop.f32.mrf.mxu0  ;;  %v4544_v48 = vcombine.low %v4253_v50, %v4389_v12  ;;  %v4545_v21 = vcombine.high %v4253_v50, %v4389_v12 }
 0x86d   : > { %v4500_v29 = vrot.slane %v4492_v37, %v7318_v39  ;;  %v4507_v46 = vrot.slane %v4493_v1, %v7318_v39  ;;  %v6253_v41 = vpop.f32.mrf.mxu1 }
 0x86e   : > { %v4457_v42 = vpop.f32.mrf.mxu0  ;;  %v4552_v31 = vrot.slane %v4544_v48, %v7318_v39  ;;  %v4559_v30 = vrot.slane %v4545_v21, %v7318_v39 }
 0x86f   : > { %v4508_v38 = vcombine.low %v4484_v17, %v4500_v29  ;;  %v4509_v9 = vcombine.high %v4484_v17, %v4500_v29  ;;  %v4524_v55 = vcombine.low %v4491_v54, %v4507_v46  ;;  %v4525_v62 = vcombine.high %v4491_v54, %v4507_v46  ;;  %v4394_v63 = vpop.f32.mrf.mxu1 }
 0x870   : > { %v4612_v26 = vcombine.low %v8158_v52, %v4394_v63  ;;  %v4613_v20 = vcombine.high %v8158_v52, %v4394_v63  ;;  %v4560_v40 = vcombine.low %v4321_v24, %v4457_v42  ;;  %v4561_v60 = vcombine.high %v4321_v24, %v4457_v42  ;;  %v6271_v45 = vpop.f32.mrf.mxu0 }
 0x871   : > { %v4516_v13 = vrot.slane %v4508_v38, %v7327_v56  ;;  %v4523_v7 = vrot.slane %v4509_v9, %v7327_v56  ;;  %v4532_v22 = vrot.slane %v4524_v55, %v7327_v56  ;;  %v4539_v57 = vrot.slane %v4525_v62, %v7327_v56  ;;  %v6256_v61 = vpop.f32.mrf.mxu1 }
 0x872   : > { %v4568_v44 = vrot.slane %v4560_v40, %v7318_v39  ;;  %v4575_v58 = vrot.slane %v4561_v60, %v7318_v39  ;;  %v4462_v8 = vpop.f32.mrf.mxu0  ;;  %v4620_v53 = vrot.slane %v4612_v26, %v7318_v39  ;;  %v4627_v11 = vrot.slane %v4613_v20, %v7318_v39 }
 0x873   : > { %v4765_v25 = vcombine.low %v4516_v13, %v4523_v7  ;;  %v5911_v43 = vcombine.high %v4516_v13, %v4523_v7  ;;  %v4781_v2 = vcombine.low %v4532_v22, %v4539_v57  ;;  %v5912_v6 = vcombine.high %v4532_v22, %v4539_v57  ;;  %v4397_v50 = vpop.f32.mrf.mxu1 }
 0x874   : > { %v4576_v24 = vcombine.low %v4552_v31, %v4568_v44  ;;  %v4577_v59 = vcombine.high %v4552_v31, %v4568_v44  ;;  %v4592_v35 = vcombine.low %v4559_v30, %v4575_v58  ;;  %v4593_v52 = vcombine.high %v4559_v30, %v4575_v58  ;;  %v6274_v23 = vpop.f32.mrf.mxu0 }
 0x875   : > { %v8185_v49 = vrot.slane %v4765_v25, %v7318_v39  ;;  %v8188_v15 = vrot.slane %v5911_v43, %v7318_v39  ;;  %v6257_v14 = vpop.f32.mrf.mxu1  ;;  %v4680_v10 = vcombine.low %v8162_v18, %v4397_v50  ;;  %v4681_v3 = vcombine.high %v8162_v18, %v4397_v50 }
 0x876   : > { %v4584_v32 = vrot.slane %v4576_v24, %v7327_v56  ;;  %v4591_v28 = vrot.slane %v4577_v59, %v7327_v56  ;;  %v4600_v34 = vrot.slane %v4592_v35, %v7327_v56  ;;  %v4607_v0 = vrot.slane %v4593_v52, %v7327_v56  ;;  %v4465_v4 = vpop.f32.mrf.mxu0 }
 0x877   : > { %v4628_v33 = vcombine.low %v8160_v47, %v4462_v8  ;;  %v4629_v27 = vcombine.high %v8160_v47, %v4462_v8  ;;  %v4402_v12 = vpop.f32.mrf.mxu1  ;;  %v8201_v29 = vrot.slane %v4781_v2, %v7318_v39  ;;  %v8204_v46 = vrot.slane %v5912_v6, %v7318_v39 }
 0x878   : > { %v4833_v37 = vcombine.low %v4584_v32, %v4591_v28  ;;  %v5913_v1 = vcombine.high %v4584_v32, %v4591_v28  ;;  %v4849_v51 = vcombine.low %v4600_v34, %v4607_v0  ;;  %v5914_v17 = vcombine.high %v4600_v34, %v4607_v0  ;;  %v6275_v54 = vpop.f32.mrf.mxu0 }
 0x879   : > { %v4636_v41 = vrot.slane %v4628_v33, %v7318_v39  ;;  %v4643_v18 = vrot.slane %v4629_v27, %v7318_v39  ;;  %v6260_v48 = vpop.f32.mrf.mxu1  ;;  %v4688_v42 = vrot.slane %v4680_v10, %v7318_v39  ;;  %v4695_v38 = vrot.slane %v4681_v3, %v7318_v39 }
 0x87a   : > { %v8209_v21 = vrot.slane %v4833_v37, %v7318_v39  ;;  %v8212_v47 = vrot.slane %v5913_v1, %v7318_v39  ;;  %v4470_v9 = vpop.f32.mrf.mxu0  ;;  %v4748_v40 = vcombine.low %v8166_v36, %v4402_v12  ;;  %v4696_v60 = vcombine.low %v8164_v19, %v4465_v4 }
 0x87b   : > { %v4644_v55 = vcombine.low %v4620_v53, %v4636_v41  ;;  %v4645_v62 = vcombine.high %v4620_v53, %v4636_v41  ;;  %v4660_v63 = vcombine.low %v4627_v11, %v4643_v18  ;;  %v4661_v26 = vcombine.high %v4627_v11, %v4643_v18  ;;  %v4405_v20 = vpop.f32.mrf.mxu1 }
 0x87c   : > { %v4697_v45 = vcombine.high %v8164_v19, %v4465_v4  ;;  %v4756_v13 = vcombine.low %v8168_v16, %v4470_v9  ;;  %v6278_v7 = vpop.f32.mrf.mxu0  ;;  %v4856_v44 = vrot.slane %v4849_v51, %v7318_v39  ;;  %v4864_v36 = vrot.slane %v5914_v17, %v7318_v39 }
 0x87d   : > { %v4652_v22 = vrot.slane %v4644_v55, %v7327_v56  ;;  %v4659_v57 = vrot.slane %v4645_v62, %v7327_v56  ;;  %v4668_v61 = vrot.slane %v4660_v63, %v7327_v56  ;;  %v4675_v31 = vrot.slane %v4661_v26, %v7327_v56  ;;  %v6261_v30 = vpop.f32.mrf.mxu1 }
 0x87e   : > { %v4704_v58 = vrot.slane %v4696_v60, %v7318_v39  ;;  %v4711_v19 = vrot.slane %v4697_v45, %v7318_v39  ;;  %v4473_v8 = vpop.f32.mrf.mxu0  ;;  %v4755_v2 = vrot.slane %v4748_v40, %v7318_v39  ;;  %v4763_v11 = vrot.slane %v4756_v13, %v7318_v39 }
 0x87f   : > { %v4901_v16 = vcombine.low %v4652_v22, %v4659_v57  ;;  %v5915_v25 = vcombine.high %v4652_v22, %v4659_v57  ;;  %v4917_v43 = vcombine.low %v4668_v61, %v4675_v31  ;;  %v5916_v53 = vcombine.high %v4668_v61, %v4675_v31 }
 0x880   : > { %v4712_v6 = vcombine.low %v4688_v42, %v4704_v58  ;;  %v4713_v50 = vcombine.high %v4688_v42, %v4704_v58  ;;  %v4728_v24 = vcombine.low %v4695_v38, %v4711_v19  ;;  %v4729_v59 = vcombine.high %v4695_v38, %v4711_v19  ;;  %v6279_v35 = vpop.f32.mrf.mxu0 }
 0x881   : > { %v8230_v52 = vrot.slane %v4901_v16, %v7318_v39  ;;  %v8233_v23 = vrot.slane %v5915_v25, %v7318_v39  ;;  %v4924_v0 = vrot.slane %v4917_v43, %v7318_v39  ;;  %v4798_v4 = vcombine.high %v8185_v49, %v8188_v15 }
 0x882   : > { %v4720_v14 = vrot.slane %v4712_v6, %v7327_v56  ;;  %v4727_v32 = vrot.slane %v4713_v50, %v7327_v56  ;;  %v4736_v28 = vrot.slane %v4728_v24, %v7327_v56  ;;  %v4743_v34 = vrot.slane %v4729_v59, %v7327_v56 }
 0x883   : > { %v4814_v10 = vcombine.high %v8201_v29, %v8204_v46  ;;  %v4866_v3 = vcombine.high %v8209_v21, %v8212_v47  ;;  %v4932_v1 = vrot.slane %v5916_v53, %v7318_v39  ;;  %v4764_v51 = vcombine.low %v4755_v2, %v4763_v11 }
 0x884   : > { %v4969_v33 = vcombine.low %v4720_v14, %v4727_v32  ;;  %v5917_v27 = vcombine.high %v4720_v14, %v4727_v32  ;;  %v4985_v12 = vcombine.low %v4736_v28, %v4743_v34  ;;  %v5918_v37 = vcombine.high %v4736_v28, %v4743_v34 }
 0x885   : > { %v4812_v17 = vrot.slane %v4798_v4, %v7327_v56  ;;  %v4828_v54 = vrot.slane %v4814_v10, %v7327_v56  ;;  %v4880_v42 = vrot.slane %v4866_v3, %v7327_v56  ;;  %v4882_v55 = vcombine.high %v4856_v44, %v4864_v36 }
 0x886   : > { %v4976_v41 = vrot.slane %v4969_v33, %v7318_v39  ;;  %v4984_v18 = vrot.slane %v5917_v27, %v7318_v39  ;;  %v4992_v48 = vrot.slane %v4985_v12, %v7318_v39  ;;  %v5000_v38 = vrot.slane %v5918_v37, %v7318_v39 }
 0x887   : > { %v4831_v9 = vcombine.low %v4812_v17, %v4828_v54  ;;  %v4797_v62 = vcombine.low %v8185_v49, %v8188_v15  ;;  %v4813_v63 = vcombine.low %v8201_v29, %v8204_v46  ;;  %v4865_v26 = vcombine.low %v8209_v21, %v8212_v47 }
 0x888   : > { %v4881_v20 = vcombine.low %v4856_v44, %v4864_v36  ;;  %v4832_v40 = vcombine.high %v4812_v17, %v4828_v54  ;;  %v4896_v60 = vrot.slane %v4882_v55, %v7327_v56  ;;  %v4934_v13 = vcombine.high %v8230_v52, %v8233_v23 }
 0x889   : > { %v8263_v45 = vrot.slane %v4797_v62, %v7327_v56  ;;  %v4950_v7 = vcombine.high %v4924_v0, %v4932_v1  ;;  %v8268_v22 = vrot.slane %v4813_v63, %v7327_v56  ;;  %v8271_v49 = vrot.slane %v4865_v26, %v7327_v56 }
 0x88a   : > { %v8274_v15 = vrot.slane %v4881_v20, %v7327_v56  ;;  %v5002_v29 = vcombine.high %v4976_v41, %v4984_v18  ;;  %v5043_v46 = vrot.slane %v4764_v51, %v7327_v56  ;;  %v4899_v21 = vcombine.low %v4880_v42, %v4896_v60 }
 0x88b   : > { %v4900_v47 = vcombine.high %v4880_v42, %v4896_v60  ;;  %v4948_v57 = vrot.slane %v4934_v13, %v7327_v56  ;;  %v4829_v61 = vcombine.low %v8263_v45, %v8268_v22  ;;  %v4830_v31 = vcombine.high %v8263_v45, %v8268_v22 }
 0x88c   : > { %v4898_v30 = vcombine.high %v8271_v49, %v8274_v15  ;;  %v4897_v44 = vcombine.low %v8271_v49, %v8274_v15  ;;  %v6473_v36 = vpack.i.bf16 %v4899_v21, %v4831_v9  ;;  %v4964_v19 = vrot.slane %v4950_v7, %v7327_v56 }
 0x88d   : > { %v6478_v58 = vpack.i.bf16 %v4900_v47, %v4832_v40  ;;  %v5016_v8 = vrot.slane %v5002_v29, %v7327_v56  ;;  %v5018_v25 = vcombine.high %v4992_v48, %v5000_v38  ;;  %v4933_v43 = vcombine.low %v8230_v52, %v8233_v23 }
 0x88e   : > { %v6468_v16 = vpack.i.bf16 %v4898_v30, %v4830_v31  ;;  %v4949_v2 = vcombine.low %v4924_v0, %v4932_v1  ;;  %6474 = vrot.lane.b32.xlu0 %v6473_v36, %s6733_s21  ;;  %v5001_v6 = vcombine.low %v4976_v41, %v4984_v18  ;;  %v5017_v50 = vcombine.low %v4992_v48, %v5000_v38 }
 0x88f   : > { %v5050_v24 = vrot.slane %v5043_v46, %v7318_v39  ;;  %v5032_v59 = vrot.slane %v5018_v25, %v7327_v56  ;;  %v4941_v35 = vrot.slane %v4933_v43, %v7327_v56  ;;  %v4968_v23 = vcombine.high %v4948_v57, %v4964_v19 }
 0x890   : > { %6469 = vrot.lane.b32.xlu1 %v6468_v16, %s6734_s1  ;;  %v4957_v53 = vrot.slane %v4949_v2, %v7327_v56  ;;  %v5009_v11 = vrot.slane %v5001_v6, %v7327_v56  ;;  %v5025_v52 = vrot.slane %v5017_v50, %v7327_v56  ;;  %v4967_v33 = vcombine.low %v4948_v57, %v4964_v19  ;;  %v6622_v50 = vld [vmem:[#allocation2] sm:$0xff] }
 0x891   : > { %v5036_v14 = vcombine.high %v5016_v8, %v5032_v59  ;;  %v5051_v0 = vcombine.high %v5050_v24, %v6725_v5  ;;  %v5035_v3 = vcombine.low %v5016_v8, %v5032_v59  ;;  %v5058_v37 = vrot.slane %v5050_v24, %v7327_v56 }
 0x892   : > { %v4966_v32 = vcombine.high %v4941_v35, %v4957_v53  ;;  %v5034_v28 = vcombine.high %v5009_v11, %v5025_v52  ;;  %v4965_v34 = vcombine.low %v4941_v35, %v4957_v53  ;;  %v5033_v4 = vcombine.low %v5009_v11, %v5025_v52  ;;  %v6623_v11 = vld [vmem:[#allocation2 + $0x8] sm:$0xff] }
 0x893   : > { %v6493_v39 = vpack.i.bf16 %v5036_v14, %v4968_v23  ;;  %v5065_v27 = vrot.slane %v5051_v0, %v7327_v56  ;;  %v6488_v12 = vpack.i.bf16 %v5035_v3, %v4967_v33  ;;  %v5066_v1 = vcombine.high %v5058_v37, %v6725_v5 }
 0x894   : > { %6479 = vrot.lane.b32.xlu1 %v6478_v58, %s6735_s5  ;;  %v6483_v10 = vpack.i.bf16 %v5034_v28, %v4966_v32  ;;  %v6624_v28 = vld [vmem:[#allocation2 + $0x10] sm:$0xff] }
 0x895   : > { %6494 = vrot.lane.b32.xlu0 %v6493_v39, %s6735_s5  ;;  %v5067_v51 = vcombine.high %v5065_v27, %v6725_v5 }
 0x898   : > { %6484 = vrot.lane.b32.xlu1 %v6483_v10, %s6734_s1  ;;  %v6625_v10 = vld [vmem:[#allocation2 + $0x18] sm:$0xff] }
 0x899   : > { %5101 = vrot.lane.b32.xlu0 %v5065_v27, %s6733_s21 }
 0x89c   : > { %6489 = vrot.lane.b32.xlu1 %v6488_v12, %s6733_s21  ;;  %s8560_s21 = sld [smem:[#allocation31_spill]] (!%p5938_p1) }
 0x8a0   : > { %5081 = vrot.lane.b32.xlu1 %v5066_v1, %s6734_s1 }
 0x8a4   : > { %5121 = vrot.lane.b32.xlu1 %v5067_v51, %s6735_s5 }
 0x900   : > { %v6475_v17 = vpop.permute.xlu0 %6474 }
 0x901   : > { %v6477_v48 = vunpack.i.h.bf16 %v6475_v17  ;;  %v6476_v42 = vunpack.i.l.bf16 %v6475_v17 }
 0x902   : > { %v6470_v54 = vpop.permute.xlu1 %6469 }
 0x903   : > { %v6472_v41 = vunpack.i.h.bf16 %v6470_v54  ;;  %v6471_v18 = vunpack.i.l.bf16 %v6470_v54 }
 0x905   : > { %v5128_v38 = vsel %vm3670_vm7, %v4829_v61, %v6471_v18  ;;  %v5129_v9 = vsel %vm3670_vm7, %v4897_v44, %v6472_v41 }
 0x906   : > { %v6480_v56 = vpop.permute.xlu1 %6479  ;;  %v5134_v63 = vsel %vm5133_vm11, %v5128_v38, %v6476_v42  ;;  %v5135_v26 = vsel %vm5133_vm11, %v5129_v9, %v6477_v48 }
 0x907   : > { %v6482_v55 = vunpack.i.h.bf16 %v6480_v56  ;;  %v6481_v62 = vunpack.i.l.bf16 %v6480_v56  ;;  %v6495_v22 = vpop.permute.xlu0 %6494 }
 0x908   : > { %v6497_v46 = vunpack.i.h.bf16 %v6495_v22  ;;  %v6496_v21 = vunpack.i.l.bf16 %v6495_v22 }
 0x909   : > { %v5140_v20 = vsel %vm5139_vm12, %v5134_v63, %v6481_v62  ;;  %v5141_v40 = vsel %vm5139_vm12, %v5135_v26, %v6482_v55 }
 0x90a   : > { %v5145_v60 = vpack.c.bf16 %v5141_v40, %v5140_v20  ;;  %v6485_v45 = vpop.permute.xlu1 %6484 }
 0x90b   : > { %v6487_v13 = vunpack.i.h.bf16 %v6485_v45  ;;  %v6486_v7 = vunpack.i.l.bf16 %v6485_v45  ;;  %v5102_v8 = vpop.permute.xlu0 %5101 }
 0x90c   : > { %6285 = vmatmul.mubr.msk.bf16.vlgmr.msra.gmra.mxu1 %vm1402_vm4, %v5145_v60 }
 0x90d   : > { %6288 = vmatprep.mubr.msk.bf16.mxu1 %vm6726_vm6, %v6725_v5  ;;  %v5130_v47 = vsel %vm3670_vm7, %v4965_v34, %v6486_v7  ;;  %v5131_v57 = vsel %vm3670_vm7, %v5033_v4, %v6487_v13 }
 0x90e   : > { %v6490_v49 = vpop.permute.xlu1 %6489 }
 0x90f   : > { %v6492_v15 = vunpack.i.h.bf16 %v6490_v49  ;;  %v6491_v29 = vunpack.i.l.bf16 %v6490_v49 }
 0x911   : > { %v5136_v61 = vsel %vm5133_vm11, %v5130_v47, %v6491_v29  ;;  %v5137_v31 = vsel %vm5133_vm11, %v5131_v57, %v6492_v15 }
 0x912   : > { %v5082_v30 = vpop.permute.xlu1 %5081  ;;  %v5142_v44 = vsel %vm5139_vm12, %v5136_v61, %v6496_v21  ;;  %v5143_v36 = vsel %vm5139_vm12, %v5137_v31, %v6497_v46  ;;  %v6506_v31 = vld [vmem:[%s6970_s10 + $0x8] sm:$0xff]  }
 0x913   : > { %v5146_v58 = vpack.c.bf16 %v5143_v36, %v5142_v44  ;;  %v5132_v19 = vsel %vm3670_vm7, %v5058_v37, %v5082_v30  ;;  %v6626_v37 = vld [vmem:[#allocation2 + $0x20] sm:$0x1]  ;;  %6297 = vmatpush3.bf16.msra.mxu0 %v6506_v31 }
 0x914   : > { %v5138_v25 = vsel %vm5133_vm11, %v5132_v19, %v5102_v8  ;;  %v6507_v30 = vld [vmem:[%s6970_s10] sm:$0xff]   ;;  %6298 = vmatprep.subr.bf16.mxu0 %v6725_v5 }
 0x915   : > { %6289 = vmatmul.mubr.msk.bf16.gmra.mxu1 %vm1402_vm4, %v5146_v58 }
 0x916   : > { %v5122_v16 = vpop.permute.xlu1 %5121  ;;  %6292 = vmatprep.mubr.msk.bf16.mxu1 %vm6726_vm6, %v6725_v5 }
 0x917   : > { %v5144_v43 = vsel %vm5139_vm12, %v5138_v25, %v5122_v16  ;;  %6299 = vmatpush3.bf16.msra.mxu0 %v6507_v30 }
 0x918   : > { %v5147_v2 = vpack.c.bf16 %v5144_v43, %v5144_v43 }
 0x91d   : > { %6293 = vmatmul.mubr.msk.bf16.gmra.mxu1 %vm1402_vm4, %v5147_v2 }
 0x91e   : > { %6320 = vmatprep.mubr.msk.bf16.mxu1 %vm6726_vm6, %v6725_v5 }
 0x9cc   : > { %v5203_v6 = vpop.f32.mrf.mxu1 }
 0x9cd   : > { %v8328_v24 = vadd.f32 %v6622_v50, %v5203_v6 }
 0x9ce   : > { %v6286_v59 = vpop.f32.mrf.mxu1 }
 0x9cf   : > { %v5225_v35 = vsel %vm1402_vm4, %v8328_v24, 0.0 }
 0x9d0   : > { %v5206_v53 = vpop.f32.mrf.mxu1  ;;  %5226 = vadd.xlane.f32.xlu0 %v5225_v35 }
 0x9d1   : > { %v8332_v52 = vadd.f32 %v6623_v11, %v5206_v53 }
 0x9d2   : > { %v6287_v23 = vpop.f32.mrf.mxu1 }
 0x9d3   : > { %v5228_v14 = vsel %vm1402_vm4, %v8332_v52, 0.0 }
 0x9d4   : > { %5229 = vadd.xlane.f32.xlu1 %v5228_v14  ;;  %v5924_v14 = vld [vmem:[%s828_s18] ss:$0 sm:$0xff] }
 0x9d5   : > { %v5211_v32 = vpop.f32.mrf.mxu1 }
 0x9d6   : > { %v8336_v34 = vadd.f32 %v6624_v28, %v5211_v32 }
 0x9d7   : > { %v6290_v39 = vpop.f32.mrf.mxu1 }
 0x9d8   : > { %v5231_v0 = vsel %vm1402_vm4, %v8336_v34, 0.0 }
 0x9d9   : > { %v5214_v4 = vpop.f32.mrf.mxu1  ;;  %5232 = vadd.xlane.f32.xlu0 %v5231_v0 }
 0x9da   : > { %v8340_v3 = vadd.f32 %v6625_v10, %v5214_v4  ;;  %v5925_v4 = vld [vmem:[%s8556_s3] ss:$0 sm:$0xff] }
 0x9db   : > { %v6291_v33 = vpop.f32.mrf.mxu1 }
 0x9dc   : > { %v5234_v27 = vsel %vm1402_vm4, %v8340_v3, 0.0 }
 0x9dd   : > { %5235 = vadd.xlane.f32.xlu0 %v5234_v27  ;;  %v5219_v12 = vpop.f32.mrf.mxu1 }
 0x9de   : > { %v8344_v1 = vadd.f32 %v6626_v37, %v5219_v12 }
 0x9df   : > { %v6294_v51 = vpop.f32.mrf.mxu1 }
 0x9e0   : > { %v5237_v17 = vsel %vm1415_vm5, %v8344_v1, 0.0 }
 0x9e1   : > { %5238 = vadd.xlane.f32.xlu0 %v5237_v17  ;;  %v5222_v54 = vpop.f32.mrf.mxu1 }
 0x9e3   : > { %v6295_v41 = vpop.f32.mrf.mxu1 }
 0xa59   : > { %v5227_v18 = vpop.xlane.xlu0 %5226 }
 0xa5a   : > { %v5240_v48 = vmul.f32 0.03125, %v5227_v18 }
 0xa5c   : > { %v5245_v42 = vsub.f32 %v8328_v24, %v5240_v48 }
 0xa5d   : > { %v5230_v38 = vpop.xlane.xlu1 %5229 }
 0xa5e   : > { %v5241_v9 = vmul.f32 0.03125, %v5230_v38  ;;  %v5250_v56 = vmul.f32 %v5245_v42, %v5245_v42 }
 0xa60   : > { %v5246_v55 = vsub.f32 %v8332_v52, %v5241_v9  ;;  %v5255_v62 = vsel %vm1402_vm4, %v5250_v56, 0.0 }
 0xa61   : > { %5256 = vadd.xlane.f32.xlu1 %v5255_v62 }
 0xa62   : > { %v5233_v63 = vpop.xlane.xlu0 %5232  ;;  %v5251_v26 = vmul.f32 %v5246_v55, %v5246_v55 }
 0xa63   : > { %v5242_v20 = vmul.f32 0.03125, %v5233_v63 }
 0xa64   : > { %v5258_v40 = vsel %vm1402_vm4, %v5251_v26, 0.0  ;;  %v6508_v26 = vld [vmem:[%s6976_s30 + $0x18] sm:$0xff]  }
 0xa65   : > { %v5247_v60 = vsub.f32 %v8336_v34, %v5242_v20  ;;  %5259 = vadd.xlane.f32.xlu0 %v5258_v40  ;;  %6313 = vmatpush3.bf16.msra.mxu1 %v6508_v26  ;;  %v6509_v20 = vld [vmem:[%s6976_s30 + $0x10] sm:$0xff]   ;;  %v6510_v40 = vld [vmem:[%s6976_s30 + $0x8] sm:$0xff]  }
 0xa66   : > { %v5236_v45 = vpop.xlane.xlu0 %5235  ;;  %6314 = vmatprep.subr.bf16.mxu1 %v6725_v5 }
 0xa67   : > { %v5243_v13 = vmul.f32 0.03125, %v5236_v45  ;;  %v5252_v7 = vmul.f32 %v5247_v60, %v5247_v60 }
 0xa69   : > { %v5248_v22 = vsub.f32 %v8340_v3, %v5243_v13  ;;  %v5261_v49 = vsel %vm1402_vm4, %v5252_v7, 0.0  ;;  %6315 = vmatpush3.bf16.msra.mxu1 %v6509_v20 }
 0xa6a   : > { %5262 = vadd.xlane.f32.xlu1 %v5261_v49  ;;  %v5239_v15 = vpop.xlane.xlu0 %5238  ;;  %6316 = vmatprep.subr.bf16.mxu1 %v6725_v5 }
 0xa6b   : > { %v5244_v29 = vmul.f32 0.03125, %v5239_v15  ;;  %v5253_v46 = vmul.f32 %v5248_v22, %v5248_v22 }
 0xa6d   : > { %v5249_v21 = vsub.f32 %v8344_v1, %v5244_v29  ;;  %v5264_v47 = vsel %vm1402_vm4, %v5253_v46, 0.0  ;;  %6317 = vmatpush3.bf16.msra.mxu1 %v6510_v40 }
 0xa6e   : > { %5265 = vadd.xlane.f32.xlu0 %v5264_v47  ;;  %6318 = vmatprep.subr.bf16.mxu1 %v6725_v5 }
 0xa6f   : > { %v5254_v57 = vmul.f32 %v5249_v21, %v5249_v21 }
 0xa71   : > { %v5267_v61 = vsel %vm1415_vm5, %v5254_v57, 0.0 }
 0xa72   : > { %5268 = vadd.xlane.f32.xlu1 %v5267_v61 }
 0xaea   : > { %v5257_v44 = vpop.xlane.xlu1 %5256 }
 0xaeb   : > { %v5270_v36 = vmul.f32 0.03125, %v5257_v44 }
 0xaed   : > { %v5275_v58 = vadd.f32 1e-05, %v5270_v36 }
 0xaee   : > { %v5260_v19 = vpop.xlane.xlu0 %5259 }
 0xaef   : > { %6602 = vrsqrt.f32 %v5275_v58  ;;  %v5271_v8 = vmul.f32 0.03125, %v5260_v19 }
 0xaf1   : > { %v5276_v16 = vadd.f32 1e-05, %v5271_v8 }
 0xaf3   : > { %6604 = vrsqrt.f32 %v5276_v16  ;;  %v5263_v25 = vpop.xlane.xlu1 %5262 }
 0xaf4   : > { %v5272_v43 = vmul.f32 0.03125, %v5263_v25 }
 0xaf6   : > { %v5277_v2 = vadd.f32 1e-05, %v5272_v43 }
 0xaf7   : > { %v5266_v6 = vpop.xlane.xlu0 %5265 }
 0xaf8   : > { %6606 = vrsqrt.f32 %v5277_v2  ;;  %v5273_v50 = vmul.f32 0.03125, %v5266_v6 }
 0xafa   : > { %v5278_v59 = vadd.f32 1e-05, %v5273_v50 }
 0xafb   : > { %v5269_v35 = vpop.xlane.xlu1 %5268 }
 0xafc   : > { %v6603_v53 = vpop.eup %6602  ;;  %6608 = vrsqrt.f32 %v5278_v59  ;;  %v5274_v11 = vmul.f32 0.03125, %v5269_v35 }
 0xafd   : > { %v5285_v23 = vmul.f32 %v6603_v53, %v5245_v42 }
 0xafe   : > { %v5279_v32 = vadd.f32 1e-05, %v5274_v11 }
 0xaff   : > { %v5296_v39 = vmul.f32 %v5924_v14, %v5285_v23 }
 0xb00   : > { %v6605_v28 = vpop.eup %6604  ;;  %6610 = vrsqrt.f32 %v5279_v32 }
 0xb01   : > { %v5286_v0 = vmul.f32 %v6605_v28, %v5246_v55  ;;  %v5307_v27 = vadd.f32 %v5925_v4, %v5296_v39 }
 0xb03   : > { %v5297_v10 = vmul.f32 %v5924_v14, %v5286_v0 }
 0xb05   : > { %v6607_v33 = vpop.eup %6606  ;;  %v5308_v12 = vadd.f32 %v5925_v4, %v5297_v10 }
 0xb06   : > { %v5287_v37 = vmul.f32 %v6607_v33, %v5247_v60  ;;  %v6511_v60 = vld [vmem:[%s6976_s30] sm:$0xff]   ;;  %s8557_s30 = sld [smem:[#allocation30_spill]] (!%p5938_p1) }
 0xb07   : > { %v5312_v51 = vpack.c.bf16 %v5308_v12, %v5307_v27  ;;  %6319 = vmatpush3.bf16.msra.mxu1 %v6511_v60 }
 0xb08   : > { %v5298_v41 = vmul.f32 %v5924_v14, %v5287_v37 }
 0xb09   : > { %v6609_v17 = vpop.eup %6608  ;;  %6301 = vmatmul.mubr.msk.bf16.vlgmr.msra.gmra.mxu0 %vm1402_vm4, %v5312_v51 }
 0xb0a   : > { %6304 = vmatprep.mubr.msk.bf16.mxu0 %vm6726_vm6, %v6725_v5  ;;  %v5288_v54 = vmul.f32 %v6609_v17, %v5248_v22  ;;  %v5309_v42 = vadd.f32 %v5925_v4, %v5298_v41 }
 0xb0c   : > { %v5299_v18 = vmul.f32 %v5924_v14, %v5288_v54 }
 0xb0d   : > { %v6611_v48 = vpop.eup %6610 }
 0xb0e   : > { %v5310_v38 = vadd.f32 %v5925_v4, %v5299_v18  ;;  %v5289_v9 = vmul.f32 %v6611_v48, %v5249_v21 }
 0xb10   : > { %v5313_v56 = vpack.c.bf16 %v5310_v38, %v5309_v42  ;;  %v5300_v55 = vmul.f32 %v5924_v14, %v5289_v9 }
 0xb12   : > { %6305 = vmatmul.mubr.msk.bf16.gmra.mxu0 %vm1402_vm4, %v5313_v56  ;;  %v5311_v62 = vadd.f32 %v5925_v4, %v5300_v55 }
 0xb13   : > { %6308 = vmatprep.mubr.msk.bf16.mxu0 %vm6726_vm6, %v6725_v5 }
 0xb14   : > { %v5314_v63 = vpack.c.bf16 %v5311_v62, %v5311_v62 }
 0xb1a   : > { %6309 = vmatmul.mubr.msk.bf16.gmra.mxu0 %vm1402_vm4, %v5314_v63 }
 0xbc9   : > { %v5370_v45 = vpop.f32.mrf.mxu0 }
 0xbca   : > { %v5397_v13 = vmul.f32 0.70710677, %v5370_v45  ;;  %v5392_v8 = vmul.f32 0.5, %v5370_v45 }
 0xbcb   : > { %v6302_v7 = vpop.f32.mrf.mxu0 }
 0xbcc   : > { %6612 = verf.f32 %v5397_v13 }
 0xbcd   : > { %v5373_v22 = vpop.f32.mrf.mxu0 }
 0xbce   : > { %v5398_v49 = vmul.f32 0.70710677, %v5373_v22  ;;  %v5393_v16 = vmul.f32 0.5, %v5373_v22 }
 0xbcf   : > { %v6303_v15 = vpop.f32.mrf.mxu0 }
 0xbd0   : > { %6614 = verf.f32 %v5398_v49 }
 0xbd2   : > { %v5378_v29 = vpop.f32.mrf.mxu0 }
 0xbd3   : > { %v5399_v46 = vmul.f32 0.70710677, %v5378_v29  ;;  %v5394_v23 = vmul.f32 0.5, %v5378_v29 }
 0xbd4   : > { %v6306_v21 = vpop.f32.mrf.mxu0 }
 0xbd5   : > { %6616 = verf.f32 %v5399_v46 }
 0xbd6   : > { %v5381_v47 = vpop.f32.mrf.mxu0 }
 0xbd7   : > { %v5400_v57 = vmul.f32 0.70710677, %v5381_v47  ;;  %v5395_v14 = vmul.f32 0.5, %v5381_v47 }
 0xbd8   : > { %v6307_v61 = vpop.f32.mrf.mxu0 }
 0xbd9   : > { %v6613_v31 = vpop.eup %6612  ;;  %6618 = verf.f32 %v5400_v57 }
 0xbda   : > { %v5386_v30 = vpop.f32.mrf.mxu0  ;;  %v5407_v36 = vadd.f32 1.0, %v6613_v31 }
 0xbdb   : > { %v5401_v44 = vmul.f32 0.70710677, %v5386_v30  ;;  %v5396_v33 = vmul.f32 0.5, %v5386_v30 }
 0xbdc   : > { %v6310_v58 = vpop.f32.mrf.mxu0  ;;  %v5412_v2 = vmul.f32 %v5407_v36, %v5392_v8 }
 0xbdd   : > { %v6615_v19 = vpop.eup %6614  ;;  %6620 = verf.f32 %v5401_v44 }
 0xbde   : > { %v5408_v25 = vadd.f32 1.0, %v6615_v19  ;;  %v5389_v43 = vpop.f32.mrf.mxu0 }
 0xbe0   : > { %v5413_v6 = vmul.f32 %v5408_v25, %v5393_v16  ;;  %v6311_v50 = vpop.f32.mrf.mxu0 }
 0xbe2   : > { %v6617_v59 = vpop.eup %6616  ;;  %v5417_v35 = vpack.c.bf16 %v5413_v6, %v5412_v2 }
 0xbe3   : > { %v5409_v53 = vadd.f32 1.0, %v6617_v59 }
 0xbe4   : > { %6321 = vmatmul.mubr.msk.bf16.vlgmr.msra.gmra.mxu1 %vm5444_vm13, %v5417_v35 }
 0xbe5   : > { %6324 = vmatprep.mubr.msk.bf16.mxu1 %vm6726_vm6, %v6725_v5  ;;  %v5414_v28 = vmul.f32 %v5409_v53, %v5394_v23 }
 0xbe6   : > { %v6619_v11 = vpop.eup %6618 }
 0xbe7   : > { %v5410_v32 = vadd.f32 1.0, %v6619_v11 }
 0xbe9   : > { %v5415_v39 = vmul.f32 %v5410_v32, %v5395_v14 }
 0xbea   : > { %v6621_v0 = vpop.eup %6620 }
 0xbeb   : > { %v5418_v4 = vpack.c.bf16 %v5415_v39, %v5414_v28  ;;  %v5411_v10 = vadd.f32 1.0, %v6621_v0 }
 0xbed   : > { %6325 = vmatmul.mubr.msk.bf16.gmra.mxu1 %vm5444_vm13, %v5418_v4  ;;  %v5416_v27 = vmul.f32 %v5411_v10, %v5396_v33 }
 0xbee   : > { %6328 = vmatprep.mubr.msk.bf16.mxu1 %vm6726_vm6, %v6725_v5 }
 0xbef   : > { %v5419_v12 = vpack.c.bf16 %v5416_v27, %v5416_v27 }
 0xbf5   : > { %6329 = vmatmul.mubr.msk.bf16.gmra.mxu1 %vm5444_vm13, %v5419_v12 }
 0xca4   : > { %v5488_v37 = vpop.f32.mrf.mxu1 }
 0xca5   : > { %v5489_v51 = vadd.f32 %v5488_v37, %v8328_v24 }
 0xca6   : > { %v6322_v17 = vpop.f32.mrf.mxu1 }
 0xca7   : > { %5510 = vst.msk [vmem:[#allocation2] sm:$0xff] %vm1402_vm4, %v5489_v51 }
 0xca8   : > { %v5491_v54 = vpop.f32.mrf.mxu1 }
 0xca9   : > { %v5492_v41 = vadd.f32 %v5491_v54, %v8332_v52 }
 0xcaa   : > { %v6323_v18 = vpop.f32.mrf.mxu1 }
 0xcab   : > { %5511 = vst.msk [vmem:[#allocation2 + $0x8] sm:$0xff] %vm1402_vm4, %v5492_v41 }
 0xcad   : > { %v5496_v48 = vpop.f32.mrf.mxu1 }
 0xcae   : > { %v5497_v42 = vadd.f32 %v5496_v48, %v8336_v34 }
 0xcaf   : > { %v6326_v5 = vpop.f32.mrf.mxu1 }
 0xcb0   : > { %5512 = vst.msk [vmem:[#allocation2 + $0x10] sm:$0xff] %vm1402_vm4, %v5497_v42 }
 0xcb1   : > { %v5499_v38 = vpop.f32.mrf.mxu1 }
 0xcb2   : > { %v5500_v9 = vadd.f32 %v5499_v38, %v8340_v3 }
 0xcb3   : > { %v6327_v56 = vpop.f32.mrf.mxu1 }
 0xcb4   : > { %5513 = vst.msk [vmem:[#allocation2 + $0x18] sm:$0xff] %vm1402_vm4, %v5500_v9 }
 0xcb5   : > { %v5504_v24 = vpop.f32.mrf.mxu1 }
 0xcb6   : > { %v5505_v55 = vadd.f32 %v5504_v24, %v8344_v1 }
 0xcb7   : > { %v6330_v62 = vpop.f32.mrf.mxu1  ;;  %5518 = sbr.rel (%p5938_p1) target bundleno = 3769 (0xeb9), region = 112 }
 0xcb8   : > { %5514 = vst.msk [vmem:[#allocation2 + $0x20] sm:$0x1] %vm1415_vm5, %v5505_v55 }
 0xcb9   : > { %v5507_v52 = vpop.f32.mrf.mxu1 }
 0xcbb   : > { %v6331_v63 = vpop.f32.mrf.mxu1 }
 0xcbc   : > { %v5521_v34 = vsel %vm1415_vm5, %v5489_v51, 0.0  ;;  %v6627_v1 = vld [vmem:[%s8557_s30 + $0x8] sm:$0xff]   ;;  %v6736_v45 = vmov 0.0   ;;  %vm6737_vm14 = vmmov 0   ;;  %v6628_v13 = vld [vmem:[%s8557_s30] sm:$0xff]  }
 0xcbd   : > { %5522 = vadd.xlane.f32.xlu0 %v5521_v34  ;;  %6332 = vmatprep.subr.bf16.mxu0 %v6736_v45  ;;  %v5519_v29 = vld [vmem:[%s8558_s11] sm:$0x1] }
 0xcbe   : > { %6336 = vmatprep.mubr.msk.bf16.mxu0 %vm6737_vm14, %v6736_v45  ;;  %6333 = vmatpush3.bf16.msra.mxu0 %v6627_v1  ;;  %v5520_v21 = vld [vmem:[%s8559_s26] sm:$0x1] }
 0xcbf   : > { %6334 = vmatprep.subr.bf16.mxu0 %v6736_v45  ;;  %v5541_v31 = vld [vmem:[%s8560_s21] sm:$0x1] }
 0xcc2   : > { %6335 = vmatpush3.bf16.msra.mxu0 %v6628_v13 }
 0xd46   : > { %v5523_v26 = vpop.xlane.xlu0 %5522 }
 0xd47   : > { %v5524_v20 = vmul.f32 0.03125, %v5523_v26 }
 0xd49   : > { %v5525_v3 = vsub.f32 %v5489_v51, %v5524_v20 }
 0xd4b   : > { %v5526_v40 = vmul.f32 %v5525_v3, %v5525_v3 }
 0xd4d   : > { %v5527_v60 = vsel %vm1415_vm5, %v5526_v40, 0.0 }
 0xd4e   : > { %5528 = vadd.xlane.f32.xlu0 %v5527_v60 }
 0xdd7   : > { %v5529_v7 = vpop.xlane.xlu0 %5528 }
 0xdd8   : > { %v5530_v22 = vmul.f32 0.03125, %v5529_v7 }
 0xdda   : > { %v5531_v49 = vadd.f32 1e-05, %v5530_v22 }
 0xddc   : > { %6629 = vrsqrt.f32 %v5531_v49 }
 0xde9   : > { %v6630_v15 = vpop.eup %6629 }
 0xdea   : > { %v5533_v46 = vmul.f32 %v6630_v15, %v5525_v3 }
 0xdec   : > { %v5534_v47 = vmul.f32 %v5533_v46, %v5519_v29 }
 0xdee   : > { %v5535_v57 = vadd.f32 %v5534_v47, %v5520_v21 }
 0xdf0   : > { %v5536_v61 = vpack.c.bf16 %v5535_v57, %v5535_v57 }
 0xdf2   : > { %6337 = vmatmul.mubr.msk.bf16.vlgmr.msra.gmra.mxu0 %vm1402_vm4, %v5536_v61 }
 0xeb2   : > { %v5591_v30 = vpop.f32.mrf.mxu0 }
 0xeb3   : > { %v5592_v44 = vadd.f32 %v5591_v30, %v5541_v31 }
 0xeb4   : > { %v6338_v36 = vpop.f32.mrf.mxu0 }
 0xeb5   : > { %5597 = vst [vmem:[%s6980_s12] sm:$0x1] %v5592_v44 }
 0xeb6   : > { %v5594_v58 = vpop.f32.mrf.mxu0 }
 0xeb8   : > { %v6339_v19 = vpop.f32.mrf.mxu0 }
 0xeb9 PF: > { %s8561_s1 = sld [smem:[#allocation8_spill]]  ;;  %s5611_s2 = sshll.u32 %s6980_s12, 4  ;;  %s5612_s2 = int_to_ptr.vmem [resolvable:$true] %s5611_s2 }
 0xeba   : > { %s8563_s9 = sld [smem:[#allocation32_spill]]  ;;  %s8564_s18 = sand.u32 1, %s6699_s25  }
 0xebb   : > { %s5599_s27 = scalar_lea.sflag [#allocation4], %s8564_s18  ;;  %s6631_s17 = scalar_lea.vmem %s5612_s2, 16 }
 0xebc   : > { %p6632_p2 = scmp.ne.s32.totalorder %s5612_s2, %s6631_s17  ;;  %s6738_s22 = smov [#allocation3]  }
 0xebd   : > { %s6635_s28 = sshll.u32 %s6738_s22, 4  ;;  %s6636_s28 = int_to_ptr.vmem [resolvable:$false] %s6635_s28 }
 0xebe   : > { %p6633_p4 = pnand %p6632_p2, %p6898_p3  ;;  %s6637_s11 = scalar_lea.vmem %s6636_s28, 32 }
 0xebf   : > { %s5942_s10 = sshll.u32 %s8561_s1, 4  ;;  %p6638_p6 = scmp.lt.s32.totalorder %s5612_s2, %s6636_s28 }
 0xec0   : > { %s5609_s3 = scalar_lea.hbm %s8563_s9, %s5942_s10  ;;  %p6634_p5 = pneg %p6633_p4 }
 0xec1   : > { %p6639_p7 = scmp.lt.s32.totalorder %s6637_s11, %s6631_s17 }
 0xec3   : > { %p6640_p8 = por %p6639_p7, %p6638_p6 }
 0xec5   : > { %p6641_p10 = pnand %p6640_p8, %p6634_p5 }
 0xec7   : > { %6644 = shalt.err (!%p6641_p10)
}
 0xec8   : > { %s6645_s29 = scalar_lea.hbm %s5609_s3, 16  ;;  %s6649_s26 = scalar_lea.hbm %s8563_s9, 32 }
 0xec9   : > { %p6646_p11 = scmp.ne.s32.totalorder %s5609_s3, %s6645_s29  ;;  %p6650_p0 = scmp.lt.s32.totalorder %s5609_s3, %s8563_s9 }
 0xeca   : > { %p6651_p1 = scmp.lt.s32.totalorder %s6649_s26, %s6645_s29 }
 0xecb   : > { %p6647_p12 = pnand %p6646_p11, %p6898_p3 }
 0xecc   : > { %p6652_p2 = por %p6651_p1, %p6650_p0 }
 0xecd   : > { %p6648_p13 = pneg %p6647_p12 }
 0xecf   : > { %p6653_p4 = pnand %p6652_p2, %p6648_p13 }
 0xed1   : > { %6656 = shalt.err (!%p6653_p4)
}
 0xed2   : > { %6340 = dma.vmem_to_hbm [thread:$0]  (%p6898_p3), %s5612_s2, 16, %s5609_s3, %s5599_s27  }
 0xed3 PF: > { %s8565_s21 = sld [smem:[#allocation11_spill]] }
 0xed4   : > { %s8566_s1 = sld [smem:[#allocation6_spill]] }
 0xed9   : > { %p6346_p5 = scmp.ge.s32.totalorder %s8565_s21, 2 }
 0xeda   : > { %s5623_s19 = sand.u32 1, %s8566_s1  }
 0xedb   : > { %p6343_p6 = pnand %p6346_p5, %p6908_p9  ;;  %s5624_s0 = scalar_lea.sflag [#allocation4], %s5623_s19 }
 0xedd   : > { %p6344_p7 = pneg %p6343_p6 }
 0xedf   : > { %6690 = dma.done.wait (%p6344_p7), %s5624_s0, 16  }
 0xee0   : > { %6692 = vsyncadd (%p6344_p7), %s5624_s0, 4294967280  ;;  %s34_s0 = sadd.s32 1, %s8565_s21   ;;  %s8568_s18 = sld [smem:[#allocation7_spill]] }
 0xee1   : > { %p31_p8 = scmp.ge.s32.totalorder %s34_s0, 6   ;;  %s8569_s26 = sld [smem:[#allocation16_spill]] }
 0xee2   : > { %s8570_s27 = sld [smem:[#allocation9_spill]]  ;;  %s8574_s2 = smov %s6699_s25 }
 0xee3   : > { %s8571_s3 = sld [smem:[#allocation10_spill]]  ;;  %33 = sbr.rel (!%p31_p8) target bundleno = 21 (0x15), region = 177 }
 0xee4   : > { %s8572_s28 = sld [smem:[#allocation12_spill]] }
 0xee5   : > { %s8573_s29 = sld [smem:[#allocation14_spill]] }
 0xee6   : > { %s8575_s25 = smov %s8568_s18 }
 0xee8   :  { %5628 = vsyncpa [#allocation4], 1 }
 0xee9   :  { %5630 = vsyncpa [#allocation4 + $0x1], 1 }

</bundles_post_ra>
